<compile_context>
chip_gen: v5e
topology: v5e:2x2
jax: 0.10.0
libtpu: 0.0.40
codegen_flags: <defaults>
</compile_context>

<pallas_src>
import functools

import jax
import jax.numpy as jnp
from jax import lax
from jax.experimental import pallas as pl
from jax.experimental.pallas import tpu as pltpu

# ---------------- config (SupervisedConvolutionalFeatureExtractionV3Config) ----------
WAVE_NORM = True
NUM_TF = 16      # filters of conv_tf
SIZE_TF = 16     # kernel size of conv_tf
STRIDE_TF = 8
NUM_ENV = 4      # filters of conv_env
SIZE_ENV = 4     # kernel size of conv_env (time axis)
STRIDE_ENV = 2
F_OUT = NUM_TF * NUM_ENV
R_TF = SIZE_TF // STRIDE_TF          # number of STRIDE_TF-blocks per conv_tf patch

_HI = lax.Precision.HIGHEST


# ---------------- fused Pallas kernel --------------------------------------------------
def _fused_kernel(scale_ref, bias_ref, xr_ref, wtf_ref, wbig_ref, g_ref, b_ref, o_ref,
                  *, n_samples, t1, td, t2):
    """One batch element: wave-norm -> conv_tf+abs -> conv_env -> pow -> LayerNorm."""
    xr = xr_ref[0]                                        # [NROWS, STRIDE_TF]

    # ---- wave norm: one-pass mean / unbiased var over all (true) samples ----
    s = jnp.sum(xr, keepdims=True)                        # [1, 1]
    ss = jnp.sum(xr * xr, keepdims=True)                  # [1, 1]
    n = float(n_samples)
    mean = s * (1.0 / n)
    var = jnp.maximum(ss - n * mean * mean, 0.0) * (1.0 / (n - 1.0))
    alpha = scale_ref[0] * lax.rsqrt(var + 1e-6)          # learnable 1x1 conv folded in
    beta = bias_ref[0] - mean * alpha
    xn = xr * alpha + beta                                # normalized audio, [NROWS, S]

    # ---- conv_tf (stride STRIDE_TF, size SIZE_TF) as shifted MXU matmuls + abs ----
    a = jnp.dot(xn[0:t1, :], wtf_ref[0:STRIDE_TF, :],
                preferred_element_type=jnp.float32, precision=_HI)
    for j in range(1, R_TF):
        a = a + jnp.dot(xn[j:j + t1, :],
                        wtf_ref[j * STRIDE_TF:(j + 1) * STRIDE_TF, :],
                        preferred_element_type=jnp.float32, precision=_HI)
    a = jnp.abs(a)                                        # [T1, NUM_TF]

    # ---- conv_env at stride 1 (structured weight bakes in tf-major feature order) ----
    d = jnp.dot(a[0:td, :], wbig_ref[0:NUM_TF, :],
                preferred_element_type=jnp.float32, precision=_HI)
    for k in range(1, SIZE_ENV):
        d = d + jnp.dot(a[k:k + td, :],
                        wbig_ref[k * NUM_TF:(k + 1) * NUM_TF, :],
                        preferred_element_type=jnp.float32, precision=_HI)  # [TD, F]

    # ---- stride-STRIDE_ENV time subsampling via one-hot selection matmul (exact) ----
    rows = lax.broadcasted_iota(jnp.int32, (t2, td), 0)
    cols = lax.broadcasted_iota(jnp.int32, (t2, td), 1)
    sel = (cols == rows * STRIDE_ENV).astype(jnp.float32)
    y = jnp.dot(sel, d, preferred_element_type=jnp.float32, precision=_HI)  # [T2, F]

    # ---- pow(|y| + 1e-5, 1/2.5)  (argument strictly positive -> exp/log on EUP) ----
    y = jnp.exp(jnp.log(jnp.abs(y) + 1e-5) * (1.0 / 2.5))

    # ---- LayerNorm over feature dim, one-pass stats (biased var, eps=1e-5) ----
    s1 = jnp.sum(y, axis=-1, keepdims=True)
    s2 = jnp.sum(y * y, axis=-1, keepdims=True)
    mu = s1 * (1.0 / F_OUT)
    v = jnp.maximum(s2 * (1.0 / F_OUT) - mu * mu, 0.0)
    o_ref[0] = (y - mu) * lax.rsqrt(v + 1e-5) * g_ref[...] + b_ref[...]


# ---------------- wrapper -------------------------------------------------------------
def forward_pallas(raw_audio, length, params):
    B, T = raw_audio.shape
    assert SIZE_TF % STRIDE_TF == 0, "kernel assumes size_tf divisible by stride_tf"

    T1 = (T - SIZE_TF) // STRIDE_TF + 1
    T2 = (T1 - SIZE_ENV) // STRIDE_ENV + 1
    TD = T1 - SIZE_ENV + 1                   # stride-1 env-conv length

    # free reshape of the raw audio so conv_tf patches become row pairs
    pad = (-T) % STRIDE_TF
    x = raw_audio.astype(jnp.float32)
    if pad:
        x = jnp.pad(x, ((0, 0), (0, pad)))   # padded tail is never read by the convs
    nrows = (T + pad) // STRIDE_TF
    xr = x.reshape(B, nrows, STRIDE_TF)

    # conv_tf weight as [SIZE_TF, NUM_TF]
    w_tf_t = jnp.transpose(params["w_tf"]).astype(jnp.float32)

    # structured conv_env weight with torch feature order (f = tf*NUM_ENV + env) baked in:
    #   w_big[k*NUM_TF + tf, tf*NUM_ENV + env] = w_env[env, k]
    eye_tf = jnp.eye(NUM_TF, dtype=jnp.float32)
    w_big = jnp.einsum("ek,tu->ktue", params["w_env"].astype(jnp.float32), eye_tf)
    w_big = w_big.reshape(SIZE_ENV * NUM_TF, F_OUT)

    gamma = params["gamma"].reshape(1, F_OUT).astype(jnp.float32)
    beta = params["beta"].reshape(1, F_OUT).astype(jnp.float32)

    kernel = functools.partial(_fused_kernel, n_samples=T, t1=T1, td=TD, t2=T2)

    feats = pl.pallas_call(
        kernel,
        out_shape=jax.ShapeDtypeStruct((B, T2, F_OUT), jnp.float32),
        grid=(B,),
        in_specs=[
            pl.BlockSpec(memory_space=pltpu.MemorySpace.SMEM),            # wave scale
            pl.BlockSpec(memory_space=pltpu.MemorySpace.SMEM),            # wave bias
            pl.BlockSpec((1, nrows, STRIDE_TF), lambda b: (b, 0, 0)),     # reshaped audio
            pl.BlockSpec((SIZE_TF, NUM_TF), lambda b: (0, 0)),            # conv_tf weight
            pl.BlockSpec((SIZE_ENV * NUM_TF, F_OUT), lambda b: (0, 0)),   # conv_env weight
            pl.BlockSpec((1, F_OUT), lambda b: (0, 0)),                   # gamma
            pl.BlockSpec((1, F_OUT), lambda b: (0, 0)),                   # beta
        ],
        out_specs=pl.BlockSpec((1, T2, F_OUT), lambda b: (b, 0, 0)),
        compiler_params=pltpu.CompilerParams(dimension_semantics=("parallel",)),
    )(params["wave_scale"], params["wave_bias"], xr, w_tf_t, w_big, gamma, beta)

    # length downsampling (matches torch .int() truncation for positive values)
    l1 = ((length.astype(jnp.float32) - SIZE_TF) / STRIDE_TF + 1).astype(jnp.int32)
    l2 = ((l1.astype(jnp.float32) - SIZE_ENV) / STRIDE_ENV + 1).astype(jnp.int32)
    return feats, l2


# ---------------- pure-JAX reference (for correctness check) --------------------------
def forward_reference(raw_audio, length, params):
    B, T = raw_audio.shape
    x = raw_audio.astype(jnp.float32)
    mean = jnp.mean(x, axis=-1, keepdims=True)
    xc = x - mean
    var = jnp.sum(xc * xc, axis=-1, keepdims=True) / (T - 1)
    x = xc * jax.lax.rsqrt(var + 1e-6)
    x = x * params["wave_scale"][0] + params["wave_bias"][0]

    a = jax.lax.conv_general_dilated(
        x[:, None, None, :], params["w_tf"][:, None, None, :],
        window_strides=(1, STRIDE_TF), padding="VALID",
        dimension_numbers=("NCHW", "OIHW", "NCHW"),
        precision=_HI)                                              # [B, NUM_TF, 1, T1]
    a = jnp.abs(a)[:, :, 0, :]                                      # [B, NUM_TF, T1]

    e = jax.lax.conv_general_dilated(
        a[:, None, :, :], params["w_env"][:, None, None, :],
        window_strides=(1, STRIDE_ENV), padding="VALID",
        dimension_numbers=("NCHW", "OIHW", "NCHW"),
        precision=_HI)                                              # [B, NUM_ENV, NUM_TF, T2]
    T2 = e.shape[-1]
    f = jnp.transpose(e, (0, 2, 1, 3)).reshape(B, NUM_TF * NUM_ENV, T2)
    f = jnp.power(jnp.abs(f) + 1e-5, 1.0 / 2.5)
    f = jnp.transpose(f, (0, 2, 1))                                 # [B, T2, F]
    mu = jnp.mean(f, axis=-1, keepdims=True)
    v = jnp.mean((f - mu) ** 2, axis=-1, keepdims=True)
    f = (f - mu) * jax.lax.rsqrt(v + 1e-5) * params["gamma"] + params["beta"]

    l1 = ((length.astype(jnp.float32) - SIZE_TF) / STRIDE_TF + 1).astype(jnp.int32)
    l2 = ((l1.astype(jnp.float32) - SIZE_ENV) / STRIDE_ENV + 1).astype(jnp.int32)
    return f, l2


# ---------------- main ----------------------------------------------------------------
if __name__ == "__main__":
    B = 2
    T = 1032                                  # -> T1 = 128, T2 = 63, F = 64
    T1 = (T - SIZE_TF) // STRIDE_TF + 1
    T2 = (T1 - SIZE_ENV) // STRIDE_ENV + 1

    key = jax.random.PRNGKey(0)
    ks = jax.random.split(key, 7)
    params = {
        # nn.Conv1d(1,1,1): weight [1,1,1] -> scalar scale, bias [1]
        "wave_scale": jax.random.uniform(ks[0], (1,), jnp.float32, -1.0, 1.0),
        "wave_bias": jax.random.uniform(ks[1], (1,), jnp.float32, -1.0, 1.0),
        # nn.Conv1d(1, NUM_TF, SIZE_TF, bias=False): weight [NUM_TF, 1, SIZE_TF]
        "w_tf": jax.random.uniform(ks[2], (NUM_TF, SIZE_TF), jnp.float32, -1.0, 1.0)
        / jnp.sqrt(SIZE_TF),
        # nn.Conv2d(1, NUM_ENV, (1, SIZE_ENV), bias=False): weight [NUM_ENV, 1, 1, SIZE_ENV]
        "w_env": jax.random.uniform(ks[3], (NUM_ENV, SIZE_ENV), jnp.float32, -1.0, 1.0)
        / jnp.sqrt(SIZE_ENV),
        # nn.LayerNorm(NUM_TF * NUM_ENV)
        "gamma": 1.0 + 0.1 * jax.random.normal(ks[4], (F_OUT,), jnp.float32),
        "beta": 0.1 * jax.random.normal(ks[5], (F_OUT,), jnp.float32),
    }

    raw_audio = jax.random.normal(ks[6], (B, T), jnp.float32)
    length = jnp.array([T, T - 37], dtype=jnp.int32)

    feats, out_len = jax.block_until_ready(forward_pallas(raw_audio, length, params))

    ref_feats, ref_len = forward_reference(raw_audio, length, params)
    assert feats.shape == (B, T2, F_OUT), feats.shape
    assert out_len.dtype == jnp.int32
    assert jnp.array_equal(out_len, ref_len)
    assert jnp.allclose(feats, ref_feats, atol=3e-3, rtol=3e-3)

    print("KERNEL_OK")
</pallas_src>

<mosaic_0001>
module attributes {stable_mosaic.version = 11 : i64} {
  func.func @_fused_kernel(%arg0: i32, %arg1: memref<1xf32, #tpu.memory_space<smem>>, %arg2: memref<1xf32, #tpu.memory_space<smem>>, %arg3: memref<1x129x8xf32, #tpu.memory_space<vmem>>, %arg4: memref<16x16xf32, #tpu.memory_space<vmem>>, %arg5: memref<64x64xf32, #tpu.memory_space<vmem>>, %arg6: memref<1x64xf32, #tpu.memory_space<vmem>>, %arg7: memref<1x64xf32, #tpu.memory_space<vmem>>, %arg8: memref<1x63x64xf32, #tpu.memory_space<vmem>>) attributes {dimension_semantics = [#tpu.dimension_semantics<parallel>], iteration_bounds = array<i64: 2>, scalar_prefetch = 0 : i64, scratch_operands = 0 : i64, tpu.core_type = #tpu.core_type<tc>, window_params = [{transform_indices = @transform_0, window_bounds = array<i64: 1>}, {transform_indices = @transform_1, window_bounds = array<i64: 1>}, {transform_indices = @transform_2, window_bounds = array<i64: 1, 129, 8>}, {pipeline_mode = #tpu.pipeline_mode<synchronous>, transform_indices = @transform_3, window_bounds = array<i64: 16, 16>}, {pipeline_mode = #tpu.pipeline_mode<synchronous>, transform_indices = @transform_4, window_bounds = array<i64: 64, 64>}, {pipeline_mode = #tpu.pipeline_mode<synchronous>, transform_indices = @transform_5, window_bounds = array<i64: 1, 64>}, {pipeline_mode = #tpu.pipeline_mode<synchronous>, transform_indices = @transform_6, window_bounds = array<i64: 1, 64>}, {transform_indices = @transform_7, window_bounds = array<i64: 1, 63, 64>}]} {
    %c0 = arith.constant 0 : index
    %c0_0 = arith.constant 0 : index
    %c0_1 = arith.constant 0 : index
    %0 = vector.load %arg3[%c0, %c0_0, %c0_1] : memref<1x129x8xf32, #tpu.memory_space<vmem>>, vector<1x129x8xf32>
    %1 = vector.shape_cast %0 : vector<1x129x8xf32> to vector<129x8xf32>
    %2 = vector.shape_cast %1 : vector<129x8xf32> to vector<1x129x8xf32>
    %cst = arith.constant dense<0.000000e+00> : vector<1xf32>
    %3 = vector.multi_reduction <add>, %2, %cst [1, 2] : vector<1x129x8xf32> to vector<1xf32>
    %4 = vector.shape_cast %3 : vector<1xf32> to vector<1x1x1xf32>
    %5 = vector.extract %4[0, 0, 0] : f32 from vector<1x1x1xf32>
    %6 = vector.broadcast %5 : f32 to vector<1x1xf32>
    %7 = arith.mulf %1, %1 : vector<129x8xf32>
    %8 = vector.shape_cast %7 : vector<129x8xf32> to vector<1x129x8xf32>
    %cst_2 = arith.constant dense<0.000000e+00> : vector<1xf32>
    %9 = vector.multi_reduction <add>, %8, %cst_2 [1, 2] : vector<1x129x8xf32> to vector<1xf32>
    %10 = vector.shape_cast %9 : vector<1xf32> to vector<1x1x1xf32>
    %11 = vector.extract %10[0, 0, 0] : f32 from vector<1x1x1xf32>
    %12 = vector.broadcast %11 : f32 to vector<1x1xf32>
    %cst_3 = arith.constant 9.68992244E-4 : f32
    %13 = vector.broadcast %cst_3 : f32 to vector<1x1xf32>
    %14 = arith.mulf %6, %13 : vector<1x1xf32>
    %cst_4 = arith.constant 1.032000e+03 : f32
    %15 = vector.broadcast %cst_4 : f32 to vector<1x1xf32>
    %16 = arith.mulf %15, %14 : vector<1x1xf32>
    %17 = arith.mulf %16, %14 : vector<1x1xf32>
    %18 = arith.subf %12, %17 : vector<1x1xf32>
    %cst_5 = arith.constant 0.000000e+00 : f32
    %19 = vector.broadcast %cst_5 : f32 to vector<1x1xf32>
    %20 = arith.maximumf %18, %19 : vector<1x1xf32>
    %cst_6 = arith.constant 9.69932124E-4 : f32
    %21 = vector.broadcast %cst_6 : f32 to vector<1x1xf32>
    %22 = arith.mulf %20, %21 : vector<1x1xf32>
    %c0_7 = arith.constant 0 : index
    %23 = memref.load %arg1[%c0_7] : memref<1xf32, #tpu.memory_space<smem>>
    %cst_8 = arith.constant 9.99999997E-7 : f32
    %24 = vector.broadcast %cst_8 : f32 to vector<1x1xf32>
    %25 = arith.addf %22, %24 : vector<1x1xf32>
    %26 = math.rsqrt %25 : vector<1x1xf32>
    %27 = vector.broadcast %23 : f32 to vector<1x1xf32>
    %28 = arith.mulf %27, %26 : vector<1x1xf32>
    %c0_9 = arith.constant 0 : index
    %29 = memref.load %arg2[%c0_9] : memref<1xf32, #tpu.memory_space<smem>>
    %30 = arith.mulf %14, %28 : vector<1x1xf32>
    %31 = vector.broadcast %29 : f32 to vector<1x1xf32>
    %32 = arith.subf %31, %30 : vector<1x1xf32>
    %33 = vector.broadcast %28 : vector<1x1xf32> to vector<129x8xf32>
    %34 = arith.mulf %1, %33 : vector<129x8xf32>
    %35 = vector.broadcast %32 : vector<1x1xf32> to vector<129x8xf32>
    %36 = arith.addf %34, %35 : vector<129x8xf32>
    %37 = vector.extract_strided_slice %36 {offsets = [0, 0], sizes = [128, 8], strides = [1, 1]} : vector<129x8xf32> to vector<128x8xf32>
    %c0_10 = arith.constant 0 : index
    %c0_11 = arith.constant 0 : index
    %38 = vector.load %arg4[%c0_10, %c0_11] : memref<16x16xf32, #tpu.memory_space<vmem>>, vector<8x16xf32>
    %cst_12 = arith.constant dense<0.000000e+00> : vector<128x16xf32>
    %39 = tpu.matmul %37, %38, %cst_12 {dimension_numbers = #tpu.dot_dimension_numbers<[1], [0], [0], [1], [0, 0, 1, 1], [], []>, precision = #tpu.contract_precision<fp32>} : vector<128x8xf32>, vector<8x16xf32>, vector<128x16xf32> -> vector<128x16xf32>
    %40 = vector.extract_strided_slice %36 {offsets = [1, 0], sizes = [128, 8], strides = [1, 1]} : vector<129x8xf32> to vector<128x8xf32>
    %c8 = arith.constant 8 : index
    %c0_13 = arith.constant 0 : index
    %41 = vector.load %arg4[%c8, %c0_13] : memref<16x16xf32, #tpu.memory_space<vmem>>, vector<8x16xf32>
    %cst_14 = arith.constant dense<0.000000e+00> : vector<128x16xf32>
    %42 = tpu.matmul %40, %41, %cst_14 {dimension_numbers = #tpu.dot_dimension_numbers<[1], [0], [0], [1], [0, 0, 1, 1], [], []>, precision = #tpu.contract_precision<fp32>} : vector<128x8xf32>, vector<8x16xf32>, vector<128x16xf32> -> vector<128x16xf32>
    %43 = arith.addf %39, %42 : vector<128x16xf32>
    %44 = math.absf %43 : vector<128x16xf32>
    %45 = vector.extract_strided_slice %44 {offsets = [0, 0], sizes = [125, 16], strides = [1, 1]} : vector<128x16xf32> to vector<125x16xf32>
    %c0_15 = arith.constant 0 : index
    %c0_16 = arith.constant 0 : index
    %46 = vector.load %arg5[%c0_15, %c0_16] : memref<64x64xf32, #tpu.memory_space<vmem>>, vector<16x64xf32>
    %cst_17 = arith.constant dense<0.000000e+00> : vector<125x64xf32>
    %47 = tpu.matmul %45, %46, %cst_17 {dimension_numbers = #tpu.dot_dimension_numbers<[1], [0], [0], [1], [0, 0, 1, 1], [], []>, precision = #tpu.contract_precision<fp32>} : vector<125x16xf32>, vector<16x64xf32>, vector<125x64xf32> -> vector<125x64xf32>
    %48 = vector.extract_strided_slice %44 {offsets = [1, 0], sizes = [125, 16], strides = [1, 1]} : vector<128x16xf32> to vector<125x16xf32>
    %c16 = arith.constant 16 : index
    %c0_18 = arith.constant 0 : index
    %49 = vector.load %arg5[%c16, %c0_18] : memref<64x64xf32, #tpu.memory_space<vmem>>, vector<16x64xf32>
    %cst_19 = arith.constant dense<0.000000e+00> : vector<125x64xf32>
    %50 = tpu.matmul %48, %49, %cst_19 {dimension_numbers = #tpu.dot_dimension_numbers<[1], [0], [0], [1], [0, 0, 1, 1], [], []>, precision = #tpu.contract_precision<fp32>} : vector<125x16xf32>, vector<16x64xf32>, vector<125x64xf32> -> vector<125x64xf32>
    %51 = arith.addf %47, %50 : vector<125x64xf32>
    %52 = vector.extract_strided_slice %44 {offsets = [2, 0], sizes = [125, 16], strides = [1, 1]} : vector<128x16xf32> to vector<125x16xf32>
    %c32 = arith.constant 32 : index
    %c0_20 = arith.constant 0 : index
    %53 = vector.load %arg5[%c32, %c0_20] : memref<64x64xf32, #tpu.memory_space<vmem>>, vector<16x64xf32>
    %cst_21 = arith.constant dense<0.000000e+00> : vector<125x64xf32>
    %54 = tpu.matmul %52, %53, %cst_21 {dimension_numbers = #tpu.dot_dimension_numbers<[1], [0], [0], [1], [0, 0, 1, 1], [], []>, precision = #tpu.contract_precision<fp32>} : vector<125x16xf32>, vector<16x64xf32>, vector<125x64xf32> -> vector<125x64xf32>
    %55 = arith.addf %51, %54 : vector<125x64xf32>
    %56 = vector.extract_strided_slice %44 {offsets = [3, 0], sizes = [125, 16], strides = [1, 1]} : vector<128x16xf32> to vector<125x16xf32>
    %c48 = arith.constant 48 : index
    %c0_22 = arith.constant 0 : index
    %57 = vector.load %arg5[%c48, %c0_22] : memref<64x64xf32, #tpu.memory_space<vmem>>, vector<16x64xf32>
    %cst_23 = arith.constant dense<0.000000e+00> : vector<125x64xf32>
    %58 = tpu.matmul %56, %57, %cst_23 {dimension_numbers = #tpu.dot_dimension_numbers<[1], [0], [0], [1], [0, 0, 1, 1], [], []>, precision = #tpu.contract_precision<fp32>} : vector<125x16xf32>, vector<16x64xf32>, vector<125x64xf32> -> vector<125x64xf32>
    %59 = arith.addf %55, %58 : vector<125x64xf32>
    %60 = tpu.iota {dimensions = array<i32: 0>} : vector<63x125xi32>
    %61 = tpu.iota {dimensions = array<i32: 1>} : vector<63x125xi32>
    %c2_i32 = arith.constant 2 : i32
    %62 = vector.broadcast %c2_i32 : i32 to vector<63x125xi32>
    %63 = arith.muli %60, %62 : vector<63x125xi32>
    %64 = arith.cmpi eq, %61, %63 : vector<63x125xi32>
    %65 = arith.extui %64 : vector<63x125xi1> to vector<63x125xi32>
    %66 = arith.sitofp %65 : vector<63x125xi32> to vector<63x125xf32>
    %cst_24 = arith.constant dense<0.000000e+00> : vector<63x64xf32>
    %67 = tpu.matmul %66, %59, %cst_24 {dimension_numbers = #tpu.dot_dimension_numbers<[1], [0], [0], [1], [0, 0, 1, 1], [], []>, precision = #tpu.contract_precision<fp32>} : vector<63x125xf32>, vector<125x64xf32>, vector<63x64xf32> -> vector<63x64xf32>
    %68 = math.absf %67 : vector<63x64xf32>
    %cst_25 = arith.constant 9.99999974E-6 : f32
    %69 = vector.broadcast %cst_25 : f32 to vector<63x64xf32>
    %70 = arith.addf %68, %69 : vector<63x64xf32>
    %71 = math.log %70 : vector<63x64xf32>
    %cst_26 = arith.constant 4.000000e-01 : f32
    %72 = vector.broadcast %cst_26 : f32 to vector<63x64xf32>
    %73 = arith.mulf %71, %72 : vector<63x64xf32>
    %74 = math.exp %73 : vector<63x64xf32>
    %cst_27 = arith.constant dense<0.000000e+00> : vector<63xf32>
    %75 = vector.multi_reduction <add>, %74, %cst_27 [1] : vector<63x64xf32> to vector<63xf32>
    %76 = vector.shape_cast %75 : vector<63xf32> to vector<63x1xf32>
    %77 = arith.mulf %74, %74 : vector<63x64xf32>
    %cst_28 = arith.constant dense<0.000000e+00> : vector<63xf32>
    %78 = vector.multi_reduction <add>, %77, %cst_28 [1] : vector<63x64xf32> to vector<63xf32>
    %79 = vector.shape_cast %78 : vector<63xf32> to vector<63x1xf32>
    %cst_29 = arith.constant 1.562500e-02 : f32
    %80 = vector.broadcast %cst_29 : f32 to vector<63x1xf32>
    %81 = arith.mulf %76, %80 : vector<63x1xf32>
    %cst_30 = arith.constant 1.562500e-02 : f32
    %82 = vector.broadcast %cst_30 : f32 to vector<63x1xf32>
    %83 = arith.mulf %79, %82 : vector<63x1xf32>
    %84 = arith.mulf %81, %81 : vector<63x1xf32>
    %85 = arith.subf %83, %84 : vector<63x1xf32>
    %cst_31 = arith.constant 0.000000e+00 : f32
    %86 = vector.broadcast %cst_31 : f32 to vector<63x1xf32>
    %87 = arith.maximumf %85, %86 : vector<63x1xf32>
    %88 = vector.broadcast %81 : vector<63x1xf32> to vector<63x64xf32>
    %89 = arith.subf %74, %88 : vector<63x64xf32>
    %cst_32 = arith.constant 9.99999974E-6 : f32
    %90 = vector.broadcast %cst_32 : f32 to vector<63x1xf32>
    %91 = arith.addf %87, %90 : vector<63x1xf32>
    %92 = math.rsqrt %91 : vector<63x1xf32>
    %93 = vector.broadcast %92 : vector<63x1xf32> to vector<63x64xf32>
    %94 = arith.mulf %89, %93 : vector<63x64xf32>
    %c0_33 = arith.constant 0 : index
    %c0_34 = arith.constant 0 : index
    %95 = vector.load %arg6[%c0_33, %c0_34] : memref<1x64xf32, #tpu.memory_space<vmem>>, vector<1x64xf32>
    %96 = vector.broadcast %95 : vector<1x64xf32> to vector<63x64xf32>
    %97 = arith.mulf %94, %96 : vector<63x64xf32>
    %c0_35 = arith.constant 0 : index
    %c0_36 = arith.constant 0 : index
    %98 = vector.load %arg7[%c0_35, %c0_36] : memref<1x64xf32, #tpu.memory_space<vmem>>, vector<1x64xf32>
    %99 = vector.broadcast %98 : vector<1x64xf32> to vector<63x64xf32>
    %100 = arith.addf %97, %99 : vector<63x64xf32>
    %c0_37 = arith.constant 0 : index
    %c0_38 = arith.constant 0 : index
    %c0_39 = arith.constant 0 : index
    %101 = vector.load %arg8[%c0_37, %c0_38, %c0_39] : memref<1x63x64xf32, #tpu.memory_space<vmem>>, vector<1x63x64xf32>
    %102 = vector.shape_cast %101 : vector<1x63x64xf32> to vector<63x64xf32>
    %103 = vector.shape_cast %100 : vector<63x64xf32> to vector<1x63x64xf32>
    tpu.vector_store %arg8[%c0_37, %c0_38, %c0_39], %103 {strides = array<i32>} : memref<1x63x64xf32, #tpu.memory_space<vmem>>, vector<1x63x64xf32>,
    return
  }
  func.func @transform_0(%arg0: i32) -> i32 {
    %c0_i32 = arith.constant 0 : i32
    %c0_i32_0 = arith.constant 0 : i32
    return %c0_i32 : i32
  }
  func.func @transform_1(%arg0: i32) -> i32 {
    %c0_i32 = arith.constant 0 : i32
    %c0_i32_0 = arith.constant 0 : i32
    return %c0_i32 : i32
  }
  func.func @transform_2(%arg0: i32) -> (i32, i32, i32) {
    %c0_i32 = arith.constant 0 : i32
    %c0_i32_0 = arith.constant 0 : i32
    %c0_i32_1 = arith.constant 0 : i32
    return %arg0, %c0_i32, %c0_i32_0 : i32, i32, i32
  }
  func.func @transform_3(%arg0: i32) -> (i32, i32) {
    %c0_i32 = arith.constant 0 : i32
    %c0_i32_0 = arith.constant 0 : i32
    %c0_i32_1 = arith.constant 0 : i32
    return %c0_i32, %c0_i32_0 : i32, i32
  }
  func.func @transform_4(%arg0: i32) -> (i32, i32) {
    %c0_i32 = arith.constant 0 : i32
    %c0_i32_0 = arith.constant 0 : i32
    %c0_i32_1 = arith.constant 0 : i32
    return %c0_i32, %c0_i32_0 : i32, i32
  }
  func.func @transform_5(%arg0: i32) -> (i32, i32) {
    %c0_i32 = arith.constant 0 : i32
    %c0_i32_0 = arith.constant 0 : i32
    %c0_i32_1 = arith.constant 0 : i32
    return %c0_i32, %c0_i32_0 : i32, i32
  }
  func.func @transform_6(%arg0: i32) -> (i32, i32) {
    %c0_i32 = arith.constant 0 : i32
    %c0_i32_0 = arith.constant 0 : i32
    %c0_i32_1 = arith.constant 0 : i32
    return %c0_i32, %c0_i32_0 : i32, i32
  }
  func.func @transform_7(%arg0: i32) -> (i32, i32, i32) {
    %c0_i32 = arith.constant 0 : i32
    %c0_i32_0 = arith.constant 0 : i32
    %c0_i32_1 = arith.constant 0 : i32
    return %arg0, %c0_i32, %c0_i32_0 : i32, i32, i32
  }
}

</mosaic_0001>

<bundles_post_ra>
// kernel: tpu_custom_call.1
= control target key start
LH: loop header
LB: loop body
LE: loop exit
PB: predicated region body
PF: predicated region fallthrough
CT: control target
= control target key end

     0   :  { %s5732_s28 = smov 0   ;;  %s8654_s0 = inlined_call_operand.<no memory space> [shape: f32[1], index: 0, kind: input, shape index: {}]   ;;  %s8655_s1 = inlined_call_operand.<no memory space> [shape: f32[1], index: 1, kind: input, shape index: {}]   ;;  %s8656_s2 = inlined_call_operand.vmem [shape: f32[2,129,8], index: 2, kind: input, shape index: {}]   ;;  %s8657_s3 = inlined_call_operand.vmem [shape: f32[16,16], index: 3, kind: input, shape index: {}]   ;;  %s8658_s4 = inlined_call_operand.vmem [shape: f32[64,64], index: 4, kind: input, shape index: {}]   ;;  %s8659_s5 = inlined_call_operand.vmem [shape: f32[1,64], index: 5, kind: input, shape index: {}]   ;;  %s8660_s6 = inlined_call_operand.vmem [shape: f32[1,64], index: 6, kind: input, shape index: {}]   ;;  %s8661_s7 = inlined_call_operand.vmem [shape: f32[2,63,64], index: 7, kind: output, shape index: {}]  }
   0x1   :  { %12 = sst [smem:[#allocation2]] %s8654_s0 }
   0x2   :  { %13 = sst [smem:[#allocation3]] %s8655_s1 }
   0x3 LB: > { %s5566_s29 = sadd.s32 4294967295, %s5683_s28   ;;  %p5570_p0 = scmp.ge.s32.totalorder %s5683_s28, 1  ;;  %s5683_s28 = sphi %s5732_s28, %s19_s28  }
   0x4   : > { %p239_p1 = scmp.lt.s32.totalorder %s5683_s28, 3 }
   0x6   : > { %p240_p2 = pnand %p5570_p0, %p239_p1 }
   0x8   : > { %243 = sbr.rel (%p240_p2) target bundleno = 2104 (0x838), region = 48 }
   0xd   : > { %p271_p3 = scmp.lt.s32.totalorder %s5566_s29, 1  ;;  %vm298_vm0 = vcmask 64512   ;;  %vm330_vm1 = vcmask 57344   ;;  %s409_s13 = sld [smem:[#allocation2]]  ;;  %vm480_vm5 = vcmask 1046528   ;;  %vm3888_vm6 = vcmask 1044480  }
   0xe   : > { %s423_s14 = sld [smem:[#allocation3]]  ;;  %vm1867_vm7 = vcmask 130048   ;;  %vm3182_vm8 = vcmask 1045504   ;;  %vm4635_vm10 = vcmask 1022976  }
   0xf   : > { %s8889_s29 = smov (!%p271_p3, %s5566_s29), 1 }
  0x10   : > { %s5611_s0 = smul.u32 136, %s8889_s29 }
  0x12   : > { %s5746_s8 = scalar_lea.vmem %s8656_s2, %s5611_s0 }
  0x13   : > { %v5749_v0 = vld [vmem:[%s5746_s8] sm:$0xff]  ;;  %v5752_v1 = vld [vmem:[%s5746_s8 + $0x8] sm:$0xff]  ;;  %v5755_v2 = vld [vmem:[%s5746_s8 + $0x10] sm:$0xff] }
  0x14   : > { %v5758_v3 = vld [vmem:[%s5746_s8 + $0x18] sm:$0xff]  ;;  %v299_v4 = vsel %vm298_vm0, %v5749_v0, 0.0  ;;  %v300_v5 = vsel %vm298_vm0, %v5752_v1, 0.0  ;;  %v302_v6 = vsel %vm298_vm0, %v5755_v2, 0.0  ;;  %v5767_v7 = vld [vmem:[%s5746_s8 + $0x20] sm:$0xff]  ;;  %v5772_v10 = vld [vmem:[%s5746_s8 + $0x28] sm:$0xff]  ;;  %v343_v15 = vmul.f32 %v5749_v0, %v5749_v0 }
  0x15   : > { %v301_v8 = vadd.f32 %v300_v5, %v299_v4  ;;  %v304_v9 = vsel %vm298_vm0, %v5758_v3, 0.0  ;;  %v306_v12 = vsel %vm298_vm0, %v5767_v7, 0.0  ;;  %v5777_v13 = vld [vmem:[%s5746_s8 + $0x30] sm:$0xff]  ;;  %v308_v16 = vsel %vm298_vm0, %v5772_v10, 0.0  ;;  %v5788_v19 = vld [vmem:[%s5746_s8 + $0x38] sm:$0xff]  ;;  %v5795_v23 = vld [vmem:[%s5746_s8 + $0x40] sm:$0xff] }
  0x16   : > { %v344_v17 = vmul.f32 %v5752_v1, %v5752_v1  ;;  %v345_v18 = vmul.f32 %v5755_v2, %v5755_v2  ;;  %v310_v21 = vsel %vm298_vm0, %v5777_v13, 0.0  ;;  %v346_v22 = vmul.f32 %v5758_v3, %v5758_v3  ;;  %v5805_v30 = vld [vmem:[%s5746_s8 + $0x48] sm:$0xff]  ;;  %v5813_v36 = vld [vmem:[%s5746_s8 + $0x50] sm:$0xff]  ;;  %v5821_v42 = vld [vmem:[%s5746_s8 + $0x58] sm:$0xff] }
  0x17   : > { %v303_v11 = vadd.f32 %v302_v6, %v301_v8  ;;  %v360_v25 = vsel %vm298_vm0, %v343_v15, 0.0  ;;  %v312_v26 = vsel %vm298_vm0, %v5788_v19, 0.0  ;;  %v347_v27 = vmul.f32 %v5767_v7, %v5767_v7  ;;  %v5829_v48 = vld [vmem:[%s5746_s8 + $0x60] sm:$0xff]  ;;  %v5837_v54 = vld [vmem:[%s5746_s8 + $0x68] sm:$0xff]  ;;  %v5845_v60 = vld [vmem:[%s5746_s8 + $0x70] sm:$0xff] }
  0x18   : > { %v361_v28 = vsel %vm298_vm0, %v344_v17, 0.0  ;;  %v363_v29 = vsel %vm298_vm0, %v345_v18, 0.0  ;;  %v314_v33 = vsel %vm298_vm0, %v5795_v23, 0.0  ;;  %v348_v34 = vmul.f32 %v5772_v10, %v5772_v10  ;;  %v5853_v6 = vld [vmem:[%s5746_s8 + $0x78] sm:$0xff]  ;;  %v5861_v15 = vld [vmem:[%s5746_s8 + $0x80] sm:$0x1] }
  0x19   : > { %v305_v14 = vadd.f32 %v304_v9, %v303_v11  ;;  %v362_v32 = vadd.f32 %v361_v28, %v360_v25  ;;  %v365_v35 = vsel %vm298_vm0, %v346_v22, 0.0  ;;  %v316_v39 = vsel %vm298_vm0, %v5805_v30, 0.0 }
  0x1a   : > { %v349_v40 = vmul.f32 %v5777_v13, %v5777_v13  ;;  %v367_v41 = vsel %vm298_vm0, %v347_v27, 0.0  ;;  %v318_v45 = vsel %vm298_vm0, %v5813_v36, 0.0  ;;  %v350_v46 = vmul.f32 %v5788_v19, %v5788_v19 }
  0x1b   : > { %v307_v20 = vadd.f32 %v306_v12, %v305_v14  ;;  %v364_v38 = vadd.f32 %v363_v29, %v362_v32  ;;  %v369_v47 = vsel %vm298_vm0, %v348_v34, 0.0  ;;  %v320_v51 = vsel %vm298_vm0, %v5821_v42, 0.0 }
  0x1c   : > { %v351_v52 = vmul.f32 %v5795_v23, %v5795_v23  ;;  %v371_v53 = vsel %vm298_vm0, %v349_v40, 0.0  ;;  %v322_v57 = vsel %vm298_vm0, %v5829_v48, 0.0  ;;  %v352_v58 = vmul.f32 %v5805_v30, %v5805_v30 }
  0x1d   : > { %v309_v24 = vadd.f32 %v308_v16, %v307_v20  ;;  %v366_v44 = vadd.f32 %v365_v35, %v364_v38  ;;  %v373_v59 = vsel %vm298_vm0, %v350_v46, 0.0  ;;  %v324_v63 = vsel %vm298_vm0, %v5837_v54, 0.0 }
  0x1e   : > { %v353_v4 = vmul.f32 %v5813_v36, %v5813_v36  ;;  %v375_v5 = vsel %vm298_vm0, %v351_v52, 0.0  ;;  %v326_v11 = vsel %vm298_vm0, %v5845_v60, 0.0  ;;  %v354_v12 = vmul.f32 %v5821_v42, %v5821_v42 }
  0x1f   : > { %v311_v31 = vadd.f32 %v310_v21, %v309_v24  ;;  %v368_v50 = vadd.f32 %v367_v41, %v366_v44  ;;  %v377_v14 = vsel %vm298_vm0, %v352_v58, 0.0  ;;  %v328_v18 = vsel %vm298_vm0, %v5853_v6, 0.0 }
  0x20   : > { %v355_v20 = vmul.f32 %v5829_v48, %v5829_v48  ;;  %v379_v21 = vsel %vm298_vm0, %v353_v4, 0.0  ;;  %v331_v25 = vsel %vm330_vm1, %v5861_v15, 0.0  ;;  %v381_v27 = vsel %vm298_vm0, %v354_v12, 0.0 }
  0x21   : > { %v313_v37 = vadd.f32 %v312_v26, %v311_v31  ;;  %v370_v56 = vadd.f32 %v369_v47, %v368_v50  ;;  %v356_v26 = vmul.f32 %v5837_v54, %v5837_v54  ;;  %v357_v31 = vmul.f32 %v5845_v60, %v5845_v60 }
  0x22   : > { %v383_v32 = vsel %vm298_vm0, %v355_v20, 0.0  ;;  %v358_v35 = vmul.f32 %v5853_v6, %v5853_v6 }
  0x23   : > { %v315_v43 = vadd.f32 %v314_v33, %v313_v37  ;;  %v372_v62 = vadd.f32 %v371_v53, %v370_v56  ;;  %v385_v37 = vsel %vm298_vm0, %v356_v26, 0.0  ;;  %v387_v40 = vsel %vm298_vm0, %v357_v31, 0.0 }
  0x25   : > { %v317_v49 = vadd.f32 %v316_v39, %v315_v43  ;;  %v374_v9 = vadd.f32 %v373_v59, %v372_v62  ;;  %v359_v39 = vmul.f32 %v5861_v15, %v5861_v15  ;;  %v389_v43 = vsel %vm298_vm0, %v358_v35, 0.0 }
  0x27   : > { %v319_v55 = vadd.f32 %v318_v45, %v317_v49  ;;  %v376_v17 = vadd.f32 %v375_v5, %v374_v9  ;;  %v391_v45 = vsel %vm330_vm1, %v359_v39, 0.0 }
  0x29   : > { %v321_v61 = vadd.f32 %v320_v51, %v319_v55  ;;  %v378_v24 = vadd.f32 %v377_v14, %v376_v17 }
  0x2b   : > { %v323_v8 = vadd.f32 %v322_v57, %v321_v61  ;;  %v380_v29 = vadd.f32 %v379_v21, %v378_v24 }
  0x2d   : > { %v325_v16 = vadd.f32 %v324_v63, %v323_v8  ;;  %v382_v34 = vadd.f32 %v381_v27, %v380_v29 }
  0x2f   : > { %v327_v22 = vadd.f32 %v326_v11, %v325_v16  ;;  %v384_v38 = vadd.f32 %v383_v32, %v382_v34  ;;  %v462_v11 = vld [vmem:[%s8657_s3 + $0x8] sm:$0xff]  ;;  %v421_v34 = vstv %s409_s13 }
  0x30   : > { %v561_v12 = vand.u32 4294901760, %v462_v11 }
  0x31   : > { %v329_v28 = vadd.f32 %v328_v18, %v327_v22  ;;  %v386_v41 = vadd.f32 %v385_v37, %v384_v38  ;;  %v425_v38 = vstv %s423_s14 }
  0x32   : > { %v708_v14 = vsub.f32 %v462_v11, %v561_v12  ;;  %562 = vmatpush.msra.mxu0 %v561_v12  ;;  %5609 = vmatpush.msra.mxu2 %v561_v12 }
  0x33   : > { %v332_v33 = vadd.f32 %v331_v25, %v329_v28  ;;  %v388_v44 = vadd.f32 %v387_v40, %v386_v41 }
  0x34   : > { %v709_v18 = vand.u32 4294901760, %v708_v14  ;;  %795 = vmatpush.msrb.mxu2 %v708_v14 }
  0x35   : > { %333 = vadd.xlane.f32.xlu0 %v332_v33  ;;  %v390_v46 = vadd.f32 %v389_v43, %v388_v44 }
  0x36   : > { %v710_v21 = vsub.f32 %v708_v14, %v709_v18  ;;  %1009 = vmatpush.msrb.mxu0 %v709_v18 }
  0x37   : > { %v392_v47 = vadd.f32 %v391_v45, %v390_v46 }
  0x38   : > { %v711_v24 = vand.u32 4294901760, %v710_v21 }
  0x3a   : > { %712 = vmatpush.msra.mxu1 %v711_v24  ;;  %5610 = vmatpush.msra.mxu3 %v711_v24 }
  0x3c   : > { %893 = vmatpush.msrb.mxu3 %v561_v12  ;;  %1091 = vmatpush.msrb.mxu1 %v561_v12 }
  0x3d   : > { %393 = vadd.xlane.f32.xlu0 %v392_v47 }
  0xa8   : > { %v334_v49 = vpop.xlane.xlu0 %333 }
  0xa9   : > { %v335_v50 = vrot.slane %v334_v49, 4 }
  0xab   : > { %v336_v51 = vadd.f32 %v335_v50, %v334_v49 }
  0xad   : > { %v337_v52 = vrot.slane %v336_v51, 2 }
  0xaf   : > { %v338_v53 = vadd.f32 %v337_v52, %v336_v51 }
  0xb0   : > { %v394_v56 = vpop.xlane.xlu0 %393 }
  0xb1   : > { %v339_v55 = vrot.slane %v338_v53, 1  ;;  %v395_v57 = vrot.slane %v394_v56, 4 }
  0xb3   : > { %v340_v58 = vadd.f32 %v339_v55, %v338_v53  ;;  %v396_v59 = vadd.f32 %v395_v57, %v394_v56 }
  0xb5   : > { %5612 = vpush %v340_v58  ;;  %v397_v61 = vrot.slane %v396_v59, 2 }
  0xb7   : > { %v398_v62 = vadd.f32 %v397_v61, %v396_v59 }
  0xb9   : > { %v399_v63 = vrot.slane %v398_v62, 1 }
  0xbb   : > { %v400_v4 = vadd.f32 %v399_v63, %v398_v62 }
  0xbd   : > { %5614 = vpush %v400_v4 }
  0xe6   : > { %s5613_s9 = spop %5612 }
  0xe7   : > { %v342_v5 = vstv %s5613_s9 }
  0xe8   : > { %v403_v8 = vmul.f32 0.00096899224, %v342_v5 }
  0xea   : > { %v404_v9 = vmul.f32 1032.0, %v403_v8 }
  0xec   : > { %v405_v16 = vmul.f32 %v404_v9, %v403_v8 }
  0xee   : > { %s5615_s12 = spop %5614 }
  0xef   : > { %v402_v17 = vstv %s5615_s12  ;;  %s5608_s12 = sshll.u32 %s8889_s29, 6 }
  0xf0   : > { %v406_v20 = vsub.f32 %v402_v17, %v405_v16  ;;  %s8602_s29 = scalar_lea.vmem %s8661_s7, %s5608_s12 }
  0xf2   : > { %v407_v22 = vmax.f32 %v406_v20, 0.0 }
  0xf4   : > { %v408_v25 = vmul.f32 0.0009699321, %v407_v22 }
  0xf6   : > { %v410_v26 = vadd.f32 1e-06, %v408_v25 }
  0xf8   : > { %5627 = vrsqrt.f32 %v410_v26  ;;  %vm417_vm3 = vweird.f32 %v410_v26 }
  0xfe   : > { %v5628_v27 = vpop.eup %5627 }
  0xff   : > { %v412_v28 = vmul.f32 %v5628_v27, %v410_v26  ;;  %vm418_vm2 = vweird.f32 %v5628_v27 }
 0x100   : > { %vm419_vm4 = vmor %vm417_vm3, %vm418_vm2  ;;  %vm5277_vm2 = vcmask 523264   ;;  %vm5299_vm3 = vcmask 522240  }
 0x101   : > { %v413_v29 = vmul.f32 %v5628_v27, %v412_v28 }
 0x103   : > { %v414_v31 = vmul.f32 0.5, %v413_v29 }
 0x105   : > { %v415_v32 = vsub.f32 1.5, %v414_v31 }
 0x107   : > { %v416_v33 = vmul.f32 %v5628_v27, %v415_v32 }
 0x109   : > { %v420_v35 = vsel %vm419_vm4, %v5628_v27, %v416_v33 }
 0x10a   : > { %v5887_v37 = vmul.f32 %v421_v34, %v420_v35 }
 0x10c   : > { %v424_v39 = vmul.f32 %v5887_v37, %v403_v8  ;;  %v427_v40 = vmul.f32 %v5887_v37, %v5749_v0  ;;  %v428_v41 = vmul.f32 %v5887_v37, %v5752_v1  ;;  %v439_v44 = vmul.f32 %v5887_v37, %v5829_v48 }
 0x10d   : > { %v440_v45 = vmul.f32 %v5887_v37, %v5837_v54  ;;  %v429_v46 = vmul.f32 %v5887_v37, %v5755_v2  ;;  %v441_v47 = vmul.f32 %v5887_v37, %v5845_v60  ;;  %v430_v0 = vmul.f32 %v5887_v37, %v5758_v3 }
 0x10e   : > { %v5894_v43 = vsub.f32 %v425_v38, %v424_v39  ;;  %v442_v1 = vmul.f32 %v5887_v37, %v5853_v6  ;;  %v431_v49 = vmul.f32 %v5887_v37, %v5767_v7  ;;  %v443_v4 = vmul.f32 %v5887_v37, %v5861_v15 }
 0x110   : > { %v5911_v48 = vadd.f32 %v427_v40, %v5894_v43  ;;  %v5914_v54 = vadd.f32 %v428_v41, %v5894_v43  ;;  %v5917_v2 = vadd.f32 %v439_v44, %v5894_v43  ;;  %v5920_v60 = vadd.f32 %v440_v45, %v5894_v43 }
 0x111   : > { %v5923_v3 = vadd.f32 %v429_v46, %v5894_v43  ;;  %v5926_v6 = vadd.f32 %v441_v47, %v5894_v43  ;;  %v5929_v7 = vadd.f32 %v430_v0, %v5894_v43  ;;  %v5932_v50 = vadd.f32 %v442_v1, %v5894_v43 }
 0x112   : > { %v481_v51 = vrot.slane %v5911_v48, 1  ;;  %v482_v52 = vrot.slane %v5914_v54, 1  ;;  %v504_v53 = vrot.slane %v5917_v2, 1  ;;  %v506_v55 = vrot.slane %v5920_v60, 1 }
 0x113   : > { %v484_v56 = vrot.slane %v5923_v3, 1  ;;  %v508_v57 = vrot.slane %v5926_v6, 1  ;;  %v486_v58 = vrot.slane %v5929_v7, 1  ;;  %v510_v59 = vrot.slane %v5932_v50, 1 }
 0x114   : > { %v483_v61 = vsel %vm480_vm5, %v481_v51, %v482_v52  ;;  %v507_v62 = vsel %vm480_vm5, %v504_v53, %v506_v55  ;;  %v5947_v63 = vadd.f32 %v431_v49, %v5894_v43  ;;  %v460_v25 = vadd.f32 %v443_v4, %v5894_v43 }
 0x115   : > { %v514_v5 = vsel %vm298_vm0, %v483_v61, 0  ;;  %v538_v8 = vsel %vm298_vm0, %v507_v62, 0  ;;  %v485_v9 = vsel %vm480_vm5, %v482_v52, %v484_v56  ;;  %v509_v11 = vsel %vm480_vm5, %v506_v55, %v508_v57 }
 0x116   : > { %v5955_v12 = vand.u32 4294901760, %v514_v5  ;;  %v5957_v14 = vand.u32 4294901760, %v538_v8  ;;  %v516_v16 = vsel %vm298_vm0, %v485_v9, 0  ;;  %v540_v17 = vsel %vm298_vm0, %v509_v11, 0 }
 0x117   : > { %v5961_v18 = vand.u32 4294901760, %v516_v16  ;;  %v5963_v20 = vand.u32 4294901760, %v540_v17  ;;  %v487_v15 = vsel %vm480_vm5, %v484_v56, %v486_v58  ;;  %v511_v21 = vsel %vm480_vm5, %v508_v57, %v510_v59 }
 0x118   : > { %714 = vmatmul.f32.vlgmr.msra.gmra.mxu1 %v5955_v12  ;;  %762 = vmatmul.f32.vlgmr.msra.gmra.mxu3 %v5957_v14  ;;  %v5970_v22 = vsub.f32 %v514_v5, %v5955_v12  ;;  %v5973_v24 = vsub.f32 %v538_v8, %v5957_v14  ;;  %v518_v26 = vsel %vm298_vm0, %v487_v15, 0  ;;  %v542_v27 = vsel %vm298_vm0, %v511_v21, 0 }
 0x119   : > { %v5981_v31 = vsub.f32 %v516_v16, %v5961_v18  ;;  %v5984_v32 = vsub.f32 %v540_v17, %v5963_v20  ;;  %v488_v33 = vrot.slane %v5947_v63, 1  ;;  %v512_v38 = vrot.slane %v460_v25, 1 }
 0x11a   : > { %v565_v28 = vand.u32 4294901760, %v5970_v22  ;;  %v661_v29 = vand.u32 4294901760, %v5973_v24  ;;  %v5993_v39 = vand.u32 4294901760, %v518_v26  ;;  %v5995_v40 = vand.u32 4294901760, %v542_v27 }
 0x11b   : > { %v432_v41 = vmul.f32 %v5887_v37, %v5772_v10  ;;  %v573_v46 = vand.u32 4294901760, %v5981_v31  ;;  %v669_v47 = vand.u32 4294901760, %v5984_v32  ;;  %v489_v0 = vsel %vm480_vm5, %v486_v58, %v488_v33 }
 0x11c   : > { %v566_v34 = vsub.f32 %v5970_v22, %v565_v28  ;;  %v662_v35 = vsub.f32 %v5973_v24, %v661_v29  ;;  %v513_v1 = vsel %vm480_vm5, %v510_v59, %v512_v38  ;;  %v6009_v10 = vsub.f32 %v518_v26, %v5993_v39 }
 0x11d   : > { %v6004_v49 = vadd.f32 %v432_v41, %v5894_v43  ;;  %v574_v51 = vsub.f32 %v5981_v31, %v573_v46  ;;  %v670_v52 = vsub.f32 %v5984_v32, %v669_v47  ;;  %v6018_v55 = vsub.f32 %v542_v27, %v5995_v40 }
 0x11e   : > { %v567_v44 = vand.u32 4294901760, %v566_v34  ;;  %v663_v45 = vand.u32 4294901760, %v662_v35  ;;  %v520_v56 = vsel %vm298_vm0, %v489_v0, 0  ;;  %v544_v57 = vsel %vm298_vm0, %v513_v1, 0 }
 0x11f   : > { %v490_v58 = vrot.slane %v6004_v49, 1  ;;  %v433_v59 = vmul.f32 %v5887_v37, %v5777_v13  ;;  %v581_v61 = vand.u32 4294901760, %v6009_v10  ;;  %v6026_v62 = vand.u32 4294901760, %v520_v56 }
 0x120   : > { %568 = vmatmul.f32.vlgmr.msra.gmra.mxu0 %v567_v44  ;;  %664 = vmatmul.f32.vlgmr.msra.gmra.mxu2 %v663_v45  ;;  %v436_v4 = vmul.f32 %v5887_v37, %v5805_v30  ;;  %v437_v5 = vmul.f32 %v5887_v37, %v5813_v36  ;;  %v575_v8 = vand.u32 4294901760, %v574_v51  ;;  %v671_v9 = vand.u32 4294901760, %v670_v52 }
 0x121   : > { %718 = vmatmul.f32.gmra.mxu1 %v5961_v18  ;;  %766 = vmatmul.f32.gmra.mxu3 %v5963_v20  ;;  %v677_v11 = vand.u32 4294901760, %v6018_v55  ;;  %v6033_v16 = vand.u32 4294901760, %v544_v57  ;;  %v491_v15 = vsel %vm480_vm5, %v488_v33, %v490_v58  ;;  %v6043_v30 = vadd.f32 %v433_v59, %v5894_v43 }
 0x122   : > { %v6036_v17 = vadd.f32 %v436_v4, %v5894_v43  ;;  %v6039_v13 = vadd.f32 %v437_v5, %v5894_v43  ;;  %v582_v36 = vsub.f32 %v6009_v10, %v581_v61  ;;  %v6051_v21 = vsub.f32 %v520_v56, %v6026_v62 }
 0x123   : > { %v678_v27 = vsub.f32 %v6018_v55, %v677_v11  ;;  %v6059_v33 = vsub.f32 %v544_v57, %v6033_v16  ;;  %v522_v34 = vsel %vm298_vm0, %v491_v15, 0  ;;  %v492_v38 = vrot.slane %v6043_v30, 1 }
 0x124   : > { %v498_v25 = vrot.slane %v6036_v17, 1  ;;  %v500_v26 = vrot.slane %v6039_v13, 1  ;;  %v438_v41 = vmul.f32 %v5887_v37, %v5821_v42  ;;  %v583_v44 = vand.u32 4294901760, %v582_v36 }
 0x125   : > { %v589_v45 = vand.u32 4294901760, %v6051_v21  ;;  %v434_v0 = vmul.f32 %v5887_v37, %v5788_v19  ;;  %v679_v1 = vand.u32 4294901760, %v678_v27  ;;  %v685_v51 = vand.u32 4294901760, %v6059_v33 }
 0x126   : > { %v6063_v35 = vsel %vm480_vm5, %v498_v25, %v500_v26  ;;  %v6072_v52 = vand.u32 4294901760, %v522_v34  ;;  %v6075_v56 = vadd.f32 %v438_v41, %v5894_v43  ;;  %v493_v57 = vsel %vm480_vm5, %v490_v58, %v492_v38 }
 0x127   : > { %v6079_v42 = vadd.f32 %v434_v0, %v5894_v43  ;;  %v590_v19 = vsub.f32 %v6051_v21, %v589_v45  ;;  %v686_v4 = vsub.f32 %v6059_v33, %v685_v51  ;;  %v435_v36 = vmul.f32 %v5887_v37, %v5795_v23 }
 0x128   : > { %576 = vmatmul.f32.gmra.mxu0 %v575_v8  ;;  %672 = vmatmul.f32.gmra.mxu2 %v671_v9  ;;  %v502_v59 = vrot.slane %v6075_v56, 1  ;;  %v6089_v5 = vsub.f32 %v522_v34, %v6072_v52  ;;  %v524_v9 = vsel %vm298_vm0, %v493_v57, 0 }
 0x129   : > { %722 = vmatmul.f32.gmra.mxu1 %v5993_v39  ;;  %770 = vmatmul.f32.gmra.mxu3 %v5995_v40  ;;  %v494_v15 = vrot.slane %v6079_v42, 1  ;;  %v591_v27 = vand.u32 4294901760, %v590_v19  ;;  %v687_v41 = vand.u32 4294901760, %v686_v4  ;;  %v6102_v34 = vand.u32 4294901760, %v524_v9 }
 0x12a   : > { %v503_v58 = vsel %vm480_vm5, %v500_v26, %v502_v59  ;;  %v6095_v8 = vsel %vm480_vm5, %v502_v59, %v504_v53  ;;  %v6106_v53 = vadd.f32 %v435_v36, %v5894_v43 }
 0x12b   : > { %v495_v26 = vsel %vm480_vm5, %v492_v38, %v494_v15  ;;  %v604_v37 = vsub.f32 %v524_v9, %v6102_v34 }
 0x12c   : > { %v526_v0 = vsel %vm298_vm0, %v495_v26, 0 }
 0x12d   : > { %v605_v59 = vand.u32 4294901760, %v604_v37  ;;  %v6115_v19 = vand.u32 4294901760, %v526_v0 }
 0x12f   : > { %v612_v38 = vsub.f32 %v526_v0, %v6115_v19 }
 0x130   : > { %584 = vmatmul.f32.gmra.mxu0 %v583_v44  ;;  %680 = vmatmul.f32.gmra.mxu2 %v679_v1  ;;  %v597_v44 = vand.u32 4294901760, %v6089_v5  ;;  %v496_v1 = vrot.slane %v6106_v53, 1 }
 0x131   : > { %726 = vmatmul.f32.gmra.mxu1 %v6026_v62  ;;  %774 = vmatmul.f32.gmra.mxu3 %v6033_v16  ;;  %v613_v36 = vand.u32 4294901760, %v612_v38 }
 0x132   : > { %v598_v23 = vsub.f32 %v6089_v5, %v597_v44  ;;  %v497_v43 = vsel %vm480_vm5, %v494_v15, %v496_v1 }
 0x133   : > { %v528_v4 = vsel %vm298_vm0, %v497_v43, 0 }
 0x134   : > { %v599_v57 = vand.u32 4294901760, %v598_v23 }
 0x138   : > { %592 = vmatmul.f32.gmra.mxu0 %v591_v27  ;;  %688 = vmatmul.f32.gmra.mxu2 %v687_v41  ;;  %v6124_v27 = vand.u32 4294901760, %v528_v4 }
 0x139   : > { %730 = vmatmul.f32.gmra.mxu1 %v6072_v52  ;;  %897 = vmatmul.f32.vlgmr.msrb.gmra.mxu3 %v565_v28  ;;  %v606_v28 = vsub.f32 %v604_v37, %v605_v59 }
 0x13a   : > { %v620_v15 = vsub.f32 %v528_v4, %v6124_v27 }
 0x13b   : > { %v607_v9 = vand.u32 4294901760, %v606_v28 }
 0x13c   : > { %v621_v23 = vand.u32 4294901760, %v620_v15 }
 0x140   : > { %600 = vmatmul.f32.gmra.mxu0 %v599_v57  ;;  %798 = vmatmul.f32.vlgmr.msrb.gmra.mxu2 %v5970_v22  ;;  %v499_v22 = vsel %vm480_vm5, %v496_v1, %v498_v25 }
 0x141   : > { %734 = vmatmul.f32.gmra.mxu1 %v6102_v34  ;;  %903 = vmatmul.f32.gmra.mxu3 %v573_v46  ;;  %v614_v46 = vsub.f32 %v612_v38, %v613_v36  ;;  %v530_v41 = vsel %vm298_vm0, %v499_v22, 0 }
 0x142   : > { %v6133_v0 = vand.u32 4294901760, %v530_v41 }
 0x143   : > { %v615_v26 = vand.u32 4294901760, %v614_v46 }
 0x144   : > { %v628_v25 = vsub.f32 %v530_v41, %v6133_v0 }
 0x146   : > { %v629_v57 = vand.u32 4294901760, %v628_v25 }
 0x148   : > { %608 = vmatmul.f32.gmra.mxu0 %v607_v9  ;;  %803 = vmatmul.f32.gmra.mxu2 %v5981_v31  ;;  %v622_v31 = vsub.f32 %v620_v15, %v621_v23 }
 0x149   : > { %738 = vmatmul.f32.gmra.mxu1 %v6115_v19  ;;  %909 = vmatmul.f32.gmra.mxu3 %v581_v61  ;;  %v532_v61 = vsel %vm298_vm0, %v6063_v35, 0 }
 0x14a   : > { %v623_v1 = vand.u32 4294901760, %v622_v31  ;;  %v6140_v43 = vand.u32 4294901760, %v532_v61 }
 0x14c   : > { %v636_v28 = vsub.f32 %v532_v61, %v6140_v43 }
 0x14e   : > { %v637_v9 = vand.u32 4294901760, %v636_v28 }
 0x150   : > { %616 = vmatmul.f32.gmra.mxu0 %v615_v26  ;;  %808 = vmatmul.f32.gmra.mxu2 %v6009_v10  ;;  %v630_v10 = vsub.f32 %v628_v25, %v629_v57  ;;  %v638_v35 = vsub.f32 %v636_v28, %v637_v9 }
 0x151   : > { %742 = vmatmul.f32.gmra.mxu1 %v6124_v27  ;;  %915 = vmatmul.f32.gmra.mxu3 %v589_v45  ;;  %v534_v45 = vsel %vm298_vm0, %v503_v58, 0 }
 0x152   : > { %v631_v4 = vand.u32 4294901760, %v630_v10  ;;  %v6146_v22 = vand.u32 4294901760, %v534_v45  ;;  %v639_v46 = vand.u32 4294901760, %v638_v35 }
 0x158   : > { %624 = vmatmul.f32.gmra.mxu0 %v623_v1  ;;  %813 = vmatmul.f32.gmra.mxu2 %v6051_v21  ;;  %v644_v21 = vsub.f32 %v534_v45, %v6146_v22 }
 0x159   : > { %746 = vmatmul.f32.gmra.mxu1 %v6133_v0  ;;  %921 = vmatmul.f32.gmra.mxu3 %v597_v44  ;;  %v536_v44 = vsel %vm298_vm0, %v6095_v8, 0 }
 0x15a   : > { %v645_v41 = vand.u32 4294901760, %v644_v21  ;;  %v6153_v26 = vand.u32 4294901760, %v536_v44 }
 0x15c   : > { %v646_v58 = vsub.f32 %v644_v21, %v645_v41 }
 0x15e   : > { %v647_v31 = vand.u32 4294901760, %v646_v58  ;;  %v1161_v58 = vsel %vm298_vm0, %v5923_v3, 0 }
 0x160   : > { %632 = vmatmul.f32.gmra.mxu0 %v631_v4  ;;  %818 = vmatmul.f32.gmra.mxu2 %v6089_v5  ;;  %v652_v5 = vsub.f32 %v536_v44, %v6153_v26 }
 0x161   : > { %750 = vmatmul.f32.gmra.mxu1 %v6140_v43  ;;  %927 = vmatmul.f32.gmra.mxu3 %v605_v59 }
 0x162   : > { %v653_v59 = vand.u32 4294901760, %v652_v5 }
 0x164   : > { %v654_v8 = vsub.f32 %v652_v5, %v653_v59 }
 0x166   : > { %v655_v61 = vand.u32 4294901760, %v654_v8 }
 0x168   : > { %640 = vmatmul.f32.gmra.mxu0 %v639_v46  ;;  %823 = vmatmul.f32.gmra.mxu2 %v604_v37  ;;  %v461_v37 = vld [vmem:[%s8657_s3] sm:$0xff] }
 0x169   : > { %754 = vmatmul.f32.gmra.mxu1 %v6146_v22  ;;  %933 = vmatmul.f32.gmra.mxu3 %v613_v36 }
 0x170   : > { %648 = vmatmul.f32.gmra.mxu0 %v647_v31  ;;  %828 = vmatmul.f32.gmra.mxu2 %v612_v38  ;;  %v1204_v38 = vand.u32 4294901760, %v461_v37 }
 0x171   : > { %758 = vmatmul.f32.gmra.mxu1 %v6153_v26  ;;  %939 = vmatmul.f32.gmra.mxu3 %v621_v23 }
 0x172   : > { %1205 = vmatpush.msra.mxu2 %v1204_v38  ;;  %v1351_v36 = vsub.f32 %v461_v37, %v1204_v38  ;;  %1536 = vmatpush.msra.mxu1 %v1204_v38 }
 0x174   : > { %v1352_v23 = vand.u32 4294901760, %v1351_v36  ;;  %1438 = vmatpush.msra.mxu0 %v1351_v36 }
 0x176   : > { %1652 = vmatpush.msrb.mxu2 %v1352_v23 }
 0x178   : > { %656 = vmatmul.f32.gmra.mxu0 %v655_v61  ;;  %833 = vmatmul.f32.gmra.mxu2 %v620_v15  ;;  %v1353_v15 = vsub.f32 %v1351_v36, %v1352_v23  ;;  %v6236_v61 = vand.u32 4294901760, %v1161_v58  ;;  %v1163_v23 = vsel %vm298_vm0, %v5929_v7, 0 }
 0x179   : > { %945 = vmatmul.f32.gmra.mxu3 %v629_v57  ;;  %1093 = vmatmul.f32.vlgmr.msrb.gmra.mxu1 %v5955_v12 }
 0x180   : > { %838 = vmatmul.f32.gmra.mxu2 %v628_v25  ;;  %1011 = vmatmul.f32.vlgmr.msrb.gmra.mxu0 %v5955_v12  ;;  %v1354_v12 = vand.u32 4294901760, %v1353_v15 }
 0x181   : > { %951 = vmatmul.f32.gmra.mxu3 %v637_v9  ;;  %1097 = vmatmul.f32.gmra.mxu1 %v5961_v18 }
 0x182   : > { %1355 = vmatpush.msra.mxu3 %v1354_v12 }
 0x184   : > { %1734 = vmatpush.msrb.mxu3 %v1204_v38  ;;  %v6245_v38 = vsub.f32 %v1161_v58, %v6236_v61 }
 0x188   : > { %843 = vmatmul.f32.gmra.mxu2 %v636_v28  ;;  %1015 = vmatmul.f32.gmra.mxu0 %v5961_v18 }
 0x189   : > { %957 = vmatmul.f32.gmra.mxu3 %v645_v41  ;;  %1101 = vmatmul.f32.gmra.mxu1 %v5993_v39 }
 0x190   : > { %848 = vmatmul.f32.gmra.mxu2 %v644_v21  ;;  %1019 = vmatmul.f32.gmra.mxu0 %v5993_v39 }
 0x191   : > { %963 = vmatmul.f32.gmra.mxu3 %v653_v59  ;;  %1105 = vmatmul.f32.gmra.mxu1 %v6026_v62 }
 0x195   : > { %v715_v25 = vpop.f32.mrf.mxu1 }
 0x198   : > { %853 = vmatmul.f32.gmra.mxu2 %v652_v5  ;;  %1023 = vmatmul.f32.gmra.mxu0 %v6026_v62 }
 0x199   : > { %969 = vmatmul.f32.gmra.mxu3 %v661_v29  ;;  %1109 = vmatmul.f32.gmra.mxu1 %v6072_v52 }
 0x19b   : > { %v763_v18 = vpop.f32.mrf.mxu3 }
 0x19d   : > { %v569_v1 = vpop.f32.mrf.mxu0 }
 0x19e   : > { %v6172_v57 = vpop.f32.mrf.mxu1  ;;  %v716_v3 = vadd.f32 %v715_v25, %v569_v1 }
 0x1a0   : > { %858 = vmatmul.f32.gmra.mxu2 %v5973_v24  ;;  %1027 = vmatmul.f32.gmra.mxu0 %v6072_v52 }
 0x1a1   : > { %975 = vmatmul.f32.gmra.mxu3 %v669_v47  ;;  %1113 = vmatmul.f32.gmra.mxu1 %v6102_v34  ;;  %v1157_v47 = vsel %vm298_vm0, %v5911_v48, 0 }
 0x1a2   : > { %v6196_v35 = vand.u32 4294901760, %v1157_v47 }
 0x1a3   : > { %v665_v39 = vpop.f32.mrf.mxu2 }
 0x1a4   : > { %v6179_v62 = vadd.f32 %v763_v18, %v665_v39  ;;  %v767_v10 = vpop.f32.mrf.mxu3  ;;  %v6204_v48 = vsub.f32 %v1157_v47, %v6196_v35  ;;  %v1224_v39 = vand.u32 4294901760, %v6245_v38 }
 0x1a5   : > { %v577_v29 = vpop.f32.mrf.mxu0 }
 0x1a6   : > { %v6181_v28 = vpop.f32.mrf.mxu1  ;;  %v720_v7 = vadd.f32 %v6172_v57, %v577_v29  ;;  %v1225_v1 = vsub.f32 %v6245_v38, %v1224_v39 }
 0x1a8   : > { %863 = vmatmul.f32.gmra.mxu2 %v5984_v32  ;;  %1031 = vmatmul.f32.gmra.mxu0 %v6102_v34 }
 0x1a9   : > { %981 = vmatmul.f32.gmra.mxu3 %v677_v11  ;;  %1117 = vmatmul.f32.gmra.mxu1 %v6115_v19  ;;  %v1159_v11 = vsel %vm298_vm0, %v5914_v54, 0 }
 0x1aa   : > { %v6215_v46 = vand.u32 4294901760, %v1159_v11 }
 0x1ab   : > { %v673_v24 = vpop.f32.mrf.mxu2 }
 0x1ac   : > { %v6190_v52 = vadd.f32 %v767_v10, %v673_v24  ;;  %v771_v45 = vpop.f32.mrf.mxu3  ;;  %v6252_v10 = vand.u32 4294901760, %v1163_v23 }
 0x1ad   : > { %v6192_v4 = vpop.f32.mrf.mxu0 }
 0x1ae   : > { %v6194_v9 = vpop.f32.mrf.mxu1  ;;  %v6264_v24 = vsub.f32 %v1163_v23, %v6252_v10 }
 0x1b0   : > { %868 = vmatmul.f32.gmra.mxu2 %v6018_v55  ;;  %1035 = vmatmul.f32.gmra.mxu0 %v6115_v19  ;;  %v1208_v19 = vand.u32 4294901760, %v6204_v48 }
 0x1b1   : > { %987 = vmatmul.f32.gmra.mxu3 %v685_v51  ;;  %1121 = vmatmul.f32.gmra.mxu1 %v6124_v27  ;;  %v6225_v51 = vsub.f32 %v1159_v11, %v6215_v46 }
 0x1b2   : > { %v1209_v54 = vsub.f32 %v6204_v48, %v1208_v19 }
 0x1b3   : > { %v681_v32 = vpop.f32.mrf.mxu2  ;;  %v1216_v8 = vand.u32 4294901760, %v6225_v51 }
 0x1b4   : > { %v6208_v34 = vadd.f32 %v771_v45, %v681_v32  ;;  %v775_v21 = vpop.f32.mrf.mxu3  ;;  %v1210_v59 = vand.u32 4294901760, %v1209_v54  ;;  %v1165_v45 = vsel %vm298_vm0, %v5947_v63, 0  ;;  %v8666_v54 = vand.u32 4294901760, %v6264_v24 }
 0x1b5   : > { %v6210_v44 = vpop.f32.mrf.mxu0  ;;  %v1217_v37 = vsub.f32 %v6225_v51, %v1216_v8  ;;  %v724_v63 = vadd.f32 %v6181_v28, %v6192_v4 }
 0x1b6   : > { %v6212_v55 = vpop.f32.mrf.mxu1  ;;  %v1233_v29 = vsub.f32 %v6264_v24, %v8666_v54 }
 0x1b7   : > { %v1218_v18 = vand.u32 4294901760, %v1217_v37 }
 0x1b8   : > { %873 = vmatmul.f32.gmra.mxu2 %v6059_v33  ;;  %1039 = vmatmul.f32.gmra.mxu0 %v6124_v27 }
 0x1b9   : > { %1125 = vmatmul.f32.gmra.mxu1 %v6133_v0  ;;  %1357 = vmatmul.f32.vlgmr.msra.gmra.mxu3 %v6196_v35 }
 0x1bb   : > { %v689_v41 = vpop.f32.mrf.mxu2 }
 0x1bc   : > { %v6229_v5 = vadd.f32 %v775_v21, %v689_v41  ;;  %v898_v33 = vpop.f32.mrf.mxu3  ;;  %v1226_v21 = vand.u32 4294901760, %v1225_v1  ;;  %v6271_v41 = vand.u32 4294901760, %v1165_v45 }
 0x1bd   : > { %v6231_v31 = vpop.f32.mrf.mxu0 }
 0x1be   : > { %v6233_v27 = vpop.f32.mrf.mxu1  ;;  %v6284_v58 = vsub.f32 %v1165_v45, %v6271_v41 }
 0x1c0   : > { %1043 = vmatmul.f32.gmra.mxu0 %v6133_v0  ;;  %1211 = vmatmul.f32.vlgmr.msra.gmra.mxu2 %v1210_v59  ;;  %v8664_v28 = vand.u32 4294901760, %v6284_v58 }
 0x1c1   : > { %1129 = vmatmul.f32.gmra.mxu1 %v6140_v43  ;;  %1361 = vmatmul.f32.gmra.mxu3 %v6215_v46 }
 0x1c3   : > { %v799_v36 = vpop.f32.mrf.mxu2 }
 0x1c4   : > { %v800_v15 = vadd.f32 %v799_v36, %v716_v3  ;;  %v904_v12 = vpop.f32.mrf.mxu3  ;;  %v1167_v3 = vsel %vm298_vm0, %v6004_v49, 0  ;;  %v1241_v49 = vsub.f32 %v6284_v58, %v8664_v28 }
 0x1c5   : > { %v6249_v0 = vpop.f32.mrf.mxu0  ;;  %v6293_v4 = vand.u32 4294901760, %v1167_v3 }
 0x1c6   : > { %v6254_v25 = vpop.f32.mrf.mxu1  ;;  %v6286_v59 = vadd.f32 %v898_v33, %v800_v15  ;;  %v728_v33 = vadd.f32 %v6194_v9, %v6210_v44  ;;  %v1242_v9 = vand.u32 4294901760, %v1241_v49 }
 0x1c7   : > { %v6304_v15 = vsub.f32 %v1167_v3, %v6293_v4  ;;  %v1171_v3 = vsel %vm298_vm0, %v6079_v42, 0  ;;  %v736_v42 = vadd.f32 %v6233_v27, %v6249_v0 }
 0x1c8   : > { %1047 = vmatmul.f32.gmra.mxu0 %v6140_v43  ;;  %1219 = vmatmul.f32.gmra.mxu2 %v1218_v18  ;;  %v1234_v18 = vand.u32 4294901760, %v1233_v29 }
 0x1c9   : > { %1133 = vmatmul.f32.gmra.mxu1 %v6146_v22  ;;  %1365 = vmatmul.f32.gmra.mxu3 %v6236_v61  ;;  %v8662_v44 = vand.u32 4294901760, %v6304_v15 }
 0x1cb   : > { %v804_v47 = vpop.f32.mrf.mxu2 }
 0x1cc   : > { %v805_v32 = vadd.f32 %v804_v47, %v720_v7  ;;  %v910_v43 = vpop.f32.mrf.mxu3 }
 0x1cd   : > { %v6268_v11 = vpop.f32.mrf.mxu0 }
 0x1ce   : > { %v6274_v57 = vpop.f32.mrf.mxu1  ;;  %v6310_v47 = vadd.f32 %v904_v12, %v805_v32  ;;  %v1249_v12 = vsub.f32 %v6304_v15, %v8662_v44 }
 0x1d0   : > { %1051 = vmatmul.f32.gmra.mxu0 %v6146_v22  ;;  %1227 = vmatmul.f32.gmra.mxu2 %v1226_v21 }
 0x1d1   : > { %1137 = vmatmul.f32.gmra.mxu1 %v6153_v26  ;;  %1369 = vmatmul.f32.gmra.mxu3 %v6252_v10 }
 0x1d3   : > { %v809_v22 = vpop.f32.mrf.mxu2 }
 0x1d4   : > { %v810_v37 = vadd.f32 %v809_v22, %v724_v63  ;;  %v916_v36 = vpop.f32.mrf.mxu3 }
 0x1d5   : > { %v6290_v23 = vpop.f32.mrf.mxu0 }
 0x1d6   : > { %v6306_v7 = vpop.f32.mrf.mxu1 }
 0x1d8   : > { %1055 = vmatmul.f32.gmra.mxu0 %v6153_v26  ;;  %1235 = vmatmul.f32.gmra.mxu2 %v1234_v18  ;;  %v1169_v26 = vsel %vm298_vm0, %v6043_v30, 0  ;;  %v732_v30 = vadd.f32 %v6212_v55, %v6231_v31  ;;  %v1250_v55 = vand.u32 4294901760, %v1249_v12 }
 0x1d9   : > { %1141 = vmatmul.f32.gmra.mxu1 %v5957_v14  ;;  %1373 = vmatmul.f32.gmra.mxu3 %v6271_v41  ;;  %v6315_v29 = vand.u32 4294901760, %v1169_v26 }
 0x1db   : > { %v814_v1 = vpop.f32.mrf.mxu2  ;;  %v6326_v32 = vsub.f32 %v1169_v26, %v6315_v29 }
 0x1dc   : > { %v815_v45 = vadd.f32 %v814_v1, %v728_v33  ;;  %v922_v21 = vpop.f32.mrf.mxu3  ;;  %v6330_v33 = vadd.f32 %v910_v43, %v810_v37 }
 0x1dd   : > { %v6312_v63 = vpop.f32.mrf.mxu0  ;;  %v8663_v31 = vand.u32 4294901760, %v6326_v32 }
 0x1de   : > { %v6332_v49 = vpop.f32.mrf.mxu1  ;;  %v6359_v0 = vadd.f32 %v916_v36, %v815_v45  ;;  %v1175_v45 = vsel %vm298_vm0, %v6036_v17, 0  ;;  %v744_v17 = vadd.f32 %v6274_v57, %v6290_v23 }
 0x1df   : > { %v1257_v43 = vsub.f32 %v6326_v32, %v8663_v31 }
 0x1e0   : > { %1059 = vmatmul.f32.gmra.mxu0 %v5957_v14  ;;  %1243 = vmatmul.f32.gmra.mxu2 %v1242_v9  ;;  %v6337_v9 = vand.u32 4294901760, %v1171_v3 }
 0x1e1   : > { %1145 = vmatmul.f32.gmra.mxu1 %v5963_v20  ;;  %1377 = vmatmul.f32.gmra.mxu3 %v6293_v4 }
 0x1e2   : > { %v6348_v37 = vsub.f32 %v1171_v3, %v6337_v9 }
 0x1e3   : > { %v819_v22 = vpop.f32.mrf.mxu2 }
 0x1e4   : > { %v820_v14 = vadd.f32 %v819_v22, %v732_v30  ;;  %v928_v18 = vpop.f32.mrf.mxu3  ;;  %v1173_v30 = vsel %vm298_vm0, %v6106_v53, 0  ;;  %v8665_v44 = vand.u32 4294901760, %v6348_v37  ;;  %v740_v53 = vadd.f32 %v6254_v25, %v6268_v11 }
 0x1e5   : > { %v6334_v1 = vpop.f32.mrf.mxu0  ;;  %v6357_v27 = vand.u32 4294901760, %v1173_v30  ;;  %v6381_v25 = vand.u32 4294901760, %v1175_v45 }
 0x1e6   : > { %v6361_v31 = vpop.f32.mrf.mxu1  ;;  %v1265_v3 = vsub.f32 %v6348_v37, %v8665_v44  ;;  %v6383_v11 = vadd.f32 %v922_v21, %v820_v14 }
 0x1e7   : > { %v6397_v21 = vsub.f32 %v1175_v45, %v6381_v25 }
 0x1e8   : > { %1063 = vmatmul.f32.gmra.mxu0 %v5963_v20  ;;  %1251 = vmatmul.f32.gmra.mxu2 %v1250_v55  ;;  %v1258_v55 = vand.u32 4294901760, %v1257_v43 }
 0x1e9   : > { %1149 = vmatmul.f32.gmra.mxu1 %v5995_v40  ;;  %1381 = vmatmul.f32.gmra.mxu3 %v6315_v29 }
 0x1eb   : > { %v824_v26 = vpop.f32.mrf.mxu2 }
 0x1ec   : > { %v825_v20 = vadd.f32 %v824_v26, %v736_v42  ;;  %v6352_v12 = vpop.f32.mrf.mxu3  ;;  %v6372_v42 = vsub.f32 %v1173_v30, %v6357_v27 }
 0x1ed   : > { %v6354_v22 = vpop.f32.mrf.mxu0 }
 0x1ee   : > { %v1272_v28 = vand.u32 4294901760, %v6372_v42  ;;  %v6386_v30 = vpop.f32.mrf.mxu1  ;;  %v6407_v57 = vadd.f32 %v928_v18, %v825_v20 }
 0x1f0   : > { %1067 = vmatmul.f32.gmra.mxu0 %v5995_v40  ;;  %1259 = vmatmul.f32.gmra.mxu2 %v1258_v55  ;;  %v1266_v55 = vand.u32 4294901760, %v1265_v3 }
 0x1f1   : > { %1153 = vmatmul.f32.gmra.mxu1 %v6033_v16  ;;  %1385 = vmatmul.f32.gmra.mxu3 %v6337_v9 }
 0x1f3   : > { %v829_v36 = vpop.f32.mrf.mxu2 }
 0x1f4   : > { %v830_v40 = vadd.f32 %v829_v36, %v740_v53  ;;  %v6376_v43 = vpop.f32.mrf.mxu3  ;;  %v1273_v53 = vsub.f32 %v6372_v42, %v1272_v28 }
 0x1f5   : > { %v6378_v26 = vpop.f32.mrf.mxu0 }
 0x1f6   : > { %v1274_v44 = vand.u32 4294901760, %v1273_v53 }
 0x1f8   : > { %1071 = vmatmul.f32.gmra.mxu0 %v6033_v16  ;;  %1267 = vmatmul.f32.gmra.mxu2 %v1266_v55  ;;  %v1177_v16 = vsel %vm298_vm0, %v6039_v13, 0  ;;  %v748_v13 = vadd.f32 %v6306_v7, %v6312_v63 }
 0x1f9   : > { %1389 = vmatmul.f32.gmra.mxu3 %v6357_v27  ;;  %1540 = vmatmul.f32.vlgmr.msra.gmra.mxu1 %v1208_v19  ;;  %v8667_v19 = vand.u32 4294901760, %v6397_v21  ;;  %v6404_v54 = vand.u32 4294901760, %v1177_v16 }
 0x1fb   : > { %v834_v14 = vpop.f32.mrf.mxu2  ;;  %v1281_v23 = vsub.f32 %v6397_v21, %v8667_v19  ;;  %v6418_v45 = vsub.f32 %v1177_v16, %v6404_v54 }
 0x1fc   : > { %v835_v3 = vadd.f32 %v834_v14, %v744_v17  ;;  %v6401_v36 = vpop.f32.mrf.mxu3 }
 0x1fd   : > { %v1012_v55 = vpop.f32.mrf.mxu0  ;;  %v8668_v14 = vand.u32 4294901760, %v6418_v45 }
 0x1ff   : > { %v1289_v63 = vsub.f32 %v6418_v45, %v8668_v14 }
 0x200   : > { %1275 = vmatmul.f32.gmra.mxu2 %v1274_v44  ;;  %1441 = vmatmul.f32.vlgmr.msra.gmra.mxu0 %v6204_v48  ;;  %v1094_v44 = vpop.f32.mrf.mxu1  ;;  %v1179_v48 = vsel %vm298_vm0, %v6075_v56, 0  ;;  %v752_v56 = vadd.f32 %v6332_v49, %v6334_v1 }
 0x201   : > { %1393 = vmatmul.f32.gmra.mxu3 %v6381_v25  ;;  %1546 = vmatmul.f32.gmra.mxu1 %v1216_v8  ;;  %v1282_v8 = vand.u32 4294901760, %v1281_v23  ;;  %v6425_v7 = vand.u32 4294901760, %v1179_v48  ;;  %v1181_v23 = vsel %vm298_vm0, %v5917_v2, 0  ;;  %v1290_v19 = vand.u32 4294901760, %v1289_v63 }
 0x202   : > { %v6447_v1 = vand.u32 4294901760, %v1181_v23  ;;  %v8719_v2 = vand.u32 4294901760, %v6264_v24 }
 0x203   : > { %v839_v17 = vpop.f32.mrf.mxu2  ;;  %v6437_v16 = vsub.f32 %v1179_v48, %v6425_v7 }
 0x204   : > { %v840_v18 = vadd.f32 %v839_v17, %v748_v13  ;;  %v6422_v20 = vpop.f32.mrf.mxu3 }
 0x205   : > { %v1016_v53 = vpop.f32.mrf.mxu0  ;;  %v8669_v49 = vand.u32 4294901760, %v6437_v16 }
 0x207   : > { %v1297_v48 = vsub.f32 %v6437_v16, %v8669_v49 }
 0x208   : > { %1283 = vmatmul.f32.gmra.mxu2 %v1282_v8  ;;  %1446 = vmatmul.f32.gmra.mxu0 %v6225_v51  ;;  %v6442_v51 = vadd.f32 %v6352_v12, %v830_v40  ;;  %v756_v12 = vadd.f32 %v6361_v31, %v6354_v22  ;;  %v1013_v40 = vadd.f32 %v1012_v55, %v6286_v59 }
 0x209   : > { %1397 = vmatmul.f32.gmra.mxu3 %v6404_v54  ;;  %1552 = vmatmul.f32.gmra.mxu1 %v1224_v39  ;;  %v1098_v39 = vpop.f32.mrf.mxu1  ;;  %v1298_v31 = vand.u32 4294901760, %v1297_v48 }
 0x20a   : > { %v6472_v55 = vadd.f32 %v1094_v44, %v1013_v40 }
 0x20b   : > { %v844_v13 = vpop.f32.mrf.mxu2 }
 0x20c   : > { %v845_v17 = vadd.f32 %v844_v13, %v752_v56  ;;  %v6444_v8 = vpop.f32.mrf.mxu3  ;;  %v6460_v56 = vsub.f32 %v1181_v23, %v6447_v1 }
 0x20d   : > { %v1020_v14 = vpop.f32.mrf.mxu0 }
 0x20e   : > { %v1304_v59 = vand.u32 4294901760, %v6460_v56 }
 0x210   : > { %1291 = vmatmul.f32.gmra.mxu2 %v1290_v19  ;;  %1451 = vmatmul.f32.gmra.mxu0 %v6245_v38  ;;  %v1183_v38 = vsel %vm298_vm0, %v5920_v60, 0  ;;  %v8720_v60 = vand.u32 4294901760, %v6284_v58  ;;  %v1305_v44 = vsub.f32 %v6460_v56, %v1304_v59 }
 0x211   : > { %1401 = vmatmul.f32.gmra.mxu3 %v6425_v7  ;;  %1558 = vmatmul.f32.gmra.mxu1 %v8719_v2  ;;  %v6467_v2 = vadd.f32 %v6376_v43, %v835_v3  ;;  %v6470_v22 = vand.u32 4294901760, %v1183_v38  ;;  %v1102_v49 = vpop.f32.mrf.mxu1  ;;  %v760_v43 = vadd.f32 %v6386_v30, %v6378_v26  ;;  %v1017_v3 = vadd.f32 %v1016_v53, %v6310_v47 }
 0x212   : > { %v1306_v26 = vand.u32 4294901760, %v1305_v44 }
 0x213   : > { %v849_v19 = vpop.f32.mrf.mxu2  ;;  %v6495_v53 = vadd.f32 %v1098_v39, %v1017_v3 }
 0x214   : > { %v850_v63 = vadd.f32 %v849_v19, %v756_v12  ;;  %v6464_v13 = vpop.f32.mrf.mxu3  ;;  %v6485_v12 = vsub.f32 %v1183_v38, %v6470_v22 }
 0x215   : > { %v1024_v23 = vpop.f32.mrf.mxu0 }
 0x216   : > { %v1312_v47 = vand.u32 4294901760, %v6485_v12 }
 0x218   : > { %1299 = vmatmul.f32.gmra.mxu2 %v1298_v31  ;;  %1456 = vmatmul.f32.gmra.mxu0 %v6264_v24  ;;  %v1185_v24 = vsel %vm298_vm0, %v5926_v6, 0  ;;  %v6490_v31 = vadd.f32 %v6401_v36, %v840_v18  ;;  %v8721_v6 = vand.u32 4294901760, %v6304_v15  ;;  %v1313_v36 = vsub.f32 %v6485_v12, %v1312_v47 }
 0x219   : > { %1405 = vmatmul.f32.gmra.mxu3 %v6447_v1  ;;  %1564 = vmatmul.f32.gmra.mxu1 %v8720_v60  ;;  %v6493_v30 = vand.u32 4294901760, %v1185_v24  ;;  %v1106_v38 = vpop.f32.mrf.mxu1  ;;  %v1021_v60 = vadd.f32 %v1020_v14, %v6330_v33 }
 0x21b   : > { %v854_v40 = vpop.f32.mrf.mxu2  ;;  %v6506_v18 = vsub.f32 %v1185_v24, %v6493_v30 }
 0x21c   : > { %v855_v48 = vadd.f32 %v854_v40, %v760_v43  ;;  %v970_v19 = vpop.f32.mrf.mxu3  ;;  %v1187_v43 = vsel %vm298_vm0, %v5932_v50, 0  ;;  %v6512_v40 = vadd.f32 %v6422_v20, %v845_v17  ;;  %v8722_v50 = vand.u32 4294901760, %v6326_v32 }
 0x21d   : > { %v1320_v33 = vand.u32 4294901760, %v6506_v18  ;;  %v6515_v14 = vand.u32 4294901760, %v1187_v43 }
 0x21f   : > { %v1321_v20 = vsub.f32 %v6506_v18, %v1320_v33  ;;  %v6528_v17 = vsub.f32 %v1187_v43, %v6515_v14 }
 0x220   : > { %1307 = vmatmul.f32.gmra.mxu2 %v1306_v26  ;;  %1461 = vmatmul.f32.gmra.mxu0 %v6284_v58  ;;  %v1028_v58 = vpop.f32.mrf.mxu0  ;;  %v1314_v26 = vand.u32 4294901760, %v1313_v36 }
 0x221   : > { %1409 = vmatmul.f32.gmra.mxu3 %v6470_v22  ;;  %1570 = vmatmul.f32.gmra.mxu1 %v8721_v6  ;;  %v6517_v6 = vadd.f32 %v1102_v49, %v1021_v60  ;;  %v1110_v24 = vpop.f32.mrf.mxu1 }
 0x223   : > { %v859_v39 = vpop.f32.mrf.mxu2 }
 0x224   : > { %v860_v3 = vadd.f32 %v859_v39, %v6179_v62  ;;  %v976_v44 = vpop.f32.mrf.mxu3  ;;  %v1025_v62 = vadd.f32 %v1024_v23, %v6359_v0  ;;  %v8723_v23 = vand.u32 4294901760, %v6348_v37 }
 0x226   : > { %v6535_v0 = vadd.f32 %v1106_v38, %v1025_v62  ;;  %v6547_v38 = vadd.f32 %v6464_v13, %v855_v48  ;;  %v6555_v13 = vadd.f32 %v970_v19, %v860_v3 }
 0x228   : > { %1315 = vmatmul.f32.gmra.mxu2 %v1314_v26  ;;  %1466 = vmatmul.f32.gmra.mxu0 %v6304_v15  ;;  %v6532_v15 = vadd.f32 %v6444_v8, %v850_v63  ;;  %v1032_v39 = vpop.f32.mrf.mxu0  ;;  %v1322_v26 = vand.u32 4294901760, %v1321_v20 }
 0x229   : > { %1413 = vmatmul.f32.gmra.mxu3 %v6493_v30  ;;  %1576 = vmatmul.f32.gmra.mxu1 %v8722_v50  ;;  %v1328_v50 = vand.u32 4294901760, %v6528_v17  ;;  %v1114_v62 = vpop.f32.mrf.mxu1 }
 0x22b   : > { %v864_v49 = vpop.f32.mrf.mxu2  ;;  %v1329_v8 = vsub.f32 %v6528_v17, %v1328_v50 }
 0x22c   : > { %v865_v60 = vadd.f32 %v864_v49, %v6190_v52  ;;  %v982_v36 = vpop.f32.mrf.mxu3  ;;  %v1029_v52 = vadd.f32 %v1028_v58, %v6383_v11  ;;  %v1033_v11 = vadd.f32 %v1032_v39, %v6407_v57 }
 0x22e   : > { %v1111_v49 = vadd.f32 %v1110_v24, %v1029_v52  ;;  %v1115_v48 = vadd.f32 %v1114_v62, %v1033_v11  ;;  %v6564_v19 = vadd.f32 %v976_v44, %v865_v60 }
 0x230   : > { %1323 = vmatmul.f32.gmra.mxu2 %v1322_v26  ;;  %1471 = vmatmul.f32.gmra.mxu0 %v6326_v32  ;;  %v1330_v32 = vand.u32 4294901760, %v1329_v8  ;;  %v1036_v26 = vpop.f32.mrf.mxu0 }
 0x231   : > { %1417 = vmatmul.f32.gmra.mxu3 %v6515_v14  ;;  %1582 = vmatmul.f32.gmra.mxu1 %v8723_v23  ;;  %v1118_v8 = vpop.f32.mrf.mxu1 }
 0x233   : > { %v869_v63 = vpop.f32.mrf.mxu2 }
 0x234   : > { %v870_v43 = vadd.f32 %v869_v63, %v6208_v34  ;;  %v988_v20 = vpop.f32.mrf.mxu3 }
 0x236   : > { %v6575_v60 = vadd.f32 %v982_v36, %v870_v43 }
 0x238   : > { %1331 = vmatmul.f32.gmra.mxu2 %v1330_v32  ;;  %1476 = vmatmul.f32.gmra.mxu0 %v6348_v37  ;;  %v8724_v37 = vand.u32 4294901760, %v6397_v21  ;;  %v1040_v57 = vpop.f32.mrf.mxu0  ;;  %8726 = vst [vmem:[#allocation4_spill] sm:$0xff] %v6575_v60 }
 0x239   : > { %1588 = vmatmul.f32.gmra.mxu1 %v1272_v28  ;;  %1736 = vmatmul.f32.vlgmr.msrb.gmra.mxu3 %v6196_v35  ;;  %v1037_v28 = vadd.f32 %v1036_v26, %v6442_v51  ;;  %v1041_v51 = vadd.f32 %v1040_v57, %v6467_v2 }
 0x23b   : > { %v874_v58 = vpop.f32.mrf.mxu2  ;;  %v1119_v3 = vadd.f32 %v1118_v8, %v1037_v28 }
 0x23c   : > { %v875_v34 = vadd.f32 %v874_v58, %v6229_v5  ;;  %v1358_v23 = vpop.f32.mrf.mxu3 }
 0x240   : > { %1481 = vmatmul.f32.gmra.mxu0 %v6372_v42  ;;  %1654 = vmatmul.f32.vlgmr.msrb.gmra.mxu2 %v6196_v35  ;;  %v1122_v35 = vpop.f32.mrf.mxu1  ;;  %v8725_v42 = vand.u32 4294901760, %v6418_v45  ;;  %v6572_v63 = vpop.f32.mrf.mxu0 }
 0x241   : > { %1594 = vmatmul.f32.gmra.mxu1 %v8724_v37  ;;  %1740 = vmatmul.f32.gmra.mxu3 %v6215_v46  ;;  %v1123_v62 = vadd.f32 %v1122_v35, %v1041_v51 }
 0x243   : > { %v1212_v24 = vpop.f32.mrf.mxu2 }
 0x244   : > { %v1213_v5 = vadd.f32 %v1212_v24, %v6472_v55  ;;  %v1362_v39 = vpop.f32.mrf.mxu3 }
 0x246   : > { %v6595_v11 = vadd.f32 %v1358_v23, %v1213_v5 }
 0x248   : > { %1486 = vmatmul.f32.gmra.mxu0 %v6397_v21  ;;  %1658 = vmatmul.f32.gmra.mxu2 %v6215_v46  ;;  %v8727_v46 = vand.u32 4294901760, %v6437_v16  ;;  %v6582_v21 = vpop.f32.mrf.mxu1  ;;  %v6587_v36 = vpop.f32.mrf.mxu0 }
 0x249   : > { %1600 = vmatmul.f32.gmra.mxu1 %v8725_v42  ;;  %1744 = vmatmul.f32.gmra.mxu3 %v6236_v61 }
 0x24b   : > { %v1220_v52 = vpop.f32.mrf.mxu2 }
 0x24c   : > { %v1221_v55 = vadd.f32 %v1220_v52, %v6495_v53  ;;  %v1366_v44 = vpop.f32.mrf.mxu3  ;;  %v6585_v53 = vadd.f32 %v988_v20, %v875_v34 }
 0x24e   : > { %8728 = vst [vmem:[#allocation5_spill] sm:$0xff] %v6585_v53 }
 0x250   : > { %1491 = vmatmul.f32.gmra.mxu0 %v6418_v45  ;;  %1662 = vmatmul.f32.gmra.mxu2 %v6236_v61  ;;  %v6599_v20 = vpop.f32.mrf.mxu0 }
 0x251   : > { %1606 = vmatmul.f32.gmra.mxu1 %v8727_v46  ;;  %1748 = vmatmul.f32.gmra.mxu3 %v6252_v10 }
 0x253   : > { %v1228_v2 = vpop.f32.mrf.mxu2 }
 0x254   : > { %v1229_v32 = vadd.f32 %v1228_v2, %v6517_v6  ;;  %v1370_v26 = vpop.f32.mrf.mxu3  ;;  %v6597_v6 = vpop.f32.mrf.mxu1  ;;  %v1819_v2 = vld [vmem:[%s8658_s4 + $0x18] sm:$0xff] }
 0x258   : > { %1496 = vmatmul.f32.gmra.mxu0 %v6437_v16  ;;  %1666 = vmatmul.f32.gmra.mxu2 %v6252_v10 }
 0x259   : > { %1612 = vmatmul.f32.gmra.mxu1 %v1304_v59  ;;  %1752 = vmatmul.f32.gmra.mxu3 %v6271_v41 }
 0x25b   : > { %v1236_v61 = vpop.f32.mrf.mxu2 }
 0x25c   : > { %v1237_v45 = vadd.f32 %v1236_v61, %v6535_v0  ;;  %v1374_v43 = vpop.f32.mrf.mxu3  ;;  %v6606_v0 = vadd.f32 %v1362_v39, %v1221_v55  ;;  %v6608_v58 = vpop.f32.mrf.mxu1 }
 0x260   : > { %1501 = vmatmul.f32.gmra.mxu0 %v6460_v56  ;;  %1670 = vmatmul.f32.gmra.mxu2 %v6271_v41  ;;  %v6615_v41 = vpop.f32.mrf.mxu0 }
 0x261   : > { %1618 = vmatmul.f32.gmra.mxu1 %v1312_v47  ;;  %1756 = vmatmul.f32.gmra.mxu3 %v6293_v4 }
 0x263   : > { %v1244_v10 = vpop.f32.mrf.mxu2 }
 0x264   : > { %v1245_v16 = vadd.f32 %v1244_v10, %v1111_v49  ;;  %v1378_v59 = vpop.f32.mrf.mxu3  ;;  %v6617_v49 = vadd.f32 %v1366_v44, %v1229_v32  ;;  %v6621_v23 = vpop.f32.mrf.mxu1  ;;  %v1914_v32 = vand.u32 4294901760, %v1819_v2 }
 0x266   : > { %v6637_v28 = vadd.f32 %v1374_v43, %v1245_v16  ;;  %1915 = vmatpush.msrb.mxu0 %v1914_v32  ;;  %2254 = vmatpush.msra.mxu3 %v1914_v32 }
 0x268   : > { %1506 = vmatmul.f32.gmra.mxu0 %v6485_v12  ;;  %1674 = vmatmul.f32.gmra.mxu2 %v6293_v4  ;;  %v6626_v12 = vpop.f32.mrf.mxu0 }
 0x269   : > { %1624 = vmatmul.f32.gmra.mxu1 %v1320_v33  ;;  %1760 = vmatmul.f32.gmra.mxu3 %v6315_v29 }
 0x26b   : > { %v1252_v56 = vpop.f32.mrf.mxu2 }
 0x26c   : > { %v1253_v47 = vadd.f32 %v1252_v56, %v1115_v48  ;;  %v1382_v34 = vpop.f32.mrf.mxu3  ;;  %v6628_v48 = vadd.f32 %v1370_v26, %v1237_v45  ;;  %v2062_v26 = vsub.f32 %v1819_v2, %v1914_v32 }
 0x26e   : > { %2154 = vmatpush.msra.mxu2 %v2062_v26 }
 0x270   : > { %1511 = vmatmul.f32.gmra.mxu0 %v6506_v18  ;;  %1678 = vmatmul.f32.gmra.mxu2 %v6315_v29  ;;  %v6633_v29 = vpop.f32.mrf.mxu1  ;;  %v6639_v57 = vpop.f32.mrf.mxu0 }
 0x271   : > { %1630 = vmatmul.f32.gmra.mxu1 %v1328_v50  ;;  %1764 = vmatmul.f32.gmra.mxu3 %v6337_v9 }
 0x273   : > { %v1260_v4 = vpop.f32.mrf.mxu2 }
 0x274   : > { %v1261_v33 = vadd.f32 %v1260_v4, %v1119_v3  ;;  %v1386_v8 = vpop.f32.mrf.mxu3 }
 0x278   : > { %1516 = vmatmul.f32.gmra.mxu0 %v6528_v17  ;;  %1682 = vmatmul.f32.gmra.mxu2 %v6337_v9  ;;  %v6647_v9 = vadd.f32 %v1378_v59, %v1253_v47  ;;  %v6649_v5 = vpop.f32.mrf.mxu1  ;;  %v6651_v39 = vpop.f32.mrf.mxu0  ;;  %v2063_v59 = vand.u32 4294901760, %v2062_v26 }
 0x279   : > { %1768 = vmatmul.f32.gmra.mxu3 %v6357_v27  ;;  %8729 = vst [vmem:[#allocation6_spill] sm:$0xff] %v6651_v39 }
 0x27a   : > { %v2064_v56 = vsub.f32 %v2062_v26, %v2063_v59 }
 0x27b   : > { %v1268_v18 = vpop.f32.mrf.mxu2 }
 0x27c   : > { %v1269_v37 = vadd.f32 %v1268_v18, %v1123_v62  ;;  %v6635_v50 = vpop.f32.mrf.mxu3  ;;  %v1818_v18 = vld [vmem:[%s8658_s4 + $0x10] sm:$0xff] }
 0x27d   : > { %v1916_v2 = vand.u32 4294901760, %v1818_v18 }
 0x27f   : > { %v2068_v26 = vsub.f32 %v1818_v18, %v1916_v2  ;;  %2256 = vmatpush.msra.mxu3 %v1916_v2  ;;  %1917 = vmatpush.msrb.mxu0 %v1916_v2 }
 0x280   : > { %1686 = vmatmul.f32.gmra.mxu2 %v6357_v27  ;;  %v6659_v27 = vadd.f32 %v1382_v34, %v1261_v33  ;;  %v6661_v42 = vpop.f32.mrf.mxu1  ;;  %v6665_v51 = vpop.f32.mrf.mxu0  ;;  %v2065_v34 = vand.u32 4294901760, %v2064_v56 }
 0x281   : > { %1772 = vmatmul.f32.gmra.mxu3 %v6381_v25  ;;  %8730 = vst [vmem:[#allocation7_spill] sm:$0xff] %v6661_v42  ;;  %2371 = vmatpush.msra.mxu0 %v2063_v59  ;;  %v2069_v56 = vand.u32 4294901760, %v2068_v26 }
 0x282   : > { %8731 = vst [vmem:[#allocation8_spill] sm:$0xff] %v6665_v51  ;;  %2066 = vmatpush.msrb.mxu1 %v2065_v34  ;;  %2157 = vmatpush.msra.mxu2 %v2068_v26 }
 0x283   : > { %v6643_v24 = vpop.f32.mrf.mxu2  ;;  %2375 = vmatpush.msra.mxu0 %v2069_v56 }
 0x284   : > { %v6645_v17 = vpop.f32.mrf.mxu3 }
 0x288   : > { %1690 = vmatmul.f32.gmra.mxu2 %v6381_v25  ;;  %v6671_v25 = vadd.f32 %v1386_v8, %v1269_v37  ;;  %v6674_v44 = vpop.f32.mrf.mxu1  ;;  %v1442_v46 = vpop.f32.mrf.mxu0 }
 0x289   : > { %1776 = vmatmul.f32.gmra.mxu3 %v6404_v54  ;;  %8732 = vst [vmem:[#allocation9_spill] sm:$0xff] %v6674_v44  ;;  %v1443_v34 = vadd.f32 %v1442_v46, %v6595_v11  ;;  %v2070_v44 = vsub.f32 %v2068_v26, %v2069_v56 }
 0x28b   : > { %v6655_v3 = vpop.f32.mrf.mxu2 }
 0x28c   : > { %v6657_v35 = vpop.f32.mrf.mxu3 }
 0x290   : > { %1694 = vmatmul.f32.gmra.mxu2 %v6404_v54  ;;  %v1447_v43 = vpop.f32.mrf.mxu0 }
 0x291   : > { %1780 = vmatmul.f32.gmra.mxu3 %v6425_v7 }
 0x293   : > { %v6667_v52 = vpop.f32.mrf.mxu2 }
 0x294   : > { %v6669_v55 = vpop.f32.mrf.mxu3 }
 0x298   : > { %1698 = vmatmul.f32.gmra.mxu2 %v6425_v7  ;;  %v1541_v7 = vpop.f32.mrf.mxu1  ;;  %v1452_v47 = vpop.f32.mrf.mxu0 }
 0x299   : > { %1784 = vmatmul.f32.gmra.mxu3 %v6447_v1  ;;  %v1542_v53 = vadd.f32 %v1541_v7, %v1443_v34  ;;  %v1453_v46 = vadd.f32 %v1452_v47, %v6617_v49 }
 0x29b   : > { %v6677_v62 = vpop.f32.mrf.mxu2 }
 0x29c   : > { %v6679_v54 = vpop.f32.mrf.mxu3 }
 0x2a0   : > { %1702 = vmatmul.f32.gmra.mxu2 %v6447_v1  ;;  %v1547_v1 = vpop.f32.mrf.mxu1  ;;  %v1457_v8 = vpop.f32.mrf.mxu0 }
 0x2a1   : > { %1788 = vmatmul.f32.gmra.mxu3 %v6470_v22 }
 0x2a3   : > { %v6686_v61 = vpop.f32.mrf.mxu2 }
 0x2a4   : > { %v6688_v45 = vpop.f32.mrf.mxu3 }
 0x2a5   : > { %8733 = vst [vmem:[#allocation10_spill] sm:$0xff] %v6688_v45 }
 0x2a8   : > { %1706 = vmatmul.f32.gmra.mxu2 %v6470_v22  ;;  %v1553_v22 = vpop.f32.mrf.mxu1  ;;  %v1462_v51 = vpop.f32.mrf.mxu0 }
 0x2a9   : > { %1792 = vmatmul.f32.gmra.mxu3 %v6493_v30 }
 0x2ab   : > { %v6692_v10 = vpop.f32.mrf.mxu2 }
 0x2ac   : > { %v6694_v16 = vpop.f32.mrf.mxu3 }
 0x2ad   : > { %8734 = vst [vmem:[#allocation11_spill] sm:$0xff] %v6694_v16  ;;  %v2071_v16 = vand.u32 4294901760, %v2070_v44 }
 0x2af   : > { %2072 = vmatpush.msrb.mxu1 %v2071_v16  ;;  %v1554_v16 = vadd.f32 %v1553_v22, %v1453_v46  ;;  %v1458_v22 = vadd.f32 %v1457_v8, %v6628_v48 }
 0x2b0   : > { %1710 = vmatmul.f32.gmra.mxu2 %v6493_v30  ;;  %v1467_v26 = vpop.f32.mrf.mxu0 }
 0x2b1   : > { %1796 = vmatmul.f32.gmra.mxu3 %v6515_v14  ;;  %2456 = vmatpush.msra.mxu1 %v1914_v32 }
 0x2b3   : > { %v6698_v4 = vpop.f32.mrf.mxu2  ;;  %2458 = vmatpush.msra.mxu1 %v1916_v2 }
 0x2b4   : > { %8735 = vst [vmem:[#allocation12_spill] sm:$0xff] %v6698_v4  ;;  %v6700_v33 = vpop.f32.mrf.mxu3 }
 0x2b5   : > { %8736 = vst [vmem:[#allocation13_spill] sm:$0xff] %v6700_v33  ;;  %v1559_v33 = vpop.f32.mrf.mxu1 }
 0x2b8   : > { %1714 = vmatmul.f32.gmra.mxu2 %v6515_v14 }
 0x2bb   : > { %v6706_v37 = vpop.f32.mrf.mxu2 }
 0x2bc   : > { %8737 = vst [vmem:[#allocation14_spill] sm:$0xff] %v6706_v37  ;;  %v1737_v30 = vpop.f32.mrf.mxu3  ;;  %v1448_v37 = vadd.f32 %v1447_v43, %v6606_v0 }
 0x2bd   : > { %v1565_v45 = vpop.f32.mrf.mxu1 }
 0x2be   : > { %v1548_v59 = vadd.f32 %v1547_v1, %v1448_v37 }
 0x2c3   : > { %v1655_v14 = vpop.f32.mrf.mxu2 }
 0x2c4   : > { %v1741_v4 = vpop.f32.mrf.mxu3  ;;  %v1656_v42 = vadd.f32 %v1655_v14, %v1542_v53 }
 0x2c5   : > { %v1571_v47 = vpop.f32.mrf.mxu1 }
 0x2c6   : > { %v1738_v18 = vadd.f32 %v1737_v30, %v1656_v42  ;;  %v1472_v30 = vpop.f32.mrf.mxu0 }
 0x2c8   : > { %v6711_v56 = vand.u32 2147483647, %v1738_v18 }
 0x2ca   : > { %v1836_v53 = vrot.slane %v6711_v56, 1  ;;  %v3889_v0 = vrot.slane %v6711_v56, 3 }
 0x2cb   : > { %v1659_v39 = vpop.f32.mrf.mxu2 }
 0x2cc   : > { %v1660_v60 = vadd.f32 %v1659_v39, %v1548_v59  ;;  %v1745_v11 = vpop.f32.mrf.mxu3  ;;  %v1560_v59 = vadd.f32 %v1559_v33, %v1458_v22 }
 0x2ce   : > { %v1742_v44 = vadd.f32 %v1741_v4, %v1660_v60  ;;  %v1477_v22 = vpop.f32.mrf.mxu0 }
 0x2d0   : > { %v6713_v7 = vand.u32 2147483647, %v1742_v44 }
 0x2d2   : > { %v1837_v42 = vrot.slane %v6713_v7, 1  ;;  %v8670_v32 = vrot.slane %v6713_v7, 3 }
 0x2d3   : > { %v1663_v39 = vpop.f32.mrf.mxu2 }
 0x2d4   : > { %v6722_v49 = vsel %vm3888_vm6, %v3889_v0, %v8670_v32  ;;  %v1664_v60 = vadd.f32 %v1663_v39, %v1554_v16  ;;  %v1749_v43 = vpop.f32.mrf.mxu3  ;;  %v1838_v1 = vsel %vm480_vm5, %v1836_v53, %v1837_v42  ;;  %v1463_v0 = vadd.f32 %v1462_v51, %v6637_v28 }
 0x2d5   : > { %8738 = vst [vmem:[#allocation15_spill] sm:$0xff] %v6722_v49  ;;  %v1868_v4 = vsel %vm1867_vm7, %v1838_v1, 0 }
 0x2d6   : > { %v1746_v37 = vadd.f32 %v1745_v11, %v1664_v60  ;;  %v6727_v2 = vand.u32 4294901760, %v1868_v4 }
 0x2d8   : > { %v6729_v34 = vand.u32 2147483647, %v1746_v37  ;;  %2074 = vmatmul.f32.vlgmr.msrb.gmra.mxu1 %v6727_v2  ;;  %v1919_v14 = vsub.f32 %v1868_v4, %v6727_v2  ;;  %v1577_v4 = vpop.f32.mrf.mxu1 }
 0x2da   : > { %v1839_v18 = vrot.slane %v6729_v34, 1  ;;  %2160 = vmatmul.f32.vlgmr.msra.gmra.mxu2 %v1919_v14  ;;  %v1920_v46 = vand.u32 4294901760, %v1919_v14 }
 0x2db   : > { %v1667_v44 = vpop.f32.mrf.mxu2 }
 0x2dc   : > { %v1668_v16 = vadd.f32 %v1667_v44, %v1560_v59  ;;  %v1753_v53 = vpop.f32.mrf.mxu3  ;;  %2260 = vmatmul.f32.vlgmr.msra.gmra.mxu3 %v1920_v46  ;;  %v1921_v48 = vsub.f32 %v1919_v14, %v1920_v46  ;;  %v1840_v8 = vsel %vm480_vm5, %v1837_v42, %v1839_v18  ;;  %v1566_v42 = vadd.f32 %v1565_v45, %v1463_v0 }
 0x2dd   : > { %v1870_v11 = vsel %vm1867_vm7, %v1840_v8, 0 }
 0x2de   : > { %v1750_v39 = vadd.f32 %v1749_v43, %v1668_v16  ;;  %v1922_v60 = vand.u32 4294901760, %v1921_v48  ;;  %v6737_v1 = vand.u32 4294901760, %v1870_v11  ;;  %v1468_v48 = vadd.f32 %v1467_v26, %v6647_v9 }
 0x2e0   : > { %v6739_v37 = vand.u32 2147483647, %v1750_v39  ;;  %1923 = vmatmul.f32.vlgmr.msrb.gmra.mxu0 %v1922_v60  ;;  %2078 = vmatmul.f32.gmra.mxu1 %v6737_v1  ;;  %v1927_v33 = vsub.f32 %v1870_v11, %v6737_v1  ;;  %v3184_v60 = vrot.slane %v6713_v7, 2  ;;  %v1583_v0 = vpop.f32.mrf.mxu1  ;;  %v1572_v9 = vadd.f32 %v1571_v47, %v1468_v48 }
 0x2e1   : > { %v3186_v47 = vrot.slane %v6729_v34, 2 }
 0x2e2   : > { %v1841_v14 = vrot.slane %v6739_v37, 1  ;;  %2165 = vmatmul.f32.gmra.mxu2 %v1927_v33  ;;  %v1928_v59 = vand.u32 4294901760, %v1927_v33 }
 0x2e3   : > { %v1671_v46 = vpop.f32.mrf.mxu2 }
 0x2e4   : > { %v1672_v28 = vadd.f32 %v1671_v46, %v1566_v42  ;;  %v1757_v51 = vpop.f32.mrf.mxu3  ;;  %2266 = vmatmul.f32.gmra.mxu3 %v1928_v59  ;;  %v1929_v43 = vsub.f32 %v1927_v33, %v1928_v59  ;;  %v1842_v44 = vsel %vm480_vm5, %v1839_v18, %v1841_v14  ;;  %v3183_v18 = vrot.slane %v6711_v56, 2  ;;  %v1482_v59 = vpop.f32.mrf.mxu0 }
 0x2e5   : > { %v1872_v16 = vsel %vm1867_vm7, %v1842_v44, 0 }
 0x2e6   : > { %v1754_v8 = vadd.f32 %v1753_v53, %v1672_v28  ;;  %v1930_v39 = vand.u32 4294901760, %v1929_v43  ;;  %v6747_v11 = vand.u32 4294901760, %v1872_v16  ;;  %v6757_v42 = vsel %vm3182_vm8, %v3183_v18, %v3184_v60 }
 0x2e7   : > { %8740 = vst [vmem:[#allocation17_spill] sm:$0xff] %v6757_v42 }
 0x2e8   : > { %8739 = vst [vmem:[#allocation16_spill] sm:$0xff] %v6747_v11  ;;  %v6750_v32 = vand.u32 2147483647, %v1754_v8  ;;  %1931 = vmatmul.f32.gmra.mxu0 %v1930_v39  ;;  %2082 = vmatmul.f32.gmra.mxu1 %v6747_v11  ;;  %v1935_v45 = vsub.f32 %v1872_v16, %v6747_v11  ;;  %v1473_v8 = vadd.f32 %v1472_v30, %v6659_v27 }
 0x2ea   : > { %v1843_v33 = vrot.slane %v6750_v32, 1  ;;  %2170 = vmatmul.f32.gmra.mxu2 %v1935_v45  ;;  %v1936_v26 = vand.u32 4294901760, %v1935_v45  ;;  %v1578_v27 = vadd.f32 %v1577_v4, %v1473_v8  ;;  %v1478_v4 = vadd.f32 %v1477_v22, %v6671_v25 }
 0x2eb   : > { %v1675_v53 = vpop.f32.mrf.mxu2  ;;  %v1049_v22 = vadd.f32 %v6587_v36, %v6512_v40 }
 0x2ec   : > { %v1676_v46 = vadd.f32 %v1675_v53, %v1572_v9  ;;  %v1761_v28 = vpop.f32.mrf.mxu3  ;;  %2272 = vmatmul.f32.gmra.mxu3 %v1936_v26  ;;  %v1937_v43 = vsub.f32 %v1935_v45, %v1936_v26  ;;  %v1844_v44 = vsel %vm480_vm5, %v1841_v14, %v1843_v33  ;;  %v1045_v14 = vadd.f32 %v6572_v63, %v6490_v31 }
 0x2ed   : > { %v1874_v16 = vsel %vm1867_vm7, %v1844_v44, 0  ;;  %v6773_v26 = vsel %vm3182_vm8, %v3184_v60, %v3186_v47  ;;  %v3892_v53 = vrot.slane %v6729_v34, 3  ;;  %v3188_v60 = vrot.slane %v6739_v37, 2 }
 0x2ee   : > { %v1758_v39 = vadd.f32 %v1757_v51, %v1676_v46  ;;  %v1938_v49 = vand.u32 4294901760, %v1937_v43  ;;  %v6762_v11 = vand.u32 4294901760, %v1874_v16  ;;  %v1589_v51 = vpop.f32.mrf.mxu1  ;;  %8741 = vst [vmem:[#allocation18_spill] sm:$0xff] %v6773_v26  ;;  %v1127_v31 = vadd.f32 %v6582_v21, %v1045_v14 }
 0x2ef   : > { %v3894_v14 = vrot.slane %v6739_v37, 3  ;;  %v1131_v40 = vadd.f32 %v6597_v6, %v1049_v22 }
 0x2f0   : > { %v6765_v48 = vand.u32 2147483647, %v1758_v39  ;;  %1939 = vmatmul.f32.gmra.mxu0 %v1938_v49  ;;  %2086 = vmatmul.f32.gmra.mxu1 %v6762_v11  ;;  %v1943_v18 = vsub.f32 %v1874_v16, %v6762_v11  ;;  %v1487_v16 = vpop.f32.mrf.mxu0 }
 0x2f2   : > { %v1845_v45 = vrot.slane %v6765_v48, 1  ;;  %2175 = vmatmul.f32.gmra.mxu2 %v1943_v18  ;;  %v1944_v30 = vand.u32 4294901760, %v1943_v18 }
 0x2f3   : > { %v1679_v9 = vpop.f32.mrf.mxu2 }
 0x2f4   : > { %v1680_v49 = vadd.f32 %v1679_v9, %v1578_v27  ;;  %v1765_v46 = vpop.f32.mrf.mxu3  ;;  %2278 = vmatmul.f32.gmra.mxu3 %v1944_v30  ;;  %v1945_v43 = vsub.f32 %v1943_v18, %v1944_v30  ;;  %v1846_v44 = vsel %vm480_vm5, %v1843_v33, %v1845_v45  ;;  %v1277_v27 = vadd.f32 %v6643_v24, %v1127_v31 }
 0x2f5   : > { %v1876_v63 = vsel %vm1867_vm7, %v1846_v44, 0  ;;  %v8742_v33 = vrot.slane %v6713_v7, 3  ;;  %v1584_v18 = vadd.f32 %v1583_v0, %v1478_v4 }
 0x2f6   : > { %v1762_v8 = vadd.f32 %v1761_v28, %v1680_v49  ;;  %v1946_v39 = vand.u32 4294901760, %v1945_v43  ;;  %v6780_v42 = vand.u32 4294901760, %v1876_v63  ;;  %v6798_v49 = vsel %vm3182_vm8, %v3186_v47, %v3188_v60  ;;  %v1595_v36 = vpop.f32.mrf.mxu1 }
 0x2f7   : > { %v6791_v25 = vsel %vm3888_vm6, %v8742_v33, %v3892_v53  ;;  %8744 = vst [vmem:[#allocation20_spill] sm:$0xff] %v6798_v49  ;;  %v1391_v43 = vadd.f32 %v6635_v50, %v1277_v27  ;;  %v1285_v47 = vadd.f32 %v6655_v3, %v1131_v40  ;;  %v3190_v50 = vrot.slane %v6750_v32, 2 }
 0x2f8   : > { %v6784_v9 = vand.u32 2147483647, %v1762_v8  ;;  %1947 = vmatmul.f32.gmra.mxu0 %v1946_v39  ;;  %2090 = vmatmul.f32.gmra.mxu1 %v6780_v42  ;;  %v1951_v21 = vsub.f32 %v1876_v63, %v6780_v42  ;;  %8743 = vst [vmem:[#allocation19_spill] sm:$0xff] %v6791_v25  ;;  %v6809_v27 = vsel %vm3888_vm6, %v3892_v53, %v3894_v14 }
 0x2f9   : > { %v1483_v4 = vadd.f32 %v1482_v59, %v1391_v43  ;;  %8745 = vst [vmem:[#allocation21_spill] sm:$0xff] %v6809_v27  ;;  %v1053_v59 = vadd.f32 %v6599_v20, %v6532_v15  ;;  %v1395_v22 = vadd.f32 %v6645_v17, %v1285_v47 }
 0x2fa   : > { %v1847_v28 = vrot.slane %v6784_v9, 1  ;;  %2180 = vmatmul.f32.gmra.mxu2 %v1951_v21  ;;  %v1952_v24 = vand.u32 4294901760, %v1951_v21 }
 0x2fb   : > { %v1683_v30 = vpop.f32.mrf.mxu2  ;;  %v1590_v3 = vadd.f32 %v1589_v51, %v1483_v4  ;;  %v1135_v15 = vadd.f32 %v6608_v58, %v1053_v59  ;;  %v1488_v51 = vadd.f32 %v1487_v16, %v1395_v22  ;;  %v1057_v16 = vadd.f32 %v6615_v41, %v6547_v38 }
 0x2fc   : > { %v1684_v44 = vadd.f32 %v1683_v30, %v1584_v18  ;;  %v1769_v31 = vpop.f32.mrf.mxu3  ;;  %2284 = vmatmul.f32.gmra.mxu3 %v1952_v24  ;;  %v1953_v63 = vsub.f32 %v1951_v21, %v1952_v24  ;;  %v1848_v8 = vsel %vm480_vm5, %v1845_v45, %v1847_v28  ;;  %v1492_v21 = vpop.f32.mrf.mxu0  ;;  %v6820_v24 = vsel %vm3182_vm8, %v3188_v60, %v3190_v50 }
 0x2fd   : > { %v1878_v0 = vsel %vm1867_vm7, %v1848_v8, 0  ;;  %8746 = vst [vmem:[#allocation22_spill] sm:$0xff] %v6820_v24  ;;  %v3896_v30 = vrot.slane %v6750_v32, 3  ;;  %v3192_v60 = vrot.slane %v6765_v48, 2  ;;  %v1139_v38 = vadd.f32 %v6621_v23, %v1057_v16 }
 0x2fe   : > { %v1766_v39 = vadd.f32 %v1765_v46, %v1684_v44  ;;  %v1954_v33 = vand.u32 4294901760, %v1953_v63  ;;  %v6804_v25 = vand.u32 4294901760, %v1878_v0  ;;  %v1601_v4 = vpop.f32.mrf.mxu1  ;;  %v1061_v23 = vadd.f32 %v6626_v12, %v6555_v13 }
 0x2ff   : > { %v6837_v58 = vsel %vm3888_vm6, %v3894_v14, %v3896_v30 }
 0x300   : > { %v6811_v18 = vand.u32 2147483647, %v1766_v39  ;;  %1955 = vmatmul.f32.gmra.mxu0 %v1954_v33  ;;  %2094 = vmatmul.f32.gmra.mxu1 %v6804_v25  ;;  %v1959_v6 = vsub.f32 %v1878_v0, %v6804_v25  ;;  %v1293_v39 = vadd.f32 %v6667_v52, %v1135_v15  ;;  %8747 = vst [vmem:[#allocation23_spill] sm:$0xff] %v6837_v58 }
 0x301   : > { %v1596_v52 = vadd.f32 %v1595_v36, %v1488_v51 }
 0x302   : > { %v1849_v45 = vrot.slane %v6811_v18, 1  ;;  %2185 = vmatmul.f32.gmra.mxu2 %v1959_v6  ;;  %v1960_v46 = vand.u32 4294901760, %v1959_v6 }
 0x303   : > { %v1687_v53 = vpop.f32.mrf.mxu2 }
 0x304   : > { %v1688_v43 = vadd.f32 %v1687_v53, %v1590_v3  ;;  %v1773_v44 = vpop.f32.mrf.mxu3  ;;  %2290 = vmatmul.f32.gmra.mxu3 %v1960_v46  ;;  %v1961_v63 = vsub.f32 %v1959_v6, %v1960_v46  ;;  %v1850_v8 = vsel %vm480_vm5, %v1847_v28, %v1849_v45  ;;  %v6843_v3 = vsel %vm3182_vm8, %v3190_v50, %v3192_v60 }
 0x305   : > { %v1880_v20 = vsel %vm1867_vm7, %v1850_v8, 0  ;;  %8748 = vst [vmem:[#allocation24_spill] sm:$0xff] %v6843_v3  ;;  %v1399_v46 = vadd.f32 %v6657_v35, %v1293_v39  ;;  %v3194_v50 = vrot.slane %v6784_v9, 2 }
 0x306   : > { %v1770_v40 = vadd.f32 %v1769_v31, %v1688_v43  ;;  %v1962_v0 = vand.u32 4294901760, %v1961_v63  ;;  %v6826_v17 = vand.u32 4294901760, %v1880_v20  ;;  %v1497_v31 = vpop.f32.mrf.mxu0  ;;  %v1607_v51 = vpop.f32.mrf.mxu1 }
 0x307   : > { %v1493_v63 = vadd.f32 %v1492_v21, %v1399_v46 }
 0x308   : > { %v6830_v33 = vand.u32 2147483647, %v1770_v40  ;;  %1963 = vmatmul.f32.gmra.mxu0 %v1962_v0  ;;  %2098 = vmatmul.f32.gmra.mxu1 %v6826_v17  ;;  %v1967_v28 = vsub.f32 %v1880_v20, %v6826_v17  ;;  %v1301_v20 = vadd.f32 %v6677_v62, %v1139_v38  ;;  %v3898_v0 = vrot.slane %v6765_v48, 3 }
 0x309   : > { %v3900_v62 = vrot.slane %v6784_v9, 3 }
 0x30a   : > { %v1851_v47 = vrot.slane %v6830_v33, 1  ;;  %2190 = vmatmul.f32.gmra.mxu2 %v1967_v28  ;;  %v1968_v6 = vand.u32 4294901760, %v1967_v28  ;;  %v1403_v16 = vadd.f32 %v6669_v55, %v1301_v20  ;;  %v6875_v55 = vsel %vm3888_vm6, %v3896_v30, %v3898_v0 }
 0x30b   : > { %v1691_v59 = vpop.f32.mrf.mxu2  ;;  %8750 = vst [vmem:[#allocation26_spill] sm:$0xff] %v6875_v55  ;;  %v8674_v20 = vrot.slane %v6811_v18, 3 }
 0x30c   : > { %v1692_v22 = vadd.f32 %v1691_v59, %v1596_v52  ;;  %v1777_v53 = vpop.f32.mrf.mxu3  ;;  %2296 = vmatmul.f32.gmra.mxu3 %v1968_v6  ;;  %v1969_v14 = vsub.f32 %v1967_v28, %v1968_v6  ;;  %v1852_v43 = vsel %vm480_vm5, %v1849_v45, %v1851_v47  ;;  %v6863_v28 = vsel %vm3182_vm8, %v3192_v60, %v3194_v50 }
 0x30d   : > { %v1882_v41 = vsel %vm1867_vm7, %v1852_v43, 0  ;;  %8749 = vst [vmem:[#allocation25_spill] sm:$0xff] %v6863_v28  ;;  %v1143_v59 = vadd.f32 %v6633_v29, %v1061_v23  ;;  %v3196_v60 = vrot.slane %v6811_v18, 2 }
 0x30e   : > { %v1774_v8 = vadd.f32 %v1773_v44, %v1692_v22  ;;  %v1970_v36 = vand.u32 4294901760, %v1969_v14  ;;  %v6849_v15 = vand.u32 4294901760, %v1882_v41  ;;  %v1602_v44 = vadd.f32 %v1601_v4, %v1493_v63  ;;  %v1502_v52 = vpop.f32.mrf.mxu0 }
 0x30f   : > { %v1498_v22 = vadd.f32 %v1497_v31, %v1403_v16  ;;  %v1309_v29 = vadd.f32 %v6686_v61, %v1143_v59  ;;  %v6890_v61 = vsel %vm3182_vm8, %v3194_v50, %v3196_v60  ;;  %v3198_v50 = vrot.slane %v6830_v33, 2 }
 0x310   : > { %v6853_v35 = vand.u32 2147483647, %v1774_v8  ;;  %1971 = vmatmul.f32.gmra.mxu0 %v1970_v36  ;;  %2102 = vmatmul.f32.gmra.mxu1 %v6849_v15  ;;  %v1975_v45 = vsub.f32 %v1882_v41, %v6849_v15  ;;  %v6878_v41 = vsel %vm3888_vm6, %v3898_v0, %v3900_v62  ;;  %v1613_v36 = vpop.f32.mrf.mxu1  ;;  %8752 = vst [vmem:[#allocation28_spill] sm:$0xff] %v6890_v61 }
 0x311   : > { %8751 = vst [vmem:[#allocation27_spill] sm:$0xff] %v6878_v41  ;;  %v1608_v30 = vadd.f32 %v1607_v51, %v1498_v22  ;;  %v1407_v23 = vadd.f32 %v6679_v54, %v1309_v29  ;;  %v6902_v54 = vsel %vm3888_vm6, %v3900_v62, %v8674_v20  ;;  %v1817_v62 = vld [vmem:[%s8658_s4 + $0x8] sm:$0xff] }
 0x312   : > { %v1853_v21 = vrot.slane %v6853_v35, 1  ;;  %2195 = vmatmul.f32.gmra.mxu2 %v1975_v45  ;;  %v1976_v40 = vand.u32 4294901760, %v1975_v45  ;;  %8753 = vst [vmem:[#allocation29_spill] sm:$0xff] %v6902_v54  ;;  %v6915_v29 = vand.u32 4294901760, %v1817_v62  ;;  %v8765_v54 = vld [vmem:[#allocation14_spill] sm:$0xff] }
 0x313   : > { %v1695_v39 = vpop.f32.mrf.mxu2  ;;  %v1503_v51 = vadd.f32 %v1502_v52, %v1407_v23  ;;  %v8754_v52 = vld [vmem:[#allocation4_spill] sm:$0xff] }
 0x314   : > { %v1696_v6 = vadd.f32 %v1695_v39, %v1602_v44  ;;  %2302 = vmatmul.f32.gmra.mxu3 %v1976_v40  ;;  %v1977_v13 = vsub.f32 %v1975_v45, %v1976_v40  ;;  %v1854_v12 = vsel %vm480_vm5, %v1851_v47, %v1853_v21  ;;  %v1781_v4 = vpop.f32.mrf.mxu3  ;;  %2571 = vmatpush.msrb.mxu2 %v6915_v29 }
 0x315   : > { %v1884_v46 = vsel %vm1867_vm7, %v1854_v12, 0  ;;  %2910 = vmatpush.msrb.mxu1 %v6915_v29 }
 0x316   : > { %v1778_v14 = vadd.f32 %v1777_v53, %v1696_v6  ;;  %v1978_v43 = vand.u32 4294901760, %v1977_v13  ;;  %v6869_v38 = vand.u32 4294901760, %v1884_v46  ;;  %v1065_v53 = vadd.f32 %v6639_v57, %v6564_v19  ;;  %v1507_v39 = vpop.f32.mrf.mxu0 }
 0x318   : > { %v6881_v47 = vand.u32 2147483647, %v1778_v14  ;;  %1979 = vmatmul.f32.gmra.mxu0 %v1978_v43  ;;  %2106 = vmatmul.f32.gmra.mxu1 %v6869_v38  ;;  %v1983_v31 = vsub.f32 %v1884_v46, %v6869_v38  ;;  %v1147_v19 = vadd.f32 %v6649_v5, %v1065_v53  ;;  %v1614_v14 = vadd.f32 %v1613_v36, %v1503_v51  ;;  %v8757_v53 = vld [vmem:[#allocation10_spill] sm:$0xff] }
 0x31a   : > { %v1855_v63 = vrot.slane %v6881_v47, 1  ;;  %2200 = vmatmul.f32.gmra.mxu2 %v1983_v31  ;;  %v1984_v8 = vand.u32 4294901760, %v1983_v31 }
 0x31b   : > { %v1699_v45 = vpop.f32.mrf.mxu2 }
 0x31c   : > { %v1700_v44 = vadd.f32 %v1699_v45, %v1608_v30  ;;  %2308 = vmatmul.f32.gmra.mxu3 %v1984_v8  ;;  %v1985_v40 = vsub.f32 %v1983_v31, %v1984_v8  ;;  %v1856_v0 = vsel %vm480_vm5, %v1853_v21, %v1855_v63  ;;  %v1785_v12 = vpop.f32.mrf.mxu3  ;;  %v1317_v21 = vadd.f32 %v6692_v10, %v1147_v19 }
 0x31d   : > { %v1886_v57 = vsel %vm1867_vm7, %v1856_v0, 0  ;;  %v6918_v31 = vsel %vm3182_vm8, %v3196_v60, %v3198_v50  ;;  %v6926_v19 = vsub.f32 %v1817_v62, %v6915_v29 }
 0x31e   : > { %v1782_v16 = vadd.f32 %v1781_v4, %v1700_v44  ;;  %v1986_v6 = vand.u32 4294901760, %v1985_v40  ;;  %v6896_v13 = vand.u32 4294901760, %v1886_v57  ;;  %v8755_v4 = vld [vmem:[#allocation6_spill] sm:$0xff]  ;;  %8756 = vst [vmem:[#allocation4_spill] sm:$0xff] %v6918_v31  ;;  %v1411_v30 = vadd.f32 %v8757_v53, %v1317_v21  ;;  %v8758_v44 = vld [vmem:[#allocation7_spill] sm:$0xff]  ;;  %v1619_v40 = vpop.f32.mrf.mxu1  ;;  %v8759_v21 = vld [vmem:[#allocation12_spill] sm:$0xff] }
 0x31f   : > { %v1069_v46 = vadd.f32 %v8755_v4, %v8754_v52  ;;  %2810 = vmatpush.msrb.mxu0 %v6926_v19  ;;  %v1512_v52 = vpop.f32.mrf.mxu0 }
 0x320   : > { %v6905_v59 = vand.u32 2147483647, %v1782_v16  ;;  %1987 = vmatmul.f32.gmra.mxu0 %v1986_v6  ;;  %2110 = vmatmul.f32.gmra.mxu1 %v6896_v13  ;;  %v1991_v5 = vsub.f32 %v1886_v57, %v6896_v13  ;;  %v1508_v60 = vadd.f32 %v1507_v39, %v1411_v30  ;;  %v3200_v6 = vrot.slane %v6853_v35, 2 }
 0x321   : > { %v1151_v36 = vadd.f32 %v8758_v44, %v1069_v46  ;;  %v8761_v46 = vld [vmem:[#allocation8_spill] sm:$0xff]  ;;  %v8763_v44 = vld [vmem:[#allocation11_spill] sm:$0xff] }
 0x322   : > { %v1857_v22 = vrot.slane %v6905_v59, 1  ;;  %2205 = vmatmul.f32.gmra.mxu2 %v1991_v5  ;;  %v1992_v43 = vand.u32 4294901760, %v1991_v5  ;;  %v1620_v53 = vadd.f32 %v1619_v40, %v1508_v60 }
 0x323   : > { %v1703_v10 = vpop.f32.mrf.mxu2 }
 0x324   : > { %v1704_v8 = vadd.f32 %v1703_v10, %v1614_v14  ;;  %2314 = vmatmul.f32.gmra.mxu3 %v1992_v43  ;;  %v1993_v45 = vsub.f32 %v1991_v5, %v1992_v43  ;;  %v1858_v23 = vsel %vm480_vm5, %v1855_v63, %v1857_v22  ;;  %v8673_v63 = vand.u32 4294901760, %v6926_v19  ;;  %v1789_v43 = vpop.f32.mrf.mxu3 }
 0x325   : > { %v1888_v0 = vsel %vm1867_vm7, %v1858_v23, 0  ;;  %v1325_v5 = vadd.f32 %v8759_v21, %v1151_v36  ;;  %v6946_v23 = vsel %vm3182_vm8, %v3198_v50, %v3200_v6  ;;  %v8764_v21 = vld [vmem:[#allocation9_spill] sm:$0xff]  ;;  %v3202_v50 = vrot.slane %v6881_v47, 2 }
 0x326   : > { %v1786_v57 = vadd.f32 %v1785_v12, %v1704_v8  ;;  %v1994_v51 = vand.u32 4294901760, %v1993_v45  ;;  %v6929_v16 = vand.u32 4294901760, %v1888_v0  ;;  %v8760_v12 = vld [vmem:[#allocation5_spill] sm:$0xff]  ;;  %v2720_v62 = vsub.f32 %v6926_v19, %v8673_v63  ;;  %8762 = vst [vmem:[#allocation6_spill] sm:$0xff] %v6946_v23 }
 0x327   : > { %v1073_v14 = vadd.f32 %v8761_v46, %v8760_v12  ;;  %v1415_v36 = vadd.f32 %v8763_v44, %v1325_v5 }
 0x328   : > { %v6935_v4 = vand.u32 2147483647, %v1786_v57  ;;  %1995 = vmatmul.f32.gmra.mxu0 %v1994_v51  ;;  %2114 = vmatmul.f32.gmra.mxu1 %v6929_v16  ;;  %v1999_v39 = vsub.f32 %v1888_v0, %v6929_v16  ;;  %v2721_v45 = vand.u32 4294901760, %v2720_v62  ;;  %v1625_v62 = vpop.f32.mrf.mxu1 }
 0x329   : > { %v1155_v12 = vadd.f32 %v8764_v21, %v1073_v14  ;;  %v1513_v63 = vadd.f32 %v1512_v52, %v1415_v36  ;;  %v8767_v36 = vld [vmem:[#allocation13_spill] sm:$0xff] }
 0x32a   : > { %v1859_v10 = vrot.slane %v6935_v4, 1  ;;  %2210 = vmatmul.f32.gmra.mxu2 %v1999_v39  ;;  %v2000_v30 = vand.u32 4294901760, %v1999_v39  ;;  %2722 = vmatpush.msrb.mxu3 %v2721_v45 }
 0x32b   : > { %v1707_v8 = vpop.f32.mrf.mxu2  ;;  %v1333_v5 = vadd.f32 %v8765_v54, %v1155_v12  ;;  %v1626_v52 = vadd.f32 %v1625_v62, %v1513_v63  ;;  %v6964_v54 = vsel %vm3182_vm8, %v3200_v6, %v3202_v50  ;;  %v8768_v62 = vrot.slane %v6811_v18, 3 }
 0x32c   : > { %v1708_v0 = vadd.f32 %v1707_v8, %v1620_v53  ;;  %2320 = vmatmul.f32.gmra.mxu3 %v2000_v30  ;;  %v2001_v57 = vsub.f32 %v1999_v39, %v2000_v30  ;;  %v1860_v51 = vsel %vm480_vm5, %v1857_v22, %v1859_v10  ;;  %v1517_v39 = vpop.f32.mrf.mxu0  ;;  %v3904_v30 = vrot.slane %v6830_v33, 3  ;;  %v1793_v45 = vpop.f32.mrf.mxu3  ;;  %8766 = vst [vmem:[#allocation10_spill] sm:$0xff] %v6964_v54 }
 0x32d   : > { %v1890_v46 = vsel %vm1867_vm7, %v1860_v51, 0  ;;  %v8770_v6 = vrot.slane %v6853_v35, 3 }
 0x32e   : > { %v1790_v40 = vadd.f32 %v1789_v43, %v1708_v0  ;;  %v2002_v60 = vand.u32 4294901760, %v2001_v57  ;;  %v6952_v20 = vand.u32 4294901760, %v1890_v46  ;;  %v1419_v0 = vadd.f32 %v8767_v36, %v1333_v5 }
 0x32f   : > { %v6974_v8 = vsel %vm3888_vm6, %v8768_v62, %v3904_v30  ;;  %v6979_v5 = vsel %vm3888_vm6, %v3904_v30, %v8770_v6 }
 0x330   : > { %v6956_v53 = vand.u32 2147483647, %v1790_v40  ;;  %2003 = vmatmul.f32.gmra.mxu0 %v2002_v60  ;;  %2118 = vmatmul.f32.gmra.mxu1 %v6952_v20  ;;  %v2007_v22 = vsub.f32 %v1890_v46, %v6952_v20  ;;  %v1518_v63 = vadd.f32 %v1517_v39, %v1419_v0  ;;  %8769 = vst [vmem:[#allocation7_spill] sm:$0xff] %v6974_v8  ;;  %v1816_v39 = vld [vmem:[%s8658_s4] sm:$0xff] }
 0x331   : > { %8771 = vst [vmem:[#allocation12_spill] sm:$0xff] %v6979_v5 }
 0x332   : > { %v1861_v14 = vrot.slane %v6956_v53, 1  ;;  %2215 = vmatmul.f32.gmra.mxu2 %v2007_v22  ;;  %v2008_v43 = vand.u32 4294901760, %v2007_v22 }
 0x333   : > { %v1711_v44 = vpop.f32.mrf.mxu2 }
 0x334   : > { %v1712_v57 = vadd.f32 %v1711_v44, %v1626_v52  ;;  %2326 = vmatmul.f32.gmra.mxu3 %v2008_v43  ;;  %v2009_v51 = vsub.f32 %v2007_v22, %v2008_v43  ;;  %v1862_v21 = vsel %vm480_vm5, %v1859_v10, %v1861_v14  ;;  %v1631_v52 = vpop.f32.mrf.mxu1  ;;  %v2572_v43 = vand.u32 4294901760, %v1816_v39 }
 0x335   : > { %v1892_v12 = vsel %vm1867_vm7, %v1862_v21, 0  ;;  %v1632_v30 = vadd.f32 %v1631_v52, %v1518_v63 }
 0x336   : > { %v1794_v46 = vadd.f32 %v1793_v45, %v1712_v57  ;;  %v2010_v40 = vand.u32 4294901760, %v2009_v51  ;;  %v6969_v60 = vand.u32 4294901760, %v1892_v12  ;;  %v3204_v45 = vrot.slane %v6905_v59, 2  ;;  %2573 = vmatpush.msrb.mxu2 %v2572_v43  ;;  %2912 = vmatpush.msrb.mxu1 %v2572_v43 }
 0x337   : > { %v2724_v57 = vsub.f32 %v1816_v39, %v2572_v43 }
 0x338   : > { %v6981_v22 = vand.u32 2147483647, %v1794_v46  ;;  %2011 = vmatmul.f32.gmra.mxu0 %v2010_v40  ;;  %2122 = vmatmul.f32.gmra.mxu1 %v6969_v60  ;;  %v2015_v10 = vsub.f32 %v1892_v12, %v6969_v60  ;;  %v8772_v46 = vand.u32 4294901760, %v6926_v19  ;;  %v1797_v40 = vpop.f32.mrf.mxu3  ;;  %v6997_v39 = vsel %vm3182_vm8, %v3202_v50, %v3204_v45 }
 0x339   : > { %v2725_v6 = vand.u32 4294901760, %v2724_v57  ;;  %2813 = vmatpush.msrb.mxu0 %v2724_v57  ;;  %8773 = vst [vmem:[#allocation5_spill] sm:$0xff] %v6997_v39 }
 0x33a   : > { %v1863_v44 = vrot.slane %v6981_v22, 1  ;;  %2220 = vmatmul.f32.gmra.mxu2 %v2015_v10  ;;  %v2016_v36 = vand.u32 4294901760, %v2015_v10 }
 0x33b   : > { %v1715_v0 = vpop.f32.mrf.mxu2  ;;  %3027 = vmatpush.msra.mxu2 %v8772_v46 }
 0x33c   : > { %v1716_v51 = vadd.f32 %v1715_v0, %v1632_v30  ;;  %2332 = vmatmul.f32.gmra.mxu3 %v2016_v36  ;;  %v2017_v21 = vsub.f32 %v2015_v10, %v2016_v36  ;;  %v1864_v12 = vsel %vm480_vm5, %v1861_v14, %v1863_v44  ;;  %v3206_v30 = vrot.slane %v6935_v4, 2 }
 0x33d   : > { %v1894_v62 = vsel %vm1867_vm7, %v1864_v12, 0  ;;  %v2726_v10 = vsub.f32 %v2724_v57, %v2725_v6  ;;  %3031 = vmatpush.msra.mxu2 %v2725_v6  ;;  %v2524_v12 = vsel %vm1867_vm7, %v6711_v56, 0  ;;  %v3908_v56 = vrot.slane %v6881_v47, 3 }
 0x33e   : > { %v1798_v5 = vadd.f32 %v1797_v40, %v1716_v51  ;;  %v2018_v63 = vand.u32 4294901760, %v2017_v21  ;;  %v6994_v52 = vand.u32 4294901760, %v1894_v62  ;;  %v7006_v50 = vsel %vm3182_vm8, %v3204_v45, %v3206_v30 }
 0x33f   : > { %v2727_v36 = vand.u32 4294901760, %v2726_v10  ;;  %8775 = vst [vmem:[#allocation11_spill] sm:$0xff] %v7006_v50  ;;  %v3208_v40 = vrot.slane %v6956_v53, 2 }
 0x340   : > { %v7000_v14 = vand.u32 2147483647, %v1798_v5  ;;  %2019 = vmatmul.f32.gmra.mxu0 %v2018_v63  ;;  %2126 = vmatmul.f32.gmra.mxu1 %v6994_v52  ;;  %v2023_v19 = vsub.f32 %v1894_v62, %v6994_v52  ;;  %v7019_v63 = vand.u32 4294901760, %v2524_v12 }
 0x341   : > { %2728 = vmatpush.msrb.mxu3 %v2727_v36  ;;  %v3910_v36 = vrot.slane %v6905_v59, 3 }
 0x342   : > { %8774 = vst [vmem:[#allocation8_spill] sm:$0xff] %v7000_v14  ;;  %v1865_v0 = vrot.slane %v7000_v14, 1  ;;  %2225 = vmatmul.f32.gmra.mxu2 %v2023_v19  ;;  %v2024_v51 = vand.u32 4294901760, %v2023_v19  ;;  %v8678_v55 = vrot.slane %v7000_v14, 3 }
 0x343   : > { %3112 = vmatpush.msra.mxu3 %v6915_v29  ;;  %v7042_v8 = vsel %vm3888_vm6, %v3908_v56, %v3910_v36 }
 0x344   : > { %2338 = vmatmul.f32.gmra.mxu3 %v2024_v51  ;;  %v2025_v21 = vsub.f32 %v2023_v19, %v2024_v51  ;;  %v1866_v57 = vsel %vm480_vm5, %v1863_v44, %v1865_v0  ;;  %v1898_v5 = vsel %vm1867_vm7, %v1865_v0, 0  ;;  %v7026_v19 = vsel %vm3182_vm8, %v3206_v30, %v3208_v40  ;;  %8779 = vst [vmem:[#allocation13_spill] sm:$0xff] %v7042_v8 }
 0x345   : > { %v1896_v46 = vsel %vm1867_vm7, %v1866_v57, 0  ;;  %v7017_v45 = vand.u32 4294901760, %v1898_v5  ;;  %3114 = vmatpush.msra.mxu3 %v2572_v43  ;;  %8776 = vst [vmem:[#allocation9_spill] sm:$0xff] %v7026_v19  ;;  %v7030_v43 = vsub.f32 %v2524_v12, %v7019_v63  ;;  %v3912_v0 = vrot.slane %v6935_v4, 3 }
 0x346   : > { %v2026_v62 = vand.u32 4294901760, %v2025_v21  ;;  %v7015_v6 = vand.u32 4294901760, %v1896_v46  ;;  %v2526_v21 = vsel %vm1867_vm7, %v6713_v7, 0  ;;  %v8777_v57 = vrot.slane %v6853_v35, 3 }
 0x347   : > { %v2039_v29 = vsub.f32 %v1898_v5, %v7017_v45  ;;  %v3210_v30 = vrot.slane %v6981_v22, 2  ;;  %v8675_v12 = vand.u32 4294901760, %v7030_v43  ;;  %v7049_v7 = vsel %vm3888_vm6, %v3910_v36, %v3912_v0 }
 0x348   : > { %2027 = vmatmul.f32.gmra.mxu0 %v2026_v62  ;;  %2130 = vmatmul.f32.gmra.mxu1 %v7015_v6  ;;  %v2031_v44 = vsub.f32 %v1896_v46, %v7015_v6  ;;  %v7038_v46 = vsel %vm3888_vm6, %v8777_v57, %v3908_v56  ;;  %8780 = vst [vmem:[#allocation30_spill] sm:$0xff] %v7049_v7  ;;  %v3916_v57 = vrot.slane %v6981_v22, 3  ;;  %v2528_v36 = vsel %vm1867_vm7, %v6729_v34, 0 }
 0x349   : > { %8778 = vst [vmem:[#allocation14_spill] sm:$0xff] %v7038_v46  ;;  %v2040_v62 = vand.u32 4294901760, %v2039_v29  ;;  %v7054_v46 = vsel %vm3182_vm8, %v3208_v40, %v3210_v30  ;;  %v2577_v56 = vsub.f32 %v7030_v43, %v8675_v12  ;;  %v8676_v40 = vrot.slane %v7000_v14, 2 }
 0x34a   : > { %2230 = vmatmul.f32.gmra.mxu2 %v2031_v44  ;;  %v2032_v10 = vand.u32 4294901760, %v2031_v44  ;;  %8781 = vst [vmem:[#allocation31_spill] sm:$0xff] %v7054_v46  ;;  %v7073_v41 = vand.u32 4294901760, %v2528_v36 }
 0x34b   : > { %v2578_v12 = vand.u32 4294901760, %v2577_v56  ;;  %v7079_v34 = vsel %vm3182_vm8, %v3210_v30, %v8676_v40 }
 0x34c   : > { %2344 = vmatmul.f32.gmra.mxu3 %v2032_v10  ;;  %v2033_v51 = vsub.f32 %v2031_v44, %v2032_v10  ;;  %v7046_v44 = vand.u32 4294901760, %v2526_v21  ;;  %v3914_v10 = vrot.slane %v6956_v53, 3  ;;  %8784 = vst [vmem:[#allocation34_spill] sm:$0xff] %v7079_v34 }
 0x34e   : > { %v2034_v5 = vand.u32 4294901760, %v2033_v51  ;;  %v2041_v51 = vsub.f32 %v2039_v29, %v2040_v62  ;;  %v7065_v7 = vsel %vm3888_vm6, %v3912_v0, %v3914_v10 }
 0x34f   : > { %8782 = vst [vmem:[#allocation32_spill] sm:$0xff] %v7065_v7 }
 0x350   : > { %2035 = vmatmul.f32.gmra.mxu0 %v2034_v5  ;;  %2134 = vmatmul.f32.gmra.mxu1 %v7017_v45  ;;  %v7060_v5 = vsub.f32 %v2526_v21, %v7046_v44 }
 0x352   : > { %2235 = vmatmul.f32.gmra.mxu2 %v2039_v29  ;;  %v7068_v29 = vsel %vm3888_vm6, %v3914_v10, %v3916_v57  ;;  %v8677_v21 = vand.u32 4294901760, %v7060_v5  ;;  %v7086_v10 = vsub.f32 %v2528_v36, %v7073_v41 }
 0x353   : > { %8783 = vst [vmem:[#allocation33_spill] sm:$0xff] %v7068_v29 }
 0x354   : > { %2350 = vmatmul.f32.gmra.mxu3 %v2040_v62  ;;  %v2042_v62 = vand.u32 4294901760, %v2041_v51  ;;  %v2585_v0 = vsub.f32 %v7060_v5, %v8677_v21  ;;  %v8679_v21 = vand.u32 4294901760, %v7086_v10 }
 0x355   : > { %v2075_v8 = vpop.f32.mrf.mxu1 }
 0x356   : > { %v2586_v36 = vand.u32 4294901760, %v2585_v0 }
 0x358   : > { %2043 = vmatmul.f32.gmra.mxu0 %v2042_v62  ;;  %2460 = vmatmul.f32.vlgmr.msra.gmra.mxu1 %v6727_v2  ;;  %v2530_v62 = vsel %vm1867_vm7, %v6739_v37, 0  ;;  %v2593_v37 = vsub.f32 %v7086_v10, %v8679_v21 }
 0x359   : > { %v7098_v58 = vand.u32 4294901760, %v2530_v62 }
 0x35a   : > { %2579 = vmatmul.f32.vlgmr.msrb.gmra.mxu2 %v2578_v12  ;;  %v7093_v12 = vsel %vm3888_vm6, %v3916_v57, %v8678_v55 }
 0x35b   : > { %8785 = vst [vmem:[#allocation35_spill] sm:$0xff] %v7093_v12 }
 0x35c   : > { %2730 = vmatmul.f32.vlgmr.msrb.gmra.mxu3 %v7019_v63 }
 0x35d   : > { %v1924_v51 = vpop.f32.mrf.mxu0  ;;  %v2079_v56 = vpop.f32.mrf.mxu1 }
 0x35e   : > { %v2076_v30 = vadd.f32 %v2075_v8, %v1924_v51  ;;  %v2161_v40 = vpop.f32.mrf.mxu2  ;;  %v7107_v8 = vsub.f32 %v2530_v62, %v7098_v58 }
 0x35f   : > { %v2261_v29 = vpop.f32.mrf.mxu3 }
 0x360   : > { %v2162_v7 = vadd.f32 %v2161_v40, %v2076_v30  ;;  %2377 = vmatmul.f32.vlgmr.msra.gmra.mxu0 %v6727_v2  ;;  %2464 = vmatmul.f32.gmra.mxu1 %v6737_v1  ;;  %v2532_v40 = vsel %vm1867_vm7, %v6750_v32, 0  ;;  %v8680_v55 = vand.u32 4294901760, %v7107_v8 }
 0x361   : > { %v7114_v21 = vand.u32 4294901760, %v2532_v40 }
 0x362   : > { %v7100_v27 = vadd.f32 %v2261_v29, %v2162_v7  ;;  %2587 = vmatmul.f32.gmra.mxu2 %v2586_v36  ;;  %v8786_v29 = vld [vmem:[#allocation16_spill] sm:$0xff]  ;;  %v2594_v36 = vand.u32 4294901760, %v2593_v37  ;;  %v2601_v32 = vsub.f32 %v7107_v8, %v8680_v55  ;;  %v2534_v37 = vsel %vm1867_vm7, %v6765_v48, 0 }
 0x363   : > { %v7130_v55 = vand.u32 4294901760, %v2534_v37 }
 0x364   : > { %2734 = vmatmul.f32.gmra.mxu3 %v7046_v44 }
 0x365   : > { %v1932_v2 = vpop.f32.mrf.mxu0  ;;  %v2083_v57 = vpop.f32.mrf.mxu1 }
 0x366   : > { %v2080_v0 = vadd.f32 %v2079_v56, %v1932_v2  ;;  %v2166_v51 = vpop.f32.mrf.mxu2  ;;  %v7123_v56 = vsub.f32 %v2532_v40, %v7114_v21 }
 0x367   : > { %v2267_v30 = vpop.f32.mrf.mxu3 }
 0x368   : > { %v2167_v7 = vadd.f32 %v2166_v51, %v2080_v0  ;;  %2381 = vmatmul.f32.gmra.mxu0 %v6737_v1  ;;  %2468 = vmatmul.f32.gmra.mxu1 %v8786_v29 }
 0x36a   : > { %v7116_v62 = vadd.f32 %v2267_v30, %v2167_v7  ;;  %2595 = vmatmul.f32.gmra.mxu2 %v2594_v36  ;;  %v2602_v7 = vand.u32 4294901760, %v2601_v32  ;;  %v8681_v36 = vand.u32 4294901760, %v7123_v56  ;;  %v2536_v32 = vsel %vm1867_vm7, %v6784_v9, 0 }
 0x36c   : > { %2738 = vmatmul.f32.gmra.mxu3 %v7073_v41  ;;  %v2609_v48 = vsub.f32 %v7123_v56, %v8681_v36  ;;  %v7146_v36 = vand.u32 4294901760, %v2536_v32 }
 0x36d   : > { %v1940_v1 = vpop.f32.mrf.mxu0  ;;  %v2087_v2 = vpop.f32.mrf.mxu1 }
 0x36e   : > { %v2084_v0 = vadd.f32 %v2083_v57, %v1940_v1  ;;  %v2171_v51 = vpop.f32.mrf.mxu2  ;;  %v7139_v57 = vsub.f32 %v2534_v37, %v7130_v55 }
 0x36f   : > { %v2273_v12 = vpop.f32.mrf.mxu3 }
 0x370   : > { %v2172_v30 = vadd.f32 %v2171_v51, %v2084_v0  ;;  %2385 = vmatmul.f32.gmra.mxu0 %v8786_v29  ;;  %2472 = vmatmul.f32.gmra.mxu1 %v6762_v11 }
 0x372   : > { %v7132_v40 = vadd.f32 %v2273_v12, %v2172_v30  ;;  %2603 = vmatmul.f32.gmra.mxu2 %v2602_v7  ;;  %v2610_v30 = vand.u32 4294901760, %v2609_v48  ;;  %v8682_v7 = vand.u32 4294901760, %v7139_v57  ;;  %v2538_v48 = vsel %vm1867_vm7, %v6811_v18, 0 }
 0x374   : > { %2742 = vmatmul.f32.gmra.mxu3 %v7098_v58  ;;  %v2617_v9 = vsub.f32 %v7139_v57, %v8682_v7  ;;  %v7162_v7 = vand.u32 4294901760, %v2538_v48 }
 0x375   : > { %v1948_v29 = vpop.f32.mrf.mxu0  ;;  %v2091_v1 = vpop.f32.mrf.mxu1 }
 0x376   : > { %v2088_v0 = vadd.f32 %v2087_v2, %v1948_v29  ;;  %v2176_v51 = vpop.f32.mrf.mxu2  ;;  %v7155_v2 = vsub.f32 %v2536_v32, %v7146_v36 }
 0x377   : > { %v2279_v34 = vpop.f32.mrf.mxu3 }
 0x378   : > { %v2177_v12 = vadd.f32 %v2176_v51, %v2088_v0  ;;  %2389 = vmatmul.f32.gmra.mxu0 %v6762_v11  ;;  %2476 = vmatmul.f32.gmra.mxu1 %v6780_v42 }
 0x37a   : > { %v7148_v37 = vadd.f32 %v2279_v34, %v2177_v12  ;;  %2611 = vmatmul.f32.gmra.mxu2 %v2610_v30  ;;  %v2618_v12 = vand.u32 4294901760, %v2617_v9  ;;  %v8683_v30 = vand.u32 4294901760, %v7155_v2  ;;  %v2540_v9 = vsel %vm1867_vm7, %v6830_v33, 0 }
 0x37c   : > { %2746 = vmatmul.f32.gmra.mxu3 %v7114_v21  ;;  %v2625_v18 = vsub.f32 %v7155_v2, %v8683_v30  ;;  %v7178_v30 = vand.u32 4294901760, %v2540_v9 }
 0x37d   : > { %v1956_v11 = vpop.f32.mrf.mxu0  ;;  %v2095_v29 = vpop.f32.mrf.mxu1 }
 0x37e   : > { %v2092_v0 = vadd.f32 %v2091_v1, %v1956_v11  ;;  %v2181_v51 = vpop.f32.mrf.mxu2  ;;  %v7171_v1 = vsub.f32 %v2538_v48, %v7162_v7 }
 0x37f   : > { %v2285_v46 = vpop.f32.mrf.mxu3 }
 0x380   : > { %v2182_v34 = vadd.f32 %v2181_v51, %v2092_v0  ;;  %2393 = vmatmul.f32.gmra.mxu0 %v6780_v42  ;;  %2480 = vmatmul.f32.gmra.mxu1 %v6804_v25 }
 0x382   : > { %v7164_v32 = vadd.f32 %v2285_v46, %v2182_v34  ;;  %2619 = vmatmul.f32.gmra.mxu2 %v2618_v12  ;;  %v2626_v34 = vand.u32 4294901760, %v2625_v18  ;;  %v8684_v12 = vand.u32 4294901760, %v7171_v1  ;;  %v2542_v18 = vsel %vm1867_vm7, %v6853_v35, 0 }
 0x384   : > { %2750 = vmatmul.f32.gmra.mxu3 %v7130_v55  ;;  %v2633_v33 = vsub.f32 %v7171_v1, %v8684_v12  ;;  %v7194_v12 = vand.u32 4294901760, %v2542_v18 }
 0x385   : > { %v1964_v42 = vpop.f32.mrf.mxu0  ;;  %v2099_v11 = vpop.f32.mrf.mxu1 }
 0x386   : > { %v2096_v0 = vadd.f32 %v2095_v29, %v1964_v42  ;;  %v2186_v51 = vpop.f32.mrf.mxu2  ;;  %v7187_v29 = vsub.f32 %v2540_v9, %v7178_v30 }
 0x387   : > { %v2291_v19 = vpop.f32.mrf.mxu3 }
 0x388   : > { %v2187_v46 = vadd.f32 %v2186_v51, %v2096_v0  ;;  %2397 = vmatmul.f32.gmra.mxu0 %v6804_v25  ;;  %2484 = vmatmul.f32.gmra.mxu1 %v6826_v17 }
 0x38a   : > { %v7180_v48 = vadd.f32 %v2291_v19, %v2187_v46  ;;  %2627 = vmatmul.f32.gmra.mxu2 %v2626_v34  ;;  %v2634_v46 = vand.u32 4294901760, %v2633_v33  ;;  %v8685_v34 = vand.u32 4294901760, %v7187_v29  ;;  %v2544_v33 = vsel %vm1867_vm7, %v6881_v47, 0 }
 0x38c   : > { %2754 = vmatmul.f32.gmra.mxu3 %v7146_v36  ;;  %v2641_v35 = vsub.f32 %v7187_v29, %v8685_v34  ;;  %v7210_v34 = vand.u32 4294901760, %v2544_v33 }
 0x38d   : > { %v1972_v25 = vpop.f32.mrf.mxu0  ;;  %v2103_v42 = vpop.f32.mrf.mxu1 }
 0x38e   : > { %v2100_v0 = vadd.f32 %v2099_v11, %v1972_v25  ;;  %v2191_v51 = vpop.f32.mrf.mxu2  ;;  %v7203_v11 = vsub.f32 %v2542_v18, %v7194_v12 }
 0x38f   : > { %v2297_v50 = vpop.f32.mrf.mxu3 }
 0x390   : > { %v2192_v19 = vadd.f32 %v2191_v51, %v2100_v0  ;;  %2401 = vmatmul.f32.gmra.mxu0 %v6826_v17  ;;  %2488 = vmatmul.f32.gmra.mxu1 %v6849_v15 }
 0x392   : > { %v7196_v9 = vadd.f32 %v2297_v50, %v2192_v19  ;;  %2635 = vmatmul.f32.gmra.mxu2 %v2634_v46  ;;  %v2642_v19 = vand.u32 4294901760, %v2641_v35  ;;  %v8686_v46 = vand.u32 4294901760, %v7203_v11  ;;  %v2546_v35 = vsel %vm1867_vm7, %v6905_v59, 0 }
 0x394   : > { %2758 = vmatmul.f32.gmra.mxu3 %v7162_v7  ;;  %v2649_v47 = vsub.f32 %v7203_v11, %v8686_v46  ;;  %v7226_v46 = vand.u32 4294901760, %v2546_v35 }
 0x395   : > { %v1980_v17 = vpop.f32.mrf.mxu0  ;;  %v2107_v25 = vpop.f32.mrf.mxu1 }
 0x396   : > { %v2104_v0 = vadd.f32 %v2103_v42, %v1980_v17  ;;  %v2196_v51 = vpop.f32.mrf.mxu2  ;;  %v7219_v42 = vsub.f32 %v2544_v33, %v7210_v34 }
 0x397   : > { %v2303_v39 = vpop.f32.mrf.mxu3 }
 0x398   : > { %v2197_v50 = vadd.f32 %v2196_v51, %v2104_v0  ;;  %2405 = vmatmul.f32.gmra.mxu0 %v6849_v15  ;;  %2492 = vmatmul.f32.gmra.mxu1 %v6869_v38 }
 0x39a   : > { %v7212_v18 = vadd.f32 %v2303_v39, %v2197_v50  ;;  %2643 = vmatmul.f32.gmra.mxu2 %v2642_v19  ;;  %v2650_v50 = vand.u32 4294901760, %v2649_v47  ;;  %v8687_v19 = vand.u32 4294901760, %v7219_v42  ;;  %v2548_v47 = vsel %vm1867_vm7, %v6935_v4, 0 }
 0x39c   : > { %2762 = vmatmul.f32.gmra.mxu3 %v7178_v30  ;;  %v2657_v59 = vsub.f32 %v7219_v42, %v8687_v19  ;;  %v7242_v19 = vand.u32 4294901760, %v2548_v47 }
 0x39d   : > { %v1988_v15 = vpop.f32.mrf.mxu0  ;;  %v2111_v17 = vpop.f32.mrf.mxu1 }
 0x39e   : > { %v2108_v0 = vadd.f32 %v2107_v25, %v1988_v15  ;;  %v2201_v51 = vpop.f32.mrf.mxu2  ;;  %v7235_v25 = vsub.f32 %v2546_v35, %v7226_v46 }
 0x39f   : > { %v2309_v54 = vpop.f32.mrf.mxu3 }
 0x3a0   : > { %v2202_v39 = vadd.f32 %v2201_v51, %v2108_v0  ;;  %2409 = vmatmul.f32.gmra.mxu0 %v6869_v38  ;;  %2496 = vmatmul.f32.gmra.mxu1 %v6896_v13 }
 0x3a2   : > { %v7228_v33 = vadd.f32 %v2309_v54, %v2202_v39  ;;  %2651 = vmatmul.f32.gmra.mxu2 %v2650_v50  ;;  %v2658_v39 = vand.u32 4294901760, %v2657_v59  ;;  %v8688_v50 = vand.u32 4294901760, %v7235_v25  ;;  %v2550_v59 = vsel %vm1867_vm7, %v6956_v53, 0 }
 0x3a4   : > { %2766 = vmatmul.f32.gmra.mxu3 %v7194_v12  ;;  %v2665_v4 = vsub.f32 %v7235_v25, %v8688_v50  ;;  %v7258_v50 = vand.u32 4294901760, %v2550_v59 }
 0x3a5   : > { %v1996_v38 = vpop.f32.mrf.mxu0  ;;  %v2115_v15 = vpop.f32.mrf.mxu1 }
 0x3a6   : > { %v2112_v0 = vadd.f32 %v2111_v17, %v1996_v38  ;;  %v2206_v51 = vpop.f32.mrf.mxu2  ;;  %v7251_v17 = vsub.f32 %v2548_v47, %v7242_v19 }
 0x3a7   : > { %v2315_v23 = vpop.f32.mrf.mxu3 }
 0x3a8   : > { %v2207_v54 = vadd.f32 %v2206_v51, %v2112_v0  ;;  %2413 = vmatmul.f32.gmra.mxu0 %v6896_v13  ;;  %2500 = vmatmul.f32.gmra.mxu1 %v6929_v16 }
 0x3aa   : > { %v7244_v35 = vadd.f32 %v2315_v23, %v2207_v54  ;;  %2659 = vmatmul.f32.gmra.mxu2 %v2658_v39  ;;  %v2666_v54 = vand.u32 4294901760, %v2665_v4  ;;  %v8689_v39 = vand.u32 4294901760, %v7251_v17  ;;  %v2552_v4 = vsel %vm1867_vm7, %v6981_v22, 0 }
 0x3ac   : > { %2770 = vmatmul.f32.gmra.mxu3 %v7210_v34  ;;  %v2673_v53 = vsub.f32 %v7251_v17, %v8689_v39  ;;  %v7274_v39 = vand.u32 4294901760, %v2552_v4 }
 0x3ad   : > { %v2004_v13 = vpop.f32.mrf.mxu0  ;;  %v2119_v38 = vpop.f32.mrf.mxu1 }
 0x3ae   : > { %v2116_v0 = vadd.f32 %v2115_v15, %v2004_v13  ;;  %v2211_v51 = vpop.f32.mrf.mxu2  ;;  %v7267_v15 = vsub.f32 %v2550_v59, %v7258_v50 }
 0x3af   : > { %v2321_v31 = vpop.f32.mrf.mxu3 }
 0x3b0   : > { %v2212_v23 = vadd.f32 %v2211_v51, %v2116_v0  ;;  %2417 = vmatmul.f32.gmra.mxu0 %v6929_v16  ;;  %2504 = vmatmul.f32.gmra.mxu1 %v6952_v20 }
 0x3b2   : > { %v7260_v47 = vadd.f32 %v2321_v31, %v2212_v23  ;;  %2667 = vmatmul.f32.gmra.mxu2 %v2666_v54  ;;  %v2674_v23 = vand.u32 4294901760, %v2673_v53  ;;  %v8690_v54 = vand.u32 4294901760, %v7267_v15  ;;  %v2554_v53 = vsel %vm1867_vm7, %v7000_v14, 0 }
 0x3b4   : > { %2774 = vmatmul.f32.gmra.mxu3 %v7226_v46  ;;  %v2681_v22 = vsub.f32 %v7267_v15, %v8690_v54  ;;  %v7290_v54 = vand.u32 4294901760, %v2554_v53 }
 0x3b5   : > { %v2012_v16 = vpop.f32.mrf.mxu0  ;;  %v2123_v13 = vpop.f32.mrf.mxu1 }
 0x3b6   : > { %v2120_v0 = vadd.f32 %v2119_v38, %v2012_v16  ;;  %v2216_v51 = vpop.f32.mrf.mxu2  ;;  %v7283_v38 = vsub.f32 %v2552_v4, %v7274_v39 }
 0x3b7   : > { %v2327_v61 = vpop.f32.mrf.mxu3 }
 0x3b8   : > { %v2217_v31 = vadd.f32 %v2216_v51, %v2120_v0  ;;  %2421 = vmatmul.f32.gmra.mxu0 %v6952_v20  ;;  %2508 = vmatmul.f32.gmra.mxu1 %v6969_v60 }
 0x3ba   : > { %v7276_v59 = vadd.f32 %v2327_v61, %v2217_v31  ;;  %2675 = vmatmul.f32.gmra.mxu2 %v2674_v23  ;;  %v2682_v31 = vand.u32 4294901760, %v2681_v22  ;;  %v8693_v23 = vand.u32 4294901760, %v7283_v38 }
 0x3bc   : > { %2778 = vmatmul.f32.gmra.mxu3 %v7242_v19 }
 0x3bd   : > { %v2020_v20 = vpop.f32.mrf.mxu0  ;;  %v2127_v16 = vpop.f32.mrf.mxu1 }
 0x3be   : > { %v2124_v0 = vadd.f32 %v2123_v13, %v2020_v20  ;;  %v2221_v51 = vpop.f32.mrf.mxu2  ;;  %v2689_v13 = vsub.f32 %v7283_v38, %v8693_v23  ;;  %v7299_v20 = vsub.f32 %v2554_v53, %v7290_v54 }
 0x3bf   : > { %v2333_v28 = vpop.f32.mrf.mxu3 }
 0x3c0   : > { %v2222_v61 = vadd.f32 %v2221_v51, %v2124_v0  ;;  %2425 = vmatmul.f32.gmra.mxu0 %v6969_v60  ;;  %2512 = vmatmul.f32.gmra.mxu1 %v6994_v52 }
 0x3c2   : > { %v7292_v4 = vadd.f32 %v2333_v28, %v2222_v61  ;;  %2683 = vmatmul.f32.gmra.mxu2 %v2682_v31  ;;  %v2690_v28 = vand.u32 4294901760, %v2689_v13  ;;  %v8694_v61 = vand.u32 4294901760, %v7299_v20 }
 0x3c4   : > { %2782 = vmatmul.f32.gmra.mxu3 %v7258_v50  ;;  %v2697_v53 = vsub.f32 %v7299_v20, %v8694_v61 }
 0x3c5   : > { %v2028_v60 = vpop.f32.mrf.mxu0  ;;  %v2131_v0 = vpop.f32.mrf.mxu1 }
 0x3c6   : > { %v2128_v51 = vadd.f32 %v2127_v16, %v2028_v60  ;;  %v2226_v22 = vpop.f32.mrf.mxu2  ;;  %v2698_v13 = vand.u32 4294901760, %v2697_v53 }
 0x3c7   : > { %v2339_v14 = vpop.f32.mrf.mxu3 }
 0x3c8   : > { %v2227_v3 = vadd.f32 %v2226_v22, %v2128_v51  ;;  %2429 = vmatmul.f32.gmra.mxu0 %v6994_v52  ;;  %2516 = vmatmul.f32.gmra.mxu1 %v7015_v6 }
 0x3ca   : > { %v7304_v31 = vadd.f32 %v2339_v14, %v2227_v3  ;;  %2691 = vmatmul.f32.gmra.mxu2 %v2690_v28 }
 0x3cc   : > { %2786 = vmatmul.f32.gmra.mxu3 %v7274_v39 }
 0x3cd   : > { %v2036_v16 = vpop.f32.mrf.mxu0  ;;  %v2135_v60 = vpop.f32.mrf.mxu1 }
 0x3ce   : > { %v2132_v23 = vadd.f32 %v2131_v0, %v2036_v16  ;;  %v2231_v51 = vpop.f32.mrf.mxu2 }
 0x3cf   : > { %v2345_v22 = vpop.f32.mrf.mxu3 }
 0x3d0   : > { %v2232_v52 = vadd.f32 %v2231_v51, %v2132_v23  ;;  %2433 = vmatmul.f32.gmra.mxu0 %v7015_v6  ;;  %2520 = vmatmul.f32.gmra.mxu1 %v7017_v45  ;;  %v8787_v23 = vand.u32 4294901760, %v7030_v43 }
 0x3d2   : > { %v7312_v3 = vadd.f32 %v2345_v22, %v2232_v52  ;;  %2699 = vmatmul.f32.gmra.mxu2 %v2698_v13 }
 0x3d4   : > { %2790 = vmatmul.f32.gmra.mxu3 %v7290_v54 }
 0x3d5   : > { %v2044_v14 = vpop.f32.mrf.mxu0  ;;  %v2461_v28 = vpop.f32.mrf.mxu1 }
 0x3d6   : > { %v2136_v24 = vadd.f32 %v2135_v60, %v2044_v14  ;;  %v2236_v61 = vpop.f32.mrf.mxu2 }
 0x3d7   : > { %v2351_v49 = vpop.f32.mrf.mxu3 }
 0x3d8   : > { %v2237_v26 = vadd.f32 %v2236_v61, %v2136_v24  ;;  %2437 = vmatmul.f32.gmra.mxu0 %v7017_v45  ;;  %2916 = vmatmul.f32.vlgmr.msrb.gmra.mxu1 %v8787_v23  ;;  %v8788_v24 = vand.u32 4294901760, %v7060_v5 }
 0x3da   : > { %v7318_v6 = vadd.f32 %v2351_v49, %v2237_v26  ;;  %3033 = vmatmul.f32.vlgmr.msra.gmra.mxu2 %v7019_v63 }
 0x3dc   : > { %3116 = vmatmul.f32.vlgmr.msra.gmra.mxu3 %v7019_v63 }
 0x3dd   : > { %v2378_v0 = vpop.f32.mrf.mxu0  ;;  %v2465_v53 = vpop.f32.mrf.mxu1 }
 0x3de   : > { %v2379_v16 = vadd.f32 %v2378_v0, %v7100_v27  ;;  %v2580_v51 = vpop.f32.mrf.mxu2 }
 0x3df   : > { %v2731_v60 = vpop.f32.mrf.mxu3 }
 0x3e0   : > { %v2462_v22 = vadd.f32 %v2461_v28, %v2379_v16  ;;  %2816 = vmatmul.f32.vlgmr.msrb.gmra.mxu0 %v7030_v43  ;;  %2922 = vmatmul.f32.gmra.mxu1 %v8788_v24  ;;  %v8789_v43 = vand.u32 4294901760, %v7086_v10 }
 0x3e2   : > { %v2581_v45 = vadd.f32 %v2580_v51, %v2462_v22  ;;  %3037 = vmatmul.f32.gmra.mxu2 %v7046_v44 }
 0x3e4   : > { %v7327_v26 = vadd.f32 %v2731_v60, %v2581_v45  ;;  %3120 = vmatmul.f32.gmra.mxu3 %v7046_v44 }
 0x3e5   : > { %v2382_v49 = vpop.f32.mrf.mxu0  ;;  %v2469_v63 = vpop.f32.mrf.mxu1 }
 0x3e6   : > { %v2383_v61 = vadd.f32 %v2382_v49, %v7116_v62  ;;  %v2588_v27 = vpop.f32.mrf.mxu2 }
 0x3e7   : > { %v2735_v52 = vpop.f32.mrf.mxu3 }
 0x3e8   : > { %v2466_v13 = vadd.f32 %v2465_v53, %v2383_v61  ;;  %2821 = vmatmul.f32.gmra.mxu0 %v7060_v5  ;;  %2928 = vmatmul.f32.gmra.mxu1 %v8789_v43  ;;  %v8790_v5 = vand.u32 4294901760, %v7107_v8 }
 0x3ea   : > { %v2589_v14 = vadd.f32 %v2588_v27, %v2466_v13  ;;  %3041 = vmatmul.f32.gmra.mxu2 %v7073_v41 }
 0x3ec   : > { %v7335_v28 = vadd.f32 %v2735_v52, %v2589_v14  ;;  %3124 = vmatmul.f32.gmra.mxu3 %v7073_v41 }
 0x3ed   : > { %v2386_v44 = vpop.f32.mrf.mxu0  ;;  %v2473_v23 = vpop.f32.mrf.mxu1 }
 0x3ee   : > { %v2387_v0 = vadd.f32 %v2386_v44, %v7132_v40  ;;  %v2596_v62 = vpop.f32.mrf.mxu2 }
 0x3ef   : > { %v2739_v16 = vpop.f32.mrf.mxu3 }
 0x3f0   : > { %v2470_v51 = vadd.f32 %v2469_v63, %v2387_v0  ;;  %2826 = vmatmul.f32.gmra.mxu0 %v7086_v10  ;;  %2934 = vmatmul.f32.gmra.mxu1 %v8790_v5  ;;  %v8791_v10 = vand.u32 4294901760, %v7123_v56 }
 0x3f2   : > { %v2597_v53 = vadd.f32 %v2596_v62, %v2470_v51  ;;  %3045 = vmatmul.f32.gmra.mxu2 %v7098_v58 }
 0x3f4   : > { %v7343_v60 = vadd.f32 %v2739_v16, %v2597_v53  ;;  %3128 = vmatmul.f32.gmra.mxu3 %v7098_v58 }
 0x3f5   : > { %v2390_v41 = vpop.f32.mrf.mxu0  ;;  %v2477_v22 = vpop.f32.mrf.mxu1 }
 0x3f6   : > { %v2391_v24 = vadd.f32 %v2390_v41, %v7148_v37  ;;  %v2604_v40 = vpop.f32.mrf.mxu2 }
 0x3f7   : > { %v2743_v45 = vpop.f32.mrf.mxu3 }
 0x3f8   : > { %v2474_v49 = vadd.f32 %v2473_v23, %v2391_v24  ;;  %2831 = vmatmul.f32.gmra.mxu0 %v7107_v8  ;;  %2940 = vmatmul.f32.gmra.mxu1 %v8791_v10  ;;  %v8792_v8 = vand.u32 4294901760, %v7139_v57 }
 0x3fa   : > { %v2605_v63 = vadd.f32 %v2604_v40, %v2474_v49  ;;  %3049 = vmatmul.f32.gmra.mxu2 %v7114_v21 }
 0x3fc   : > { %v7351_v61 = vadd.f32 %v2743_v45, %v2605_v63  ;;  %3132 = vmatmul.f32.gmra.mxu3 %v7114_v21 }
 0x3fd   : > { %v2394_v58 = vpop.f32.mrf.mxu0  ;;  %v2481_v27 = vpop.f32.mrf.mxu1 }
 0x3fe   : > { %v2395_v52 = vadd.f32 %v2394_v58, %v7164_v32  ;;  %v2612_v37 = vpop.f32.mrf.mxu2 }
 0x3ff   : > { %v2747_v13 = vpop.f32.mrf.mxu3 }
 0x400   : > { %v2478_v43 = vadd.f32 %v2477_v22, %v2395_v52  ;;  %2836 = vmatmul.f32.gmra.mxu0 %v7123_v56  ;;  %2946 = vmatmul.f32.gmra.mxu1 %v8792_v8  ;;  %v8793_v56 = vand.u32 4294901760, %v7155_v2 }
 0x402   : > { %v2613_v14 = vadd.f32 %v2612_v37, %v2478_v43  ;;  %3053 = vmatmul.f32.gmra.mxu2 %v7130_v55 }
 0x404   : > { %v7359_v44 = vadd.f32 %v2747_v13, %v2613_v14  ;;  %3136 = vmatmul.f32.gmra.mxu3 %v7130_v55 }
 0x405   : > { %v2398_v21 = vpop.f32.mrf.mxu0  ;;  %v2485_v23 = vpop.f32.mrf.mxu1 }
 0x406   : > { %v2399_v0 = vadd.f32 %v2398_v21, %v7180_v48  ;;  %v2620_v32 = vpop.f32.mrf.mxu2 }
 0x407   : > { %v2751_v62 = vpop.f32.mrf.mxu3 }
 0x408   : > { %v2482_v16 = vadd.f32 %v2481_v27, %v2399_v0  ;;  %2841 = vmatmul.f32.gmra.mxu0 %v7139_v57  ;;  %2952 = vmatmul.f32.gmra.mxu1 %v8793_v56  ;;  %v8794_v57 = vand.u32 4294901760, %v7171_v1 }
 0x40a   : > { %v2621_v51 = vadd.f32 %v2620_v32, %v2482_v16  ;;  %3057 = vmatmul.f32.gmra.mxu2 %v7146_v36 }
 0x40c   : > { %v7367_v5 = vadd.f32 %v2751_v62, %v2621_v51  ;;  %3140 = vmatmul.f32.gmra.mxu3 %v7146_v36 }
 0x40d   : > { %v2402_v55 = vpop.f32.mrf.mxu0  ;;  %v2489_v53 = vpop.f32.mrf.mxu1 }
 0x40e   : > { %v2403_v41 = vadd.f32 %v2402_v55, %v7196_v9  ;;  %v2628_v48 = vpop.f32.mrf.mxu2 }
 0x40f   : > { %v2755_v22 = vpop.f32.mrf.mxu3 }
 0x410   : > { %v2486_v24 = vadd.f32 %v2485_v23, %v2403_v41  ;;  %2846 = vmatmul.f32.gmra.mxu0 %v7155_v2  ;;  %2958 = vmatmul.f32.gmra.mxu1 %v8794_v57  ;;  %v8795_v2 = vand.u32 4294901760, %v7187_v29 }
 0x412   : > { %v2629_v40 = vadd.f32 %v2628_v48, %v2486_v24  ;;  %3061 = vmatmul.f32.gmra.mxu2 %v7162_v7 }
 0x414   : > { %v7375_v45 = vadd.f32 %v2755_v22, %v2629_v40  ;;  %3144 = vmatmul.f32.gmra.mxu3 %v7162_v7 }
 0x415   : > { %v2406_v36 = vpop.f32.mrf.mxu0  ;;  %v2493_v49 = vpop.f32.mrf.mxu1 }
 0x416   : > { %v2407_v10 = vadd.f32 %v2406_v36, %v7212_v18  ;;  %v2636_v9 = vpop.f32.mrf.mxu2  ;;  %v8798_v36 = vand.u32 4294901760, %v7235_v25 }
 0x417   : > { %v2759_v63 = vpop.f32.mrf.mxu3 }
 0x418   : > { %v2490_v58 = vadd.f32 %v2489_v53, %v2407_v10  ;;  %2851 = vmatmul.f32.gmra.mxu0 %v7171_v1  ;;  %2964 = vmatmul.f32.gmra.mxu1 %v8795_v2  ;;  %v8796_v1 = vand.u32 4294901760, %v7203_v11 }
 0x41a   : > { %v2637_v27 = vadd.f32 %v2636_v9, %v2490_v58  ;;  %3065 = vmatmul.f32.gmra.mxu2 %v7178_v30 }
 0x41c   : > { %v7383_v52 = vadd.f32 %v2759_v63, %v2637_v27  ;;  %3148 = vmatmul.f32.gmra.mxu3 %v7178_v30  ;;  %v3181_v30 = vld [vmem:[%s8658_s4 + $0x28] sm:$0xff] }
 0x41d   : > { %v2410_v7 = vpop.f32.mrf.mxu0  ;;  %v2497_v37 = vpop.f32.mrf.mxu1  ;;  %v7397_v0 = vand.u32 4294901760, %v3181_v30 }
 0x41e   : > { %v2411_v13 = vadd.f32 %v2410_v7, %v7228_v33  ;;  %v2644_v18 = vpop.f32.mrf.mxu2 }
 0x41f   : > { %v2763_v43 = vpop.f32.mrf.mxu3  ;;  %v3408_v16 = vsub.f32 %v3181_v30, %v7397_v0  ;;  %3261 = vmatpush.msra.mxu0 %v7397_v0  ;;  %3600 = vmatpush.msrb.mxu3 %v7397_v0 }
 0x420   : > { %v2494_v8 = vadd.f32 %v2493_v49, %v2411_v13  ;;  %2856 = vmatmul.f32.gmra.mxu0 %v7187_v29  ;;  %2970 = vmatmul.f32.gmra.mxu1 %v8796_v1 }
 0x421   : > { %3500 = vmatpush.msrb.mxu2 %v3408_v16  ;;  %v3409_v51 = vand.u32 4294901760, %v3408_v16 }
 0x422   : > { %v2645_v14 = vadd.f32 %v2644_v18, %v2494_v8  ;;  %3069 = vmatmul.f32.gmra.mxu2 %v7194_v12 }
 0x424   : > { %v7391_v21 = vadd.f32 %v2763_v43, %v2645_v14  ;;  %3152 = vmatmul.f32.gmra.mxu3 %v7194_v12  ;;  %v8797_v12 = vand.u32 4294901760, %v7219_v42  ;;  %v8800_v14 = vand.u32 4294901760, %v7267_v15 }
 0x425   : > { %v2414_v33 = vpop.f32.mrf.mxu0  ;;  %v2501_v23 = vpop.f32.mrf.mxu1 }
 0x426   : > { %v2415_v29 = vadd.f32 %v2414_v33, %v7244_v35  ;;  %v2652_v32 = vpop.f32.mrf.mxu2  ;;  %v3410_v35 = vsub.f32 %v3408_v16, %v3409_v51 }
 0x427   : > { %v2767_v62 = vpop.f32.mrf.mxu3 }
 0x428   : > { %v2498_v56 = vadd.f32 %v2497_v37, %v2415_v29  ;;  %2861 = vmatmul.f32.gmra.mxu0 %v7203_v11  ;;  %2976 = vmatmul.f32.gmra.mxu1 %v8797_v12  ;;  %v3411_v22 = vand.u32 4294901760, %v3410_v35  ;;  %v8801_v12 = vand.u32 4294901760, %v7283_v38 }
 0x42a   : > { %v2653_v55 = vadd.f32 %v2652_v32, %v2498_v56  ;;  %3073 = vmatmul.f32.gmra.mxu2 %v7210_v34  ;;  %3412 = vmatpush.msra.mxu1 %v3411_v22 }
 0x42c   : > { %v7407_v53 = vadd.f32 %v2767_v62, %v2653_v55  ;;  %3156 = vmatmul.f32.gmra.mxu3 %v7210_v34 }
 0x42d   : > { %v2418_v41 = vpop.f32.mrf.mxu0  ;;  %v2505_v48 = vpop.f32.mrf.mxu1 }
 0x42e   : > { %v2419_v24 = vadd.f32 %v2418_v41, %v7260_v47  ;;  %v2660_v57 = vpop.f32.mrf.mxu2 }
 0x42f   : > { %v2771_v11 = vpop.f32.mrf.mxu3 }
 0x430   : > { %v2502_v40 = vadd.f32 %v2501_v23, %v2419_v24  ;;  %2866 = vmatmul.f32.gmra.mxu0 %v7219_v42  ;;  %2982 = vmatmul.f32.gmra.mxu1 %v8798_v36  ;;  %v8799_v42 = vand.u32 4294901760, %v7251_v17 }
 0x432   : > { %v2661_v49 = vadd.f32 %v2660_v57, %v2502_v40  ;;  %3077 = vmatmul.f32.gmra.mxu2 %v7226_v46  ;;  %v8803_v57 = vand.u32 4294901760, %v7299_v20 }
 0x434   : > { %v7415_v10 = vadd.f32 %v2771_v11, %v2661_v49  ;;  %3160 = vmatmul.f32.gmra.mxu3 %v7226_v46  ;;  %v3180_v46 = vld [vmem:[%s8658_s4 + $0x20] sm:$0xff] }
 0x435   : > { %v2422_v34 = vpop.f32.mrf.mxu0  ;;  %v2509_v9 = vpop.f32.mrf.mxu1  ;;  %v3262_v13 = vand.u32 4294901760, %v3180_v46 }
 0x436   : > { %v2423_v47 = vadd.f32 %v2422_v34, %v7276_v59  ;;  %v2668_v63 = vpop.f32.mrf.mxu2 }
 0x437   : > { %v2775_v58 = vpop.f32.mrf.mxu3  ;;  %v3414_v8 = vsub.f32 %v3180_v46, %v3262_v13  ;;  %3602 = vmatpush.msrb.mxu3 %v3262_v13  ;;  %3263 = vmatpush.msra.mxu0 %v3262_v13 }
 0x438   : > { %v2506_v2 = vadd.f32 %v2505_v48, %v2423_v47  ;;  %2871 = vmatmul.f32.gmra.mxu0 %v7235_v25  ;;  %2988 = vmatmul.f32.gmra.mxu1 %v8799_v42 }
 0x439   : > { %3503 = vmatpush.msrb.mxu2 %v3414_v8  ;;  %3717 = vmatpush.msrb.mxu0 %v3409_v51 }
 0x43a   : > { %v2669_v27 = vadd.f32 %v2668_v63, %v2506_v2  ;;  %3081 = vmatmul.f32.gmra.mxu2 %v7242_v19 }
 0x43c   : > { %v7423_v7 = vadd.f32 %v2775_v58, %v2669_v27  ;;  %3164 = vmatmul.f32.gmra.mxu3 %v7242_v19  ;;  %v3415_v19 = vand.u32 4294901760, %v3414_v8 }
 0x43d   : > { %v2426_v59 = vpop.f32.mrf.mxu0  ;;  %v2513_v37 = vpop.f32.mrf.mxu1 }
 0x43e   : > { %v2427_v18 = vadd.f32 %v2426_v59, %v7292_v4  ;;  %v2676_v25 = vpop.f32.mrf.mxu2  ;;  %v3416_v33 = vsub.f32 %v3414_v8, %v3415_v19  ;;  %3721 = vmatpush.msrb.mxu0 %v3415_v19 }
 0x43f   : > { %v2779_v43 = vpop.f32.mrf.mxu3 }
 0x440   : > { %v2510_v1 = vadd.f32 %v2509_v9, %v2427_v18  ;;  %2876 = vmatmul.f32.gmra.mxu0 %v7251_v17  ;;  %2994 = vmatmul.f32.gmra.mxu1 %v8800_v14  ;;  %v3417_v32 = vand.u32 4294901760, %v3416_v33 }
 0x442   : > { %v2677_v30 = vadd.f32 %v2676_v25, %v2510_v1  ;;  %3085 = vmatmul.f32.gmra.mxu2 %v7258_v50  ;;  %3418 = vmatpush.msra.mxu1 %v3417_v32 }
 0x444   : > { %v7434_v4 = vadd.f32 %v2779_v43, %v2677_v30  ;;  %3168 = vmatmul.f32.gmra.mxu3 %v7258_v50  ;;  %3802 = vmatpush.msrb.mxu1 %v7397_v0  ;;  %v8802_v50 = vld [vmem:[#allocation17_spill] sm:$0xff] }
 0x445   : > { %v2430_v23 = vpop.f32.mrf.mxu0  ;;  %v2517_v29 = vpop.f32.mrf.mxu1  ;;  %v3214_v55 = vsel %vm1867_vm7, %v8802_v50, 0 }
 0x446   : > { %v2431_v17 = vadd.f32 %v2430_v23, %v7304_v31  ;;  %v2684_v62 = vpop.f32.mrf.mxu2  ;;  %3804 = vmatpush.msrb.mxu1 %v3262_v13  ;;  %v7449_v22 = vand.u32 4294901760, %v3214_v55  ;;  %v8806_v23 = vld [vmem:[#allocation22_spill] sm:$0xff] }
 0x447   : > { %v2783_v16 = vpop.f32.mrf.mxu3 }
 0x448   : > { %v2514_v56 = vadd.f32 %v2513_v37, %v2431_v17  ;;  %2881 = vmatmul.f32.gmra.mxu0 %v7267_v15  ;;  %3000 = vmatmul.f32.gmra.mxu1 %v8801_v12  ;;  %v3265_v40 = vsub.f32 %v3214_v55, %v7449_v22 }
 0x44a   : > { %v2685_v51 = vadd.f32 %v2684_v62, %v2514_v56  ;;  %3089 = vmatmul.f32.gmra.mxu2 %v7274_v39  ;;  %v3266_v47 = vand.u32 4294901760, %v3265_v40 }
 0x44c   : > { %v7445_v35 = vadd.f32 %v2783_v16, %v2685_v51  ;;  %3172 = vmatmul.f32.gmra.mxu3 %v7274_v39  ;;  %v8804_v39 = vld [vmem:[#allocation18_spill] sm:$0xff]  ;;  %v3267_v27 = vsub.f32 %v3265_v40, %v3266_v47 }
 0x44d   : > { %v2434_v31 = vpop.f32.mrf.mxu0  ;;  %v2521_v41 = vpop.f32.mrf.mxu1  ;;  %v3216_v36 = vsel %vm1867_vm7, %v8804_v39, 0 }
 0x44e   : > { %v2435_v15 = vadd.f32 %v2434_v31, %v7312_v3  ;;  %v2692_v48 = vpop.f32.mrf.mxu2  ;;  %v7462_v63 = vand.u32 4294901760, %v3216_v36  ;;  %v3268_v43 = vand.u32 4294901760, %v3267_v27 }
 0x44f   : > { %v2787_v24 = vpop.f32.mrf.mxu3 }
 0x450   : > { %v2518_v0 = vadd.f32 %v2517_v29, %v2435_v15  ;;  %2886 = vmatmul.f32.gmra.mxu0 %v7283_v38  ;;  %3006 = vmatmul.f32.gmra.mxu1 %v8803_v57  ;;  %v3273_v46 = vsub.f32 %v3216_v36, %v7462_v63  ;;  %v3220_v29 = vsel %vm1867_vm7, %v8806_v23, 0 }
 0x451   : > { %v7481_v51 = vand.u32 4294901760, %v3220_v29 }
 0x452   : > { %v2693_v11 = vadd.f32 %v2692_v48, %v2518_v0  ;;  %3093 = vmatmul.f32.gmra.mxu2 %v7290_v54  ;;  %v8807_v48 = vld [vmem:[#allocation24_spill] sm:$0xff] }
 0x453   : > { %v3289_v15 = vsub.f32 %v3220_v29, %v7481_v51 }
 0x454   : > { %v7458_v49 = vadd.f32 %v2787_v24, %v2693_v11  ;;  %3176 = vmatmul.f32.gmra.mxu3 %v7290_v54  ;;  %v8805_v54 = vld [vmem:[#allocation20_spill] sm:$0xff]  ;;  %v3222_v24 = vsel %vm1867_vm7, %v8807_v48, 0 }
 0x455   : > { %v2438_v3 = vpop.f32.mrf.mxu0  ;;  %v2917_v34 = vpop.f32.mrf.mxu1  ;;  %v3218_v59 = vsel %vm1867_vm7, %v8805_v54, 0  ;;  %v3290_v36 = vand.u32 4294901760, %v3289_v15 }
 0x456   : > { %v2439_v9 = vadd.f32 %v2438_v3, %v7318_v6  ;;  %v2700_v38 = vpop.f32.mrf.mxu2  ;;  %v7472_v8 = vand.u32 4294901760, %v3218_v59  ;;  %v7490_v3 = vand.u32 4294901760, %v3222_v24 }
 0x457   : > { %v2791_v58 = vpop.f32.mrf.mxu3 }
 0x458   : > { %v2522_v2 = vadd.f32 %v2521_v41, %v2439_v9  ;;  %2891 = vmatmul.f32.gmra.mxu0 %v7299_v20  ;;  %3420 = vmatmul.f32.vlgmr.msra.gmra.mxu1 %v7449_v22  ;;  %v3274_v20 = vand.u32 4294901760, %v3273_v46  ;;  %v3281_v33 = vsub.f32 %v3218_v59, %v7472_v8 }
 0x45a   : > { %v2701_v42 = vadd.f32 %v2700_v38, %v2522_v2  ;;  %3506 = vmatmul.f32.vlgmr.msrb.gmra.mxu2 %v3265_v40  ;;  %v3275_v30 = vsub.f32 %v3273_v46, %v3274_v20  ;;  %v3282_v12 = vand.u32 4294901760, %v3281_v33  ;;  %v8808_v2 = vld [vmem:[#allocation25_spill] sm:$0xff] }
 0x45c   : > { %v7469_v37 = vadd.f32 %v2791_v58, %v2701_v42  ;;  %3606 = vmatmul.f32.vlgmr.msrb.gmra.mxu3 %v3266_v47  ;;  %v3276_v56 = vand.u32 4294901760, %v3275_v30  ;;  %v3283_v41 = vsub.f32 %v3281_v33, %v3282_v12  ;;  %v3291_v47 = vsub.f32 %v3289_v15, %v3290_v36 }
 0x45d   : > { %v2817_v6 = vpop.f32.mrf.mxu0  ;;  %v2923_v13 = vpop.f32.mrf.mxu1  ;;  %v3297_v58 = vsub.f32 %v3222_v24, %v7490_v3  ;;  %v3224_v42 = vsel %vm1867_vm7, %v8808_v2, 0 }
 0x45e   : > { %v2818_v18 = vadd.f32 %v2817_v6, %v7327_v26  ;;  %v3034_v25 = vpop.f32.mrf.mxu2  ;;  %v3284_v39 = vand.u32 4294901760, %v3283_v41  ;;  %v3292_v6 = vand.u32 4294901760, %v3291_v47  ;;  %v8810_v41 = vld [vmem:[#allocation4_spill] sm:$0xff] }
 0x45f   : > { %v3117_v1 = vpop.f32.mrf.mxu3 }
 0x460   : > { %v2918_v14 = vadd.f32 %v2917_v34, %v2818_v18  ;;  %3269 = vmatmul.f32.vlgmr.msra.gmra.mxu0 %v3268_v43  ;;  %3424 = vmatmul.f32.gmra.mxu1 %v7462_v63  ;;  %v7499_v18 = vand.u32 4294901760, %v3224_v42 }
 0x462   : > { %v3035_v19 = vadd.f32 %v3034_v25, %v2918_v14  ;;  %3511 = vmatmul.f32.gmra.mxu2 %v3273_v46  ;;  %v3305_v14 = vsub.f32 %v3224_v42, %v7499_v18 }
 0x464   : > { %v7478_v32 = vadd.f32 %v3117_v1, %v3035_v19  ;;  %3612 = vmatmul.f32.gmra.mxu3 %v3274_v20  ;;  %v8809_v19 = vld [vmem:[#allocation28_spill] sm:$0xff] }
 0x465   : > { %v2822_v26 = vpop.f32.mrf.mxu0  ;;  %v2929_v17 = vpop.f32.mrf.mxu1  ;;  %v3226_v30 = vsel %vm1867_vm7, %v8809_v19, 0  ;;  %v8812_v19 = vld [vmem:[#allocation10_spill] sm:$0xff] }
 0x466   : > { %v2823_v62 = vadd.f32 %v2822_v26, %v7335_v28  ;;  %v3038_v16 = vpop.f32.mrf.mxu2 }
 0x467   : > { %v3121_v50 = vpop.f32.mrf.mxu3 }
 0x468   : > { %v2924_v55 = vadd.f32 %v2923_v13, %v2823_v62  ;;  %3277 = vmatmul.f32.gmra.mxu0 %v3276_v56  ;;  %3428 = vmatmul.f32.gmra.mxu1 %v7472_v8  ;;  %v3298_v13 = vand.u32 4294901760, %v3297_v58  ;;  %v3306_v62 = vand.u32 4294901760, %v3305_v14 }
 0x46a   : > { %v3039_v31 = vadd.f32 %v3038_v16, %v2924_v55  ;;  %3516 = vmatmul.f32.gmra.mxu2 %v3281_v33  ;;  %v3299_v1 = vsub.f32 %v3297_v58, %v3298_v13  ;;  %v7508_v16 = vand.u32 4294901760, %v3226_v30  ;;  %v3307_v55 = vsub.f32 %v3305_v14, %v3306_v62 }
 0x46c   : > { %v7487_v0 = vadd.f32 %v3121_v50, %v3039_v31  ;;  %3618 = vmatmul.f32.gmra.mxu3 %v3282_v12  ;;  %v3313_v31 = vsub.f32 %v3226_v30, %v7508_v16  ;;  %v3232_v30 = vsel %vm1867_vm7, %v8812_v19, 0 }
 0x46d   : > { %v2827_v28 = vpop.f32.mrf.mxu0  ;;  %v2935_v57 = vpop.f32.mrf.mxu1 }
 0x46e   : > { %v2828_v11 = vadd.f32 %v2827_v28, %v7343_v60  ;;  %v3042_v40 = vpop.f32.mrf.mxu2 }
 0x46f   : > { %v3125_v34 = vpop.f32.mrf.mxu3 }
 0x470   : > { %v2930_v9 = vadd.f32 %v2929_v17, %v2828_v11  ;;  %3285 = vmatmul.f32.gmra.mxu0 %v3284_v39  ;;  %3432 = vmatmul.f32.gmra.mxu1 %v7481_v51  ;;  %v3300_v17 = vand.u32 4294901760, %v3299_v1  ;;  %v3308_v11 = vand.u32 4294901760, %v3307_v55 }
 0x472   : > { %v3043_v38 = vadd.f32 %v3042_v40, %v2930_v9  ;;  %3521 = vmatmul.f32.gmra.mxu2 %v3289_v15  ;;  %v3228_v15 = vsel %vm1867_vm7, %v8810_v41, 0  ;;  %v3314_v40 = vand.u32 4294901760, %v3313_v31 }
 0x473   : > { %v7517_v39 = vand.u32 4294901760, %v3228_v15 }
 0x474   : > { %v7496_v27 = vadd.f32 %v3125_v34, %v3043_v38  ;;  %3624 = vmatmul.f32.gmra.mxu3 %v3290_v36  ;;  %v3315_v38 = vsub.f32 %v3313_v31, %v3314_v40 }
 0x475   : > { %v2832_v60 = vpop.f32.mrf.mxu0  ;;  %v2941_v46 = vpop.f32.mrf.mxu1  ;;  %v3321_v47 = vsub.f32 %v3228_v15, %v7517_v39  ;;  %v8813_v15 = vld [vmem:[#allocation5_spill] sm:$0xff] }
 0x476   : > { %v2833_v54 = vadd.f32 %v2832_v60, %v7351_v61  ;;  %v3046_v59 = vpop.f32.mrf.mxu2 }
 0x477   : > { %v3129_v25 = vpop.f32.mrf.mxu3 }
 0x478   : > { %v2936_v43 = vadd.f32 %v2935_v57, %v2833_v54  ;;  %3293 = vmatmul.f32.gmra.mxu0 %v3292_v6  ;;  %3436 = vmatmul.f32.gmra.mxu1 %v7490_v3  ;;  %v3322_v6 = vand.u32 4294901760, %v3321_v47 }
 0x47a   : > { %v3047_v20 = vadd.f32 %v3046_v59, %v2936_v43  ;;  %3526 = vmatmul.f32.gmra.mxu2 %v3297_v58  ;;  %v8811_v58 = vld [vmem:[#allocation6_spill] sm:$0xff]  ;;  %v3316_v59 = vand.u32 4294901760, %v3315_v38  ;;  %v3323_v1 = vsub.f32 %v3321_v47, %v3322_v6 }
 0x47b   : > { %v3230_v2 = vsel %vm1867_vm7, %v8811_v58, 0 }
 0x47c   : > { %v7505_v33 = vadd.f32 %v3129_v25, %v3047_v20  ;;  %3630 = vmatmul.f32.gmra.mxu3 %v3298_v13  ;;  %v7526_v13 = vand.u32 4294901760, %v3230_v2 }
 0x47d   : > { %v2837_v61 = vpop.f32.mrf.mxu0  ;;  %v2947_v23 = vpop.f32.mrf.mxu1 }
 0x47e   : > { %v2838_v29 = vadd.f32 %v2837_v61, %v7359_v44  ;;  %v3050_v26 = vpop.f32.mrf.mxu2 }
 0x47f   : > { %v3133_v56 = vpop.f32.mrf.mxu3 }
 0x480   : > { %v2942_v12 = vadd.f32 %v2941_v46, %v2838_v29  ;;  %3301 = vmatmul.f32.gmra.mxu0 %v3300_v17  ;;  %3440 = vmatmul.f32.gmra.mxu1 %v7499_v18  ;;  %v3324_v17 = vand.u32 4294901760, %v3323_v1 }
 0x482   : > { %v3051_v50 = vadd.f32 %v3050_v26, %v2942_v12  ;;  %3531 = vmatmul.f32.gmra.mxu2 %v3305_v14  ;;  %v3329_v14 = vsub.f32 %v3230_v2, %v7526_v13 }
 0x484   : > { %v7514_v48 = vadd.f32 %v3133_v56, %v3051_v50  ;;  %3636 = vmatmul.f32.gmra.mxu3 %v3306_v62  ;;  %v3330_v62 = vand.u32 4294901760, %v3329_v14  ;;  %v7535_v56 = vand.u32 4294901760, %v3232_v30 }
 0x485   : > { %v2842_v44 = vpop.f32.mrf.mxu0  ;;  %v2953_v24 = vpop.f32.mrf.mxu1 }
 0x486   : > { %v2843_v28 = vadd.f32 %v2842_v44, %v7367_v5  ;;  %v3054_v57 = vpop.f32.mrf.mxu2  ;;  %v3337_v41 = vsub.f32 %v3232_v30, %v7535_v56  ;;  %v3234_v44 = vsel %vm1867_vm7, %v8813_v15, 0 }
 0x487   : > { %v3137_v36 = vpop.f32.mrf.mxu3 }
 0x488   : > { %v2948_v34 = vadd.f32 %v2947_v23, %v2843_v28  ;;  %3309 = vmatmul.f32.gmra.mxu0 %v3308_v11  ;;  %3444 = vmatmul.f32.gmra.mxu1 %v7508_v16 }
 0x48a   : > { %v3055_v9 = vadd.f32 %v3054_v57, %v2948_v34  ;;  %3536 = vmatmul.f32.gmra.mxu2 %v3313_v31  ;;  %v3331_v31 = vsub.f32 %v3329_v14, %v3330_v62  ;;  %v7544_v34 = vand.u32 4294901760, %v3234_v44 }
 0x48c   : > { %v7523_v42 = vadd.f32 %v3137_v36, %v3055_v9  ;;  %3642 = vmatmul.f32.gmra.mxu3 %v3314_v40  ;;  %v3332_v40 = vand.u32 4294901760, %v3331_v31  ;;  %v3338_v36 = vand.u32 4294901760, %v3337_v41  ;;  %v3345_v2 = vsub.f32 %v3234_v44, %v7544_v34 }
 0x48d   : > { %v2847_v5 = vpop.f32.mrf.mxu0  ;;  %v2959_v60 = vpop.f32.mrf.mxu1 }
 0x48e   : > { %v2848_v46 = vadd.f32 %v2847_v5, %v7375_v45  ;;  %v3058_v54 = vpop.f32.mrf.mxu2  ;;  %v3339_v58 = vsub.f32 %v3337_v41, %v3338_v36  ;;  %v8815_v5 = vld [vmem:[#allocation11_spill] sm:$0xff]  ;;  %v3346_v1 = vand.u32 4294901760, %v3345_v2 }
 0x48f   : > { %v3141_v25 = vpop.f32.mrf.mxu3 }
 0x490   : > { %v2954_v43 = vadd.f32 %v2953_v24, %v2848_v46  ;;  %3317 = vmatmul.f32.gmra.mxu0 %v3316_v59  ;;  %3448 = vmatmul.f32.gmra.mxu1 %v7517_v39 }
 0x492   : > { %v3059_v20 = vadd.f32 %v3058_v54, %v2954_v43  ;;  %3541 = vmatmul.f32.gmra.mxu2 %v3321_v47 }
 0x494   : > { %v7532_v61 = vadd.f32 %v3141_v25, %v3059_v20  ;;  %3648 = vmatmul.f32.gmra.mxu3 %v3322_v6  ;;  %v3340_v20 = vand.u32 4294901760, %v3339_v58 }
 0x495   : > { %v2852_v45 = vpop.f32.mrf.mxu0  ;;  %v2965_v23 = vpop.f32.mrf.mxu1 }
 0x496   : > { %v2853_v29 = vadd.f32 %v2852_v45, %v7383_v52  ;;  %v3062_v26 = vpop.f32.mrf.mxu2 }
 0x497   : > { %v3145_v12 = vpop.f32.mrf.mxu3 }
 0x498   : > { %v2960_v50 = vadd.f32 %v2959_v60, %v2853_v29  ;;  %3325 = vmatmul.f32.gmra.mxu0 %v3324_v17  ;;  %3452 = vmatmul.f32.gmra.mxu1 %v7526_v13  ;;  %v3236_v60 = vsel %vm1867_vm7, %v8815_v5, 0  ;;  %v3347_v29 = vsub.f32 %v3345_v2, %v3346_v1  ;;  %v8817_v17 = vld [vmem:[#allocation9_spill] sm:$0xff] }
 0x49a   : > { %v3063_v55 = vadd.f32 %v3062_v26, %v2960_v50  ;;  %3546 = vmatmul.f32.gmra.mxu2 %v3329_v14  ;;  %v7558_v14 = vand.u32 4294901760, %v3236_v60 }
 0x49c   : > { %v7541_v24 = vadd.f32 %v3145_v12, %v3063_v55  ;;  %3654 = vmatmul.f32.gmra.mxu3 %v3330_v62  ;;  %v3353_v26 = vsub.f32 %v3236_v60, %v7558_v14  ;;  %v3238_v62 = vsel %vm1867_vm7, %v8817_v17, 0 }
 0x49d   : > { %v2857_v52 = vpop.f32.mrf.mxu0  ;;  %v2971_v28 = vpop.f32.mrf.mxu1 }
 0x49e   : > { %8814 = vst [vmem:[#allocation16_spill] sm:$0xff] %v7541_v24  ;;  %v2858_v57 = vadd.f32 %v2857_v52, %v7391_v21  ;;  %v3066_v11 = vpop.f32.mrf.mxu2  ;;  %v3887_v21 = vld [vmem:[%s8658_s4 + $0x38] sm:$0xff]  ;;  %v3348_v52 = vand.u32 4294901760, %v3347_v29 }
 0x49f   : > { %v3149_v9 = vpop.f32.mrf.mxu3  ;;  %v7555_v6 = vand.u32 4294901760, %v3887_v21 }
 0x4a0   : > { %v2966_v38 = vadd.f32 %v2965_v23, %v2858_v57  ;;  %3333 = vmatmul.f32.gmra.mxu0 %v3332_v40  ;;  %3456 = vmatmul.f32.gmra.mxu1 %v7535_v56  ;;  %v7577_v57 = vand.u32 4294901760, %v3238_v62 }
 0x4a1   : > { %3967 = vmatpush.msra.mxu2 %v7555_v6  ;;  %v7562_v30 = vsub.f32 %v3887_v21, %v7555_v6  ;;  %4306 = vmatpush.msra.mxu1 %v7555_v6 }
 0x4a2   : > { %v3067_v47 = vadd.f32 %v3066_v11, %v2966_v38  ;;  %3551 = vmatmul.f32.gmra.mxu2 %v3337_v41  ;;  %v3361_v38 = vsub.f32 %v3238_v62, %v7577_v57 }
 0x4a3   : > { %v4115_v23 = vand.u32 4294901760, %v7562_v30  ;;  %4206 = vmatpush.msra.mxu0 %v7562_v30 }
 0x4a4   : > { %v7550_v46 = vadd.f32 %v3149_v9, %v3067_v47  ;;  %3660 = vmatmul.f32.gmra.mxu3 %v3338_v36  ;;  %v8819_v47 = vld [vmem:[#allocation31_spill] sm:$0xff] }
 0x4a5   : > { %v2862_v54 = vpop.f32.mrf.mxu0  ;;  %v2977_v59 = vpop.f32.mrf.mxu1  ;;  %v4116_v12 = vsub.f32 %v7562_v30, %v4115_v23  ;;  %v3240_v58 = vsel %vm1867_vm7, %v8819_v47, 0 }
 0x4a6   : > { %8816 = vst [vmem:[#allocation17_spill] sm:$0xff] %v7550_v46  ;;  %v2863_v25 = vadd.f32 %v2862_v54, %v7407_v53  ;;  %v3070_v43 = vpop.f32.mrf.mxu2 }
 0x4a7   : > { %v3153_v19 = vpop.f32.mrf.mxu3  ;;  %v4117_v41 = vand.u32 4294901760, %v4116_v12 }
 0x4a8   : > { %v2972_v45 = vadd.f32 %v2971_v28, %v2863_v25  ;;  %3341 = vmatmul.f32.gmra.mxu0 %v3340_v20  ;;  %3460 = vmatmul.f32.gmra.mxu1 %v7544_v34  ;;  %v3354_v28 = vand.u32 4294901760, %v3353_v26  ;;  %v7586_v25 = vand.u32 4294901760, %v3240_v58 }
 0x4a9   : > { %4118 = vmatpush.msra.mxu3 %v4117_v41 }
 0x4aa   : > { %v3071_v53 = vadd.f32 %v3070_v43, %v2972_v45  ;;  %3556 = vmatmul.f32.gmra.mxu2 %v3345_v2  ;;  %v3355_v9 = vsub.f32 %v3353_v26, %v3354_v28  ;;  %v3369_v45 = vsub.f32 %v3240_v58, %v7586_v25 }
 0x4ac   : > { %v7574_v50 = vadd.f32 %v3153_v19, %v3071_v53  ;;  %3666 = vmatmul.f32.gmra.mxu3 %v3346_v1  ;;  %v3356_v54 = vand.u32 4294901760, %v3355_v9  ;;  %v8821_v53 = vld [vmem:[#allocation34_spill] sm:$0xff] }
 0x4ad   : > { %v2867_v55 = vpop.f32.mrf.mxu0  ;;  %v2983_v31 = vpop.f32.mrf.mxu1  ;;  %v3242_v29 = vsel %vm1867_vm7, %v8821_v53, 0 }
 0x4ae   : > { %8818 = vst [vmem:[#allocation18_spill] sm:$0xff] %v7574_v50  ;;  %v2868_v15 = vadd.f32 %v2867_v55, %v7415_v10  ;;  %v3074_v44 = vpop.f32.mrf.mxu2 }
 0x4af   : > { %v3157_v11 = vpop.f32.mrf.mxu3 }
 0x4b0   : > { %v2978_v40 = vadd.f32 %v2977_v59, %v2868_v15  ;;  %3349 = vmatmul.f32.gmra.mxu0 %v3348_v52  ;;  %3464 = vmatmul.f32.gmra.mxu1 %v7558_v14  ;;  %v3362_v59 = vand.u32 4294901760, %v3361_v38  ;;  %v3370_v15 = vand.u32 4294901760, %v3369_v45 }
 0x4b2   : > { %v3075_v36 = vadd.f32 %v3074_v44, %v2978_v40  ;;  %3561 = vmatmul.f32.gmra.mxu2 %v3353_v26  ;;  %v3363_v19 = vsub.f32 %v3361_v38, %v3362_v59  ;;  %v7598_v44 = vand.u32 4294901760, %v3242_v29 }
 0x4b4   : > { %v7583_v10 = vadd.f32 %v3157_v11, %v3075_v36  ;;  %3672 = vmatmul.f32.gmra.mxu3 %v3354_v28  ;;  %v3364_v41 = vand.u32 4294901760, %v3363_v19  ;;  %v3377_v9 = vsub.f32 %v3242_v29, %v7598_v44 }
 0x4b5   : > { %v2872_v2 = vpop.f32.mrf.mxu0  ;;  %v2989_v5 = vpop.f32.mrf.mxu1 }
 0x4b6   : > { %8820 = vst [vmem:[#allocation20_spill] sm:$0xff] %v7583_v10  ;;  %v2873_v60 = vadd.f32 %v2872_v2, %v7423_v7  ;;  %v3078_v21 = vpop.f32.mrf.mxu2  ;;  %v3886_v7 = vld [vmem:[%s8658_s4 + $0x30] sm:$0xff] }
 0x4b7   : > { %v3161_v43 = vpop.f32.mrf.mxu3  ;;  %v3968_v12 = vand.u32 4294901760, %v3886_v7 }
 0x4b8   : > { %v2984_v20 = vadd.f32 %v2983_v31, %v2873_v60  ;;  %3357 = vmatmul.f32.gmra.mxu0 %v3356_v54  ;;  %3468 = vmatmul.f32.gmra.mxu1 %v7577_v57  ;;  %v8826_v60 = vld [vmem:[#allocation15_spill] sm:$0xff] }
 0x4b9   : > { %3969 = vmatpush.msra.mxu2 %v3968_v12  ;;  %v4120_v28 = vsub.f32 %v3886_v7, %v3968_v12  ;;  %4308 = vmatpush.msra.mxu1 %v3968_v12 }
 0x4ba   : > { %v3079_v1 = vadd.f32 %v3078_v21, %v2984_v20  ;;  %3566 = vmatmul.f32.gmra.mxu2 %v3361_v38  ;;  %v8823_v38 = vld [vmem:[#allocation8_spill] sm:$0xff]  ;;  %v3920_v21 = vsel %vm1867_vm7, %v8826_v60, 0 }
 0x4bb   : > { %v4121_v40 = vand.u32 4294901760, %v4120_v28  ;;  %4423 = vmatpush.msrb.mxu2 %v4115_v23  ;;  %4209 = vmatpush.msra.mxu0 %v4120_v28  ;;  %v8824_v47 = vrot.slane %v8823_v38, 2  ;;  %v7614_v53 = vand.u32 4294901760, %v3920_v21 }
 0x4bc   : > { %v7592_v26 = vadd.f32 %v3161_v43, %v3079_v1  ;;  %3678 = vmatmul.f32.gmra.mxu3 %v3362_v59  ;;  %v3378_v1 = vand.u32 4294901760, %v3377_v9 }
 0x4bd   : > { %v2877_v17 = vpop.f32.mrf.mxu0  ;;  %v2995_v62 = vpop.f32.mrf.mxu1  ;;  %v3244_v58 = vsel %vm1867_vm7, %v8824_v47, 0  ;;  %v4122_v2 = vsub.f32 %v4120_v28, %v4121_v40  ;;  %4427 = vmatpush.msrb.mxu2 %v4121_v40 }
 0x4be   : > { %8822 = vst [vmem:[#allocation22_spill] sm:$0xff] %v7592_v26  ;;  %v2878_v55 = vadd.f32 %v2877_v17, %v7434_v4  ;;  %v3082_v31 = vpop.f32.mrf.mxu2  ;;  %v3371_v4 = vsub.f32 %v3369_v45, %v3370_v15  ;;  %v7612_v19 = vand.u32 4294901760, %v3244_v58  ;;  %v3379_v17 = vsub.f32 %v3377_v9, %v3378_v1 }
 0x4bf   : > { %v3165_v52 = vpop.f32.mrf.mxu3  ;;  %v4123_v54 = vand.u32 4294901760, %v4122_v2 }
 0x4c0   : > { %v2990_v11 = vadd.f32 %v2989_v5, %v2878_v55  ;;  %3365 = vmatmul.f32.gmra.mxu0 %v3364_v41  ;;  %3472 = vmatmul.f32.gmra.mxu1 %v7586_v25  ;;  %v3372_v20 = vand.u32 4294901760, %v3371_v4 }
 0x4c1   : > { %4124 = vmatpush.msra.mxu3 %v4123_v54 }
 0x4c2   : > { %v3083_v36 = vadd.f32 %v3082_v31, %v2990_v11  ;;  %3571 = vmatmul.f32.gmra.mxu2 %v3369_v45  ;;  %v7622_v31 = vsub.f32 %v3920_v21, %v7614_v53  ;;  %v3380_v11 = vand.u32 4294901760, %v3379_v17 }
 0x4c3   : > { %4508 = vmatpush.msrb.mxu3 %v7555_v6 }
 0x4c4   : > { %v7607_v5 = vadd.f32 %v3165_v52, %v3083_v36  ;;  %3684 = vmatmul.f32.gmra.mxu3 %v3370_v15 }
 0x4c5   : > { %v2882_v30 = vpop.f32.mrf.mxu0  ;;  %v3001_v23 = vpop.f32.mrf.mxu1  ;;  %4510 = vmatpush.msrb.mxu3 %v3968_v12  ;;  %v8701_v12 = vand.u32 4294901760, %v7622_v31 }
 0x4c6   : > { %8825 = vst [vmem:[#allocation24_spill] sm:$0xff] %v7607_v5  ;;  %v2883_v59 = vadd.f32 %v2882_v30, %v7445_v35  ;;  %v3086_v43 = vpop.f32.mrf.mxu2  ;;  %v3385_v35 = vsub.f32 %v3244_v58, %v7612_v19 }
 0x4c7   : > { %v3169_v45 = vpop.f32.mrf.mxu3 }
 0x4c8   : > { %v2996_v29 = vadd.f32 %v2995_v62, %v2883_v59  ;;  %3373 = vmatmul.f32.gmra.mxu0 %v3372_v20  ;;  %3476 = vmatmul.f32.gmra.mxu1 %v7598_v44  ;;  %v8828_v62 = vld [vmem:[#allocation19_spill] sm:$0xff]  ;;  %v3386_v40 = vand.u32 4294901760, %v3385_v35 }
 0x4c9   : > { %v3922_v52 = vsel %vm1867_vm7, %v8828_v62, 0 }
 0x4ca   : > { %v3087_v7 = vadd.f32 %v3086_v43, %v2996_v29  ;;  %3576 = vmatmul.f32.gmra.mxu2 %v3377_v9  ;;  %v7629_v9 = vand.u32 4294901760, %v3922_v52  ;;  %v3387_v58 = vsub.f32 %v3385_v35, %v3386_v40 }
 0x4cc   : > { %v7619_v55 = vadd.f32 %v3169_v45, %v3087_v7  ;;  %3690 = vmatmul.f32.gmra.mxu3 %v3378_v1  ;;  %v7637_v60 = vsub.f32 %v3922_v52, %v7629_v9  ;;  %v3388_v20 = vand.u32 4294901760, %v3387_v58 }
 0x4cd   : > { %v2887_v41 = vpop.f32.mrf.mxu0  ;;  %v3007_v15 = vpop.f32.mrf.mxu1 }
 0x4ce   : > { %8827 = vst [vmem:[#allocation25_spill] sm:$0xff] %v7619_v55  ;;  %v2888_v28 = vadd.f32 %v2887_v41, %v7458_v49  ;;  %v3090_v6 = vpop.f32.mrf.mxu2  ;;  %v3973_v49 = vsub.f32 %v7622_v31, %v8701_v12  ;;  %v8699_v7 = vand.u32 4294901760, %v7637_v60 }
 0x4cf   : > { %v3173_v36 = vpop.f32.mrf.mxu3 }
 0x4d0   : > { %v3002_v4 = vadd.f32 %v3001_v23, %v2888_v28  ;;  %3381 = vmatmul.f32.gmra.mxu0 %v3380_v11  ;;  %3480 = vmatmul.f32.gmra.mxu1 %v7612_v19  ;;  %v8830_v23 = vld [vmem:[#allocation21_spill] sm:$0xff]  ;;  %v3974_v29 = vand.u32 4294901760, %v3973_v49  ;;  %v8832_v28 = vld [vmem:[#allocation23_spill] sm:$0xff] }
 0x4d1   : > { %v3924_v54 = vsel %vm1867_vm7, %v8830_v23, 0 }
 0x4d2   : > { %v3091_v47 = vadd.f32 %v3090_v6, %v3002_v4  ;;  %3581 = vmatmul.f32.gmra.mxu2 %v3385_v35  ;;  %v7644_v17 = vand.u32 4294901760, %v3924_v54  ;;  %v3926_v6 = vsel %vm1867_vm7, %v8832_v28, 0 }
 0x4d3   : > { %v7660_v49 = vand.u32 4294901760, %v3926_v6 }
 0x4d4   : > { %v7631_v2 = vadd.f32 %v3173_v36, %v3091_v47  ;;  %3696 = vmatmul.f32.gmra.mxu3 %v3386_v40 }
 0x4d5   : > { %v2892_v21 = vpop.f32.mrf.mxu0  ;;  %v3421_v30 = vpop.f32.mrf.mxu1  ;;  %v7669_v23 = vsub.f32 %v3926_v6, %v7660_v49 }
 0x4d6   : > { %8829 = vst [vmem:[#allocation28_spill] sm:$0xff] %v7631_v2  ;;  %v2893_v59 = vadd.f32 %v2892_v21, %v7469_v37  ;;  %v3094_v43 = vpop.f32.mrf.mxu2  ;;  %v3981_v37 = vsub.f32 %v7637_v60, %v8699_v7 }
 0x4d7   : > { %v3177_v1 = vpop.f32.mrf.mxu3 }
 0x4d8   : > { %v3008_v45 = vadd.f32 %v3007_v15, %v2893_v59  ;;  %3389 = vmatmul.f32.gmra.mxu0 %v3388_v20  ;;  %3806 = vmatmul.f32.vlgmr.msrb.gmra.mxu1 %v7449_v22  ;;  %v7653_v15 = vsub.f32 %v3924_v54, %v7644_v17  ;;  %v3982_v47 = vand.u32 4294901760, %v3981_v37  ;;  %v8833_v59 = vld [vmem:[#allocation26_spill] sm:$0xff]  ;;  %v8696_v37 = vand.u32 4294901760, %v7669_v23 }
 0x4da   : > { %v3095_v35 = vadd.f32 %v3094_v43, %v3008_v45  ;;  %3975 = vmatmul.f32.vlgmr.msra.gmra.mxu2 %v3974_v29  ;;  %v8698_v58 = vand.u32 4294901760, %v7653_v15  ;;  %v3928_v43 = vsel %vm1867_vm7, %v8833_v59, 0 }
 0x4dc   : > { %v7646_v41 = vadd.f32 %v3177_v1, %v3095_v35  ;;  %4126 = vmatmul.f32.vlgmr.msra.gmra.mxu3 %v7614_v53 }
 0x4dd   : > { %v3270_v62 = vpop.f32.mrf.mxu0  ;;  %v3425_v52 = vpop.f32.mrf.mxu1 }
 0x4de   : > { %8831 = vst [vmem:[#allocation4_spill] sm:$0xff] %v7646_v41  ;;  %v3422_v11 = vadd.f32 %v3421_v30, %v3270_v62  ;;  %v3507_v40 = vpop.f32.mrf.mxu2  ;;  %v3989_v30 = vsub.f32 %v7653_v15, %v8698_v58  ;;  %v7676_v62 = vand.u32 4294901760, %v3928_v43 }
 0x4df   : > { %v3607_v36 = vpop.f32.mrf.mxu3 }
 0x4e0   : > { %v3508_v4 = vadd.f32 %v3507_v40, %v3422_v11  ;;  %3723 = vmatmul.f32.vlgmr.msrb.gmra.mxu0 %v7449_v22  ;;  %3810 = vmatmul.f32.gmra.mxu1 %v7462_v63  ;;  %v3990_v35 = vand.u32 4294901760, %v3989_v30  ;;  %v7685_v6 = vsub.f32 %v3928_v43, %v7676_v62  ;;  %v8834_v40 = vld [vmem:[#allocation27_spill] sm:$0xff] }
 0x4e2   : > { %v7662_v21 = vadd.f32 %v3607_v36, %v3508_v4  ;;  %3983 = vmatmul.f32.gmra.mxu2 %v3982_v47  ;;  %v3930_v36 = vsel %vm1867_vm7, %v8834_v40, 0 }
 0x4e4   : > { %4130 = vmatmul.f32.gmra.mxu3 %v7629_v9 }
 0x4e5   : > { %v3278_v22 = vpop.f32.mrf.mxu0  ;;  %v3429_v54 = vpop.f32.mrf.mxu1 }
 0x4e6   : > { %v3426_v20 = vadd.f32 %v3425_v52, %v3278_v22  ;;  %v3512_v1 = vpop.f32.mrf.mxu2  ;;  %v3997_v52 = vsub.f32 %v7669_v23, %v8696_v37 }
 0x4e7   : > { %v3613_v45 = vpop.f32.mrf.mxu3 }
 0x4e8   : > { %v3513_v29 = vadd.f32 %v3512_v1, %v3426_v20  ;;  %3727 = vmatmul.f32.gmra.mxu0 %v7462_v63  ;;  %3814 = vmatmul.f32.gmra.mxu1 %v7472_v8  ;;  %v3998_v59 = vand.u32 4294901760, %v3997_v52  ;;  %v8695_v20 = vand.u32 4294901760, %v7685_v6  ;;  %v7692_v1 = vand.u32 4294901760, %v3930_v36 }
 0x4ea   : > { %v7678_v28 = vadd.f32 %v3613_v45, %v3513_v29  ;;  %3991 = vmatmul.f32.gmra.mxu2 %v3990_v35  ;;  %v7701_v45 = vsub.f32 %v3930_v36, %v7692_v1  ;;  %v8835_v35 = vld [vmem:[#allocation29_spill] sm:$0xff] }
 0x4eb   : > { %v3932_v52 = vsel %vm1867_vm7, %v8835_v35, 0 }
 0x4ec   : > { %4134 = vmatmul.f32.gmra.mxu3 %v7644_v17 }
 0x4ed   : > { %v3286_v63 = vpop.f32.mrf.mxu0  ;;  %v3433_v11 = vpop.f32.mrf.mxu1 }
 0x4ee   : > { %v3430_v4 = vadd.f32 %v3429_v54, %v3286_v63  ;;  %v3517_v47 = vpop.f32.mrf.mxu2  ;;  %v4005_v54 = vsub.f32 %v7685_v6, %v8695_v20 }
 0x4ef   : > { %v3619_v30 = vpop.f32.mrf.mxu3 }
 0x4f0   : > { %v3518_v22 = vadd.f32 %v3517_v47, %v3430_v4  ;;  %3731 = vmatmul.f32.gmra.mxu0 %v7472_v8  ;;  %3818 = vmatmul.f32.gmra.mxu1 %v7481_v51 }
 0x4f2   : > { %v7694_v43 = vadd.f32 %v3619_v30, %v3518_v22  ;;  %3999 = vmatmul.f32.gmra.mxu2 %v3998_v59  ;;  %v4006_v30 = vand.u32 4294901760, %v4005_v54  ;;  %v8697_v22 = vand.u32 4294901760, %v7701_v45  ;;  %v7708_v59 = vand.u32 4294901760, %v3932_v52 }
 0x4f4   : > { %4138 = vmatmul.f32.gmra.mxu3 %v7660_v49 }
 0x4f5   : > { %v3294_v8 = vpop.f32.mrf.mxu0  ;;  %v3437_v29 = vpop.f32.mrf.mxu1 }
 0x4f6   : > { %v3434_v63 = vadd.f32 %v3433_v11, %v3294_v8  ;;  %v3522_v40 = vpop.f32.mrf.mxu2  ;;  %v4013_v11 = vsub.f32 %v7701_v45, %v8697_v22  ;;  %v7717_v8 = vsub.f32 %v3932_v52, %v7708_v59 }
 0x4f7   : > { %v3625_v4 = vpop.f32.mrf.mxu3 }
 0x4f8   : > { %v3523_v47 = vadd.f32 %v3522_v40, %v3434_v63  ;;  %3735 = vmatmul.f32.gmra.mxu0 %v7481_v51  ;;  %3822 = vmatmul.f32.gmra.mxu1 %v7490_v3  ;;  %v8836_v63 = vld [vmem:[#allocation7_spill] sm:$0xff] }
 0x4f9   : > { %v3934_v54 = vsel %vm1867_vm7, %v8836_v63, 0  ;;  %v8837_v63 = vld [vmem:[#allocation12_spill] sm:$0xff] }
 0x4fa   : > { %v7710_v36 = vadd.f32 %v3625_v4, %v3523_v47  ;;  %4007 = vmatmul.f32.gmra.mxu2 %v4006_v30  ;;  %v4014_v47 = vand.u32 4294901760, %v4013_v11  ;;  %v8700_v30 = vand.u32 4294901760, %v7717_v8  ;;  %v7724_v22 = vand.u32 4294901760, %v3934_v54 }
 0x4fb   : > { %v3936_v11 = vsel %vm1867_vm7, %v8837_v63, 0  ;;  %v8838_v63 = vld [vmem:[#allocation14_spill] sm:$0xff] }
 0x4fc   : > { %4142 = vmatmul.f32.gmra.mxu3 %v7676_v62 }
 0x4fd   : > { %v3302_v51 = vpop.f32.mrf.mxu0  ;;  %v3441_v35 = vpop.f32.mrf.mxu1 }
 0x4fe   : > { %v3438_v40 = vadd.f32 %v3437_v29, %v3302_v51  ;;  %v3527_v20 = vpop.f32.mrf.mxu2  ;;  %v4021_v29 = vsub.f32 %v7717_v8, %v8700_v30  ;;  %v7740_v30 = vand.u32 4294901760, %v3936_v11 }
 0x4ff   : > { %v3631_v37 = vpop.f32.mrf.mxu3 }
 0x500   : > { %v3528_v4 = vadd.f32 %v3527_v20, %v3438_v40  ;;  %3739 = vmatmul.f32.gmra.mxu0 %v7490_v3  ;;  %3826 = vmatmul.f32.gmra.mxu1 %v7499_v18  ;;  %v7733_v20 = vsub.f32 %v3934_v54, %v7724_v22 }
 0x502   : > { %v7726_v52 = vadd.f32 %v3631_v37, %v3528_v4  ;;  %4015 = vmatmul.f32.gmra.mxu2 %v4014_v47  ;;  %v4022_v4 = vand.u32 4294901760, %v4021_v29  ;;  %v8702_v47 = vand.u32 4294901760, %v7733_v20  ;;  %v3938_v29 = vsel %vm1867_vm7, %v8838_v63, 0  ;;  %v8839_v63 = vld [vmem:[#allocation13_spill] sm:$0xff] }
 0x504   : > { %4146 = vmatmul.f32.gmra.mxu3 %v7692_v1 }
 0x505   : > { %v3310_v3 = vpop.f32.mrf.mxu0  ;;  %v3445_v51 = vpop.f32.mrf.mxu1 }
 0x506   : > { %v3442_v40 = vadd.f32 %v3441_v35, %v3310_v3  ;;  %v3532_v58 = vpop.f32.mrf.mxu2  ;;  %v4029_v35 = vsub.f32 %v7733_v20, %v8702_v47  ;;  %v7756_v47 = vand.u32 4294901760, %v3938_v29 }
 0x507   : > { %v3637_v7 = vpop.f32.mrf.mxu3 }
 0x508   : > { %v3533_v37 = vadd.f32 %v3532_v58, %v3442_v40  ;;  %3743 = vmatmul.f32.gmra.mxu0 %v7499_v18  ;;  %3830 = vmatmul.f32.gmra.mxu1 %v7508_v16  ;;  %v7749_v58 = vsub.f32 %v3936_v11, %v7740_v30 }
 0x50a   : > { %v7742_v54 = vadd.f32 %v3637_v7, %v3533_v37  ;;  %4023 = vmatmul.f32.gmra.mxu2 %v4022_v4  ;;  %v4030_v37 = vand.u32 4294901760, %v4029_v35  ;;  %v8703_v4 = vand.u32 4294901760, %v7749_v58  ;;  %v3940_v35 = vsel %vm1867_vm7, %v8839_v63, 0  ;;  %v8840_v63 = vld [vmem:[#allocation30_spill] sm:$0xff] }
 0x50c   : > { %4150 = vmatmul.f32.gmra.mxu3 %v7708_v59 }
 0x50d   : > { %v3318_v18 = vpop.f32.mrf.mxu0  ;;  %v3449_v3 = vpop.f32.mrf.mxu1 }
 0x50e   : > { %v3446_v40 = vadd.f32 %v3445_v51, %v3318_v18  ;;  %v3537_v12 = vpop.f32.mrf.mxu2  ;;  %v4037_v51 = vsub.f32 %v7749_v58, %v8703_v4  ;;  %v7772_v4 = vand.u32 4294901760, %v3940_v35 }
 0x50f   : > { %v3643_v41 = vpop.f32.mrf.mxu3 }
 0x510   : > { %v3538_v7 = vadd.f32 %v3537_v12, %v3446_v40  ;;  %3747 = vmatmul.f32.gmra.mxu0 %v7508_v16  ;;  %3834 = vmatmul.f32.gmra.mxu1 %v7517_v39  ;;  %v7765_v12 = vsub.f32 %v3938_v29, %v7756_v47 }
 0x512   : > { %v7758_v11 = vadd.f32 %v3643_v41, %v3538_v7  ;;  %4031 = vmatmul.f32.gmra.mxu2 %v4030_v37  ;;  %v4038_v7 = vand.u32 4294901760, %v4037_v51  ;;  %v8704_v37 = vand.u32 4294901760, %v7765_v12  ;;  %v3942_v51 = vsel %vm1867_vm7, %v8840_v63, 0  ;;  %v8842_v63 = vld [vmem:[#allocation32_spill] sm:$0xff] }
 0x514   : > { %4154 = vmatmul.f32.gmra.mxu3 %v7724_v22 }
 0x515   : > { %v3326_v16 = vpop.f32.mrf.mxu0  ;;  %v3453_v18 = vpop.f32.mrf.mxu1 }
 0x516   : > { %v3450_v40 = vadd.f32 %v3449_v3, %v3326_v16  ;;  %v3542_v2 = vpop.f32.mrf.mxu2  ;;  %v4045_v3 = vsub.f32 %v7765_v12, %v8704_v37  ;;  %v7788_v37 = vand.u32 4294901760, %v3942_v51 }
 0x517   : > { %v3649_v55 = vpop.f32.mrf.mxu3 }
 0x518   : > { %v3543_v41 = vadd.f32 %v3542_v2, %v3450_v40  ;;  %3751 = vmatmul.f32.gmra.mxu0 %v7517_v39  ;;  %3838 = vmatmul.f32.gmra.mxu1 %v7526_v13  ;;  %v7781_v2 = vsub.f32 %v3940_v35, %v7772_v4 }
 0x51a   : > { %v7774_v29 = vadd.f32 %v3649_v55, %v3543_v41  ;;  %4039 = vmatmul.f32.gmra.mxu2 %v4038_v7  ;;  %v4046_v41 = vand.u32 4294901760, %v4045_v3  ;;  %v8705_v7 = vand.u32 4294901760, %v7781_v2  ;;  %v3944_v3 = vsel %vm1867_vm7, %v8842_v63, 0  ;;  %v8844_v63 = vld [vmem:[#allocation33_spill] sm:$0xff] }
 0x51c   : > { %4158 = vmatmul.f32.gmra.mxu3 %v7740_v30 }
 0x51d   : > { %v3334_v39 = vpop.f32.mrf.mxu0  ;;  %v3457_v16 = vpop.f32.mrf.mxu1 }
 0x51e   : > { %v3454_v40 = vadd.f32 %v3453_v18, %v3334_v39  ;;  %v3547_v5 = vpop.f32.mrf.mxu2  ;;  %v4053_v18 = vsub.f32 %v7781_v2, %v8705_v7  ;;  %v7804_v7 = vand.u32 4294901760, %v3944_v3 }
 0x51f   : > { %v3655_v26 = vpop.f32.mrf.mxu3 }
 0x520   : > { %v3548_v55 = vadd.f32 %v3547_v5, %v3454_v40  ;;  %3755 = vmatmul.f32.gmra.mxu0 %v7526_v13  ;;  %3842 = vmatmul.f32.gmra.mxu1 %v7535_v56  ;;  %v7797_v5 = vsub.f32 %v3942_v51, %v7788_v37 }
 0x522   : > { %v7790_v35 = vadd.f32 %v3655_v26, %v3548_v55  ;;  %4047 = vmatmul.f32.gmra.mxu2 %v4046_v41  ;;  %8841 = vst [vmem:[#allocation6_spill] sm:$0xff] %v7797_v5  ;;  %v4054_v55 = vand.u32 4294901760, %v4053_v18  ;;  %v8706_v41 = vand.u32 4294901760, %v7797_v5  ;;  %v3946_v18 = vsel %vm1867_vm7, %v8844_v63, 0  ;;  %v8846_v63 = vld [vmem:[#allocation35_spill] sm:$0xff] }
 0x524   : > { %4162 = vmatmul.f32.gmra.mxu3 %v7756_v47 }
 0x525   : > { %v3342_v13 = vpop.f32.mrf.mxu0  ;;  %v3461_v39 = vpop.f32.mrf.mxu1 }
 0x526   : > { %v3458_v40 = vadd.f32 %v3457_v16, %v3342_v13  ;;  %v3552_v10 = vpop.f32.mrf.mxu2  ;;  %v4061_v16 = vsub.f32 %v7797_v5, %v8706_v41  ;;  %v7820_v41 = vand.u32 4294901760, %v3946_v18 }
 0x527   : > { %v3661_v50 = vpop.f32.mrf.mxu3 }
 0x528   : > { %v3553_v26 = vadd.f32 %v3552_v10, %v3458_v40  ;;  %3759 = vmatmul.f32.gmra.mxu0 %v7535_v56  ;;  %3846 = vmatmul.f32.gmra.mxu1 %v7544_v34  ;;  %v7813_v10 = vsub.f32 %v3944_v3, %v7804_v7 }
 0x52a   : > { %v7806_v51 = vadd.f32 %v3661_v50, %v3553_v26  ;;  %4055 = vmatmul.f32.gmra.mxu2 %v4054_v55  ;;  %v4062_v26 = vand.u32 4294901760, %v4061_v16  ;;  %v8709_v55 = vand.u32 4294901760, %v7813_v10  ;;  %v3948_v16 = vsel %vm1867_vm7, %v8846_v63, 0 }
 0x52c   : > { %8843 = vst [vmem:[#allocation10_spill] sm:$0xff] %v7806_v51  ;;  %4166 = vmatmul.f32.gmra.mxu3 %v7772_v4 }
 0x52d   : > { %v3350_v56 = vpop.f32.mrf.mxu0  ;;  %v3465_v13 = vpop.f32.mrf.mxu1 }
 0x52e   : > { %v3462_v40 = vadd.f32 %v3461_v39, %v3350_v56  ;;  %v3557_v46 = vpop.f32.mrf.mxu2  ;;  %v4069_v39 = vsub.f32 %v7813_v10, %v8709_v55  ;;  %v7836_v55 = vand.u32 4294901760, %v3948_v16 }
 0x52f   : > { %v3667_v24 = vpop.f32.mrf.mxu3 }
 0x530   : > { %v3558_v50 = vadd.f32 %v3557_v46, %v3462_v40  ;;  %3763 = vmatmul.f32.gmra.mxu0 %v7544_v34  ;;  %3850 = vmatmul.f32.gmra.mxu1 %v7558_v14  ;;  %v7829_v46 = vsub.f32 %v3946_v18, %v7820_v41 }
 0x532   : > { %v7822_v3 = vadd.f32 %v3667_v24, %v3558_v50  ;;  %4063 = vmatmul.f32.gmra.mxu2 %v4062_v26  ;;  %v4070_v50 = vand.u32 4294901760, %v4069_v39  ;;  %v8710_v26 = vand.u32 4294901760, %v7829_v46  ;;  %v8848_v39 = vrot.slane %v8823_v38, 3 }
 0x534   : > { %8845 = vst [vmem:[#allocation5_spill] sm:$0xff] %v7822_v3  ;;  %4170 = vmatmul.f32.gmra.mxu3 %v7788_v37  ;;  %v3950_v63 = vsel %vm1867_vm7, %v8848_v39, 0 }
 0x535   : > { %v3358_v34 = vpop.f32.mrf.mxu0  ;;  %v3469_v56 = vpop.f32.mrf.mxu1 }
 0x536   : > { %v3466_v40 = vadd.f32 %v3465_v13, %v3358_v34  ;;  %v3562_v51 = vpop.f32.mrf.mxu2  ;;  %v4077_v13 = vsub.f32 %v7829_v46, %v8710_v26 }
 0x537   : > { %v3673_v5 = vpop.f32.mrf.mxu3 }
 0x538   : > { %v3563_v24 = vadd.f32 %v3562_v51, %v3466_v40  ;;  %3767 = vmatmul.f32.gmra.mxu0 %v7558_v14  ;;  %3854 = vmatmul.f32.gmra.mxu1 %v7577_v57  ;;  %v7845_v51 = vsub.f32 %v3948_v16, %v7836_v55 }
 0x53a   : > { %v7838_v18 = vadd.f32 %v3673_v5, %v3563_v24  ;;  %4071 = vmatmul.f32.gmra.mxu2 %v4070_v50  ;;  %v4078_v50 = vand.u32 4294901760, %v4077_v13  ;;  %v8711_v26 = vand.u32 4294901760, %v7845_v51 }
 0x53c   : > { %8847 = vst [vmem:[#allocation11_spill] sm:$0xff] %v7838_v18  ;;  %4174 = vmatmul.f32.gmra.mxu3 %v7804_v7  ;;  %v7853_v18 = vand.u32 4294901760, %v3950_v63  ;;  %v4085_v38 = vsub.f32 %v7845_v51, %v8711_v26 }
 0x53d   : > { %v3366_v14 = vpop.f32.mrf.mxu0  ;;  %v3473_v34 = vpop.f32.mrf.mxu1 }
 0x53e   : > { %v3470_v40 = vadd.f32 %v3469_v56, %v3366_v14  ;;  %v3567_v3 = vpop.f32.mrf.mxu2 }
 0x53f   : > { %v3679_v5 = vpop.f32.mrf.mxu3 }
 0x540   : > { %v3568_v24 = vadd.f32 %v3567_v3, %v3470_v40  ;;  %3771 = vmatmul.f32.gmra.mxu0 %v7577_v57  ;;  %3858 = vmatmul.f32.gmra.mxu1 %v7586_v25  ;;  %v7862_v3 = vsub.f32 %v3950_v63, %v7853_v18 }
 0x542   : > { %v7855_v16 = vadd.f32 %v3679_v5, %v3568_v24  ;;  %4079 = vmatmul.f32.gmra.mxu2 %v4078_v50  ;;  %8850 = vst [vmem:[#allocation31_spill] sm:$0xff] %v7862_v3  ;;  %v4086_v5 = vand.u32 4294901760, %v4085_v38  ;;  %v8712_v24 = vand.u32 4294901760, %v7862_v3 }
 0x544   : > { %8849 = vst [vmem:[#allocation9_spill] sm:$0xff] %v7855_v16  ;;  %4178 = vmatmul.f32.gmra.mxu3 %v7820_v41  ;;  %v4093_v63 = vsub.f32 %v7862_v3, %v8712_v24 }
 0x545   : > { %v3374_v57 = vpop.f32.mrf.mxu0  ;;  %v3477_v56 = vpop.f32.mrf.mxu1 }
 0x546   : > { %v3474_v14 = vadd.f32 %v3473_v34, %v3374_v57  ;;  %v3572_v13 = vpop.f32.mrf.mxu2  ;;  %v4094_v38 = vand.u32 4294901760, %v4093_v63 }
 0x547   : > { %v3685_v39 = vpop.f32.mrf.mxu3 }
 0x548   : > { %v3573_v40 = vadd.f32 %v3572_v13, %v3474_v14  ;;  %3775 = vmatmul.f32.gmra.mxu0 %v7586_v25  ;;  %3862 = vmatmul.f32.gmra.mxu1 %v7598_v44 }
 0x54a   : > { %v7867_v50 = vadd.f32 %v3685_v39, %v3573_v40  ;;  %4087 = vmatmul.f32.gmra.mxu2 %v4086_v5 }
 0x54c   : > { %8851 = vst [vmem:[#allocation34_spill] sm:$0xff] %v7867_v50  ;;  %4182 = vmatmul.f32.gmra.mxu3 %v7836_v55 }
 0x54d   : > { %v3382_v34 = vpop.f32.mrf.mxu0  ;;  %v3481_v57 = vpop.f32.mrf.mxu1 }
 0x54e   : > { %v3478_v26 = vadd.f32 %v3477_v56, %v3382_v34  ;;  %v3577_v14 = vpop.f32.mrf.mxu2 }
 0x54f   : > { %v3691_v13 = vpop.f32.mrf.mxu3 }
 0x550   : > { %v3578_v25 = vadd.f32 %v3577_v14, %v3478_v26  ;;  %3779 = vmatmul.f32.gmra.mxu0 %v7598_v44  ;;  %3866 = vmatmul.f32.gmra.mxu1 %v7612_v19  ;;  %v8852_v26 = vand.u32 4294901760, %v7622_v31 }
 0x552   : > { %v7875_v39 = vadd.f32 %v3691_v13, %v3578_v25  ;;  %4095 = vmatmul.f32.gmra.mxu2 %v4094_v38 }
 0x554   : > { %4186 = vmatmul.f32.gmra.mxu3 %v7853_v18 }
 0x555   : > { %v3390_v40 = vpop.f32.mrf.mxu0  ;;  %v3807_v5 = vpop.f32.mrf.mxu1 }
 0x556   : > { %v3482_v50 = vadd.f32 %v3481_v57, %v3390_v40  ;;  %v3582_v24 = vpop.f32.mrf.mxu2 }
 0x557   : > { %v3697_v3 = vpop.f32.mrf.mxu3 }
 0x558   : > { %v3583_v16 = vadd.f32 %v3582_v24, %v3482_v50  ;;  %3783 = vmatmul.f32.gmra.mxu0 %v7612_v19  ;;  %4312 = vmatmul.f32.vlgmr.msra.gmra.mxu1 %v8852_v26  ;;  %v8853_v19 = vand.u32 4294901760, %v7637_v60 }
 0x55a   : > { %v7881_v44 = vadd.f32 %v3697_v3, %v3583_v16  ;;  %4429 = vmatmul.f32.vlgmr.msrb.gmra.mxu2 %v7614_v53 }
 0x55c   : > { %4512 = vmatmul.f32.vlgmr.msrb.gmra.mxu3 %v7614_v53 }
 0x55d   : > { %v3724_v56 = vpop.f32.mrf.mxu0  ;;  %v3811_v63 = vpop.f32.mrf.mxu1 }
 0x55e   : > { %v3725_v34 = vadd.f32 %v3724_v56, %v7662_v21  ;;  %v3976_v14 = vpop.f32.mrf.mxu2 }
 0x55f   : > { %v4127_v57 = vpop.f32.mrf.mxu3 }
 0x560   : > { %v3808_v13 = vadd.f32 %v3807_v5, %v3725_v34  ;;  %v7886_v25 = vadd.f32 %v4127_v57, %v3976_v14  ;;  %4212 = vmatmul.f32.vlgmr.msra.gmra.mxu0 %v7622_v31  ;;  %4318 = vmatmul.f32.gmra.mxu1 %v8853_v19  ;;  %v8854_v31 = vand.u32 4294901760, %v7653_v15 }
 0x562   : > { %4433 = vmatmul.f32.gmra.mxu2 %v7629_v9 }
 0x564   : > { %4516 = vmatmul.f32.gmra.mxu3 %v7629_v9 }
 0x565   : > { %v3728_v16 = vpop.f32.mrf.mxu0  ;;  %v3815_v53 = vpop.f32.mrf.mxu1 }
 0x566   : > { %v3729_v3 = vadd.f32 %v3728_v16, %v7678_v28  ;;  %v3984_v24 = vpop.f32.mrf.mxu2 }
 0x567   : > { %v4131_v21 = vpop.f32.mrf.mxu3 }
 0x568   : > { %v3812_v50 = vadd.f32 %v3811_v63, %v3729_v3  ;;  %v7894_v38 = vadd.f32 %v4131_v21, %v3984_v24  ;;  %4217 = vmatmul.f32.gmra.mxu0 %v7637_v60  ;;  %4324 = vmatmul.f32.gmra.mxu1 %v8854_v31  ;;  %v8855_v60 = vand.u32 4294901760, %v7669_v23 }
 0x56a   : > { %4437 = vmatmul.f32.gmra.mxu2 %v7644_v17 }
 0x56c   : > { %4520 = vmatmul.f32.gmra.mxu3 %v7644_v17 }
 0x56d   : > { %v3732_v40 = vpop.f32.mrf.mxu0  ;;  %v3819_v9 = vpop.f32.mrf.mxu1 }
 0x56e   : > { %v3733_v5 = vadd.f32 %v3732_v40, %v7694_v43  ;;  %v3992_v26 = vpop.f32.mrf.mxu2 }
 0x56f   : > { %v4135_v28 = vpop.f32.mrf.mxu3 }
 0x570   : > { %v3816_v56 = vadd.f32 %v3815_v53, %v3733_v5  ;;  %v7902_v34 = vadd.f32 %v4135_v28, %v3992_v26  ;;  %4222 = vmatmul.f32.gmra.mxu0 %v7653_v15  ;;  %4330 = vmatmul.f32.gmra.mxu1 %v8855_v60  ;;  %v8856_v15 = vand.u32 4294901760, %v7685_v6  ;;  %v7916_v53 = vadd.f32 %v3808_v13, %v7478_v32 }
 0x571   : > { %v7927_v32 = vadd.f32 %v3812_v50, %v7487_v0 }
 0x572   : > { %4441 = vmatmul.f32.gmra.mxu2 %v7660_v49  ;;  %v7938_v0 = vadd.f32 %v3816_v56, %v7496_v27 }
 0x574   : > { %4524 = vmatmul.f32.gmra.mxu3 %v7660_v49 }
 0x575   : > { %v3736_v63 = vpop.f32.mrf.mxu0  ;;  %v3823_v17 = vpop.f32.mrf.mxu1 }
 0x576   : > { %v3737_v14 = vadd.f32 %v3736_v63, %v7710_v36  ;;  %v4000_v57 = vpop.f32.mrf.mxu2 }
 0x577   : > { %v4139_v43 = vpop.f32.mrf.mxu3 }
 0x578   : > { %v3820_v19 = vadd.f32 %v3819_v9, %v3737_v14  ;;  %v7910_v16 = vadd.f32 %v4139_v43, %v4000_v57  ;;  %4227 = vmatmul.f32.gmra.mxu0 %v7669_v23  ;;  %4336 = vmatmul.f32.gmra.mxu1 %v8856_v15  ;;  %v8857_v23 = vand.u32 4294901760, %v7701_v45 }
 0x57a   : > { %4445 = vmatmul.f32.gmra.mxu2 %v7676_v62  ;;  %v7949_v27 = vadd.f32 %v3820_v19, %v7505_v33 }
 0x57c   : > { %4528 = vmatmul.f32.gmra.mxu3 %v7676_v62 }
 0x57d   : > { %v3740_v49 = vpop.f32.mrf.mxu0  ;;  %v3827_v3 = vpop.f32.mrf.mxu1 }
 0x57e   : > { %v3741_v36 = vadd.f32 %v3740_v49, %v7726_v52  ;;  %v4008_v24 = vpop.f32.mrf.mxu2 }
 0x57f   : > { %v4143_v21 = vpop.f32.mrf.mxu3 }
 0x580   : > { %v3824_v31 = vadd.f32 %v3823_v17, %v3741_v36  ;;  %v7921_v40 = vadd.f32 %v4143_v21, %v4008_v24  ;;  %4232 = vmatmul.f32.gmra.mxu0 %v7685_v6  ;;  %4342 = vmatmul.f32.gmra.mxu1 %v8857_v23  ;;  %v8858_v6 = vand.u32 4294901760, %v7717_v8 }
 0x582   : > { %4449 = vmatmul.f32.gmra.mxu2 %v7692_v1  ;;  %v7960_v33 = vadd.f32 %v3824_v31, %v7514_v48 }
 0x584   : > { %4532 = vmatmul.f32.gmra.mxu3 %v7692_v1 }
 0x585   : > { %v3744_v62 = vpop.f32.mrf.mxu0  ;;  %v3831_v13 = vpop.f32.mrf.mxu1 }
 0x586   : > { %v3745_v52 = vadd.f32 %v3744_v62, %v7742_v54  ;;  %v4016_v9 = vpop.f32.mrf.mxu2 }
 0x587   : > { %v4147_v5 = vpop.f32.mrf.mxu3 }
 0x588   : > { %v3828_v26 = vadd.f32 %v3827_v3, %v3745_v52  ;;  %v7932_v28 = vadd.f32 %v4147_v5, %v4016_v9  ;;  %4237 = vmatmul.f32.gmra.mxu0 %v7701_v45  ;;  %4348 = vmatmul.f32.gmra.mxu1 %v8858_v6  ;;  %v8859_v45 = vand.u32 4294901760, %v7733_v20  ;;  %v8865_v9 = vld [vmem:[#allocation16_spill] sm:$0xff] }
 0x58a   : > { %4453 = vmatmul.f32.gmra.mxu2 %v7708_v59  ;;  %v7972_v36 = vadd.f32 %v3828_v26, %v7523_v42 }
 0x58c   : > { %4536 = vmatmul.f32.gmra.mxu3 %v7708_v59 }
 0x58d   : > { %v3748_v1 = vpop.f32.mrf.mxu0  ;;  %v3835_v50 = vpop.f32.mrf.mxu1 }
 0x58e   : > { %v3749_v54 = vadd.f32 %v3748_v1, %v7758_v11  ;;  %v4024_v60 = vpop.f32.mrf.mxu2 }
 0x58f   : > { %v4151_v63 = vpop.f32.mrf.mxu3 }
 0x590   : > { %v3832_v17 = vadd.f32 %v3831_v13, %v3749_v54  ;;  %v7943_v14 = vadd.f32 %v4151_v63, %v4024_v60  ;;  %4242 = vmatmul.f32.gmra.mxu0 %v7717_v8  ;;  %4354 = vmatmul.f32.gmra.mxu1 %v8859_v45  ;;  %v8860_v8 = vand.u32 4294901760, %v7749_v58  ;;  %v8868_v54 = vld [vmem:[#allocation17_spill] sm:$0xff] }
 0x592   : > { %4457 = vmatmul.f32.gmra.mxu2 %v7724_v22  ;;  %v7984_v31 = vadd.f32 %v3832_v17, %v7532_v61 }
 0x594   : > { %4540 = vmatmul.f32.gmra.mxu3 %v7724_v22 }
 0x595   : > { %v3752_v59 = vpop.f32.mrf.mxu0  ;;  %v3839_v56 = vpop.f32.mrf.mxu1 }
 0x596   : > { %v3753_v11 = vadd.f32 %v3752_v59, %v7774_v29  ;;  %v4032_v57 = vpop.f32.mrf.mxu2 }
 0x597   : > { %v4155_v43 = vpop.f32.mrf.mxu3 }
 0x598   : > { %v3836_v15 = vadd.f32 %v3835_v50, %v3753_v11  ;;  %v7954_v49 = vadd.f32 %v4155_v43, %v4032_v57  ;;  %4247 = vmatmul.f32.gmra.mxu0 %v7733_v20  ;;  %4360 = vmatmul.f32.gmra.mxu1 %v8860_v8  ;;  %v8861_v20 = vand.u32 4294901760, %v7765_v12  ;;  %v8870_v57 = vand.u32 4294901760, %v7829_v46  ;;  %v8871_v43 = vld [vmem:[#allocation18_spill] sm:$0xff] }
 0x59a   : > { %4461 = vmatmul.f32.gmra.mxu2 %v7740_v30  ;;  %v7997_v61 = vadd.f32 %v3836_v15, %v8865_v9 }
 0x59c   : > { %4544 = vmatmul.f32.gmra.mxu3 %v7740_v30 }
 0x59d   : > { %v3756_v22 = vpop.f32.mrf.mxu0  ;;  %v3843_v19 = vpop.f32.mrf.mxu1 }
 0x59e   : > { %v7964_v29 = vpop.f32.mrf.mxu2  ;;  %v3757_v13 = vadd.f32 %v3756_v22, %v7790_v35  ;;  %v8866_v35 = vld [vmem:[#allocation10_spill] sm:$0xff] }
 0x59f   : > { %v7966_v3 = vpop.f32.mrf.mxu3 }
 0x5a0   : > { %4252 = vmatmul.f32.gmra.mxu0 %v7749_v58  ;;  %4366 = vmatmul.f32.gmra.mxu1 %v8861_v20  ;;  %v8862_v58 = vand.u32 4294901760, %v7781_v2  ;;  %v3840_v5 = vadd.f32 %v3839_v56, %v3757_v13  ;;  %v8869_v56 = vld [vmem:[#allocation5_spill] sm:$0xff] }
 0x5a2   : > { %4465 = vmatmul.f32.gmra.mxu2 %v7756_v47  ;;  %v8010_v60 = vadd.f32 %v3840_v5, %v8868_v54  ;;  %v8875_v5 = vld [vmem:[#allocation9_spill] sm:$0xff] }
 0x5a4   : > { %4548 = vmatmul.f32.gmra.mxu3 %v7756_v47 }
 0x5a5   : > { %v3760_v48 = vpop.f32.mrf.mxu0  ;;  %v3847_v30 = vpop.f32.mrf.mxu1 }
 0x5a6   : > { %v7976_v24 = vpop.f32.mrf.mxu2  ;;  %v3761_v50 = vadd.f32 %v3760_v48, %v8866_v35  ;;  %v8872_v48 = vld [vmem:[#allocation11_spill] sm:$0xff] }
 0x5a7   : > { %v7978_v21 = vpop.f32.mrf.mxu3 }
 0x5a8   : > { %4257 = vmatmul.f32.gmra.mxu0 %v7765_v12  ;;  %4372 = vmatmul.f32.gmra.mxu1 %v8862_v58  ;;  %v8863_v12 = vld [vmem:[#allocation6_spill] sm:$0xff]  ;;  %v3844_v63 = vadd.f32 %v3843_v19, %v3761_v50 }
 0x5a9   : > { %v8864_v52 = vand.u32 4294901760, %v8863_v12  ;;  %v8878_v50 = vld [vmem:[#allocation22_spill] sm:$0xff] }
 0x5aa   : > { %4469 = vmatmul.f32.gmra.mxu2 %v7772_v4  ;;  %v8023_v15 = vadd.f32 %v3844_v63, %v8871_v43 }
 0x5ac   : > { %4552 = vmatmul.f32.gmra.mxu3 %v7772_v4 }
 0x5ad   : > { %v3764_v42 = vpop.f32.mrf.mxu0  ;;  %v3851_v47 = vpop.f32.mrf.mxu1 }
 0x5ae   : > { %v7988_v23 = vpop.f32.mrf.mxu2  ;;  %v3765_v11 = vadd.f32 %v3764_v42, %v8869_v56  ;;  %v8874_v42 = vld [vmem:[#allocation20_spill] sm:$0xff] }
 0x5af   : > { %v7990_v62 = vpop.f32.mrf.mxu3 }
 0x5b0   : > { %4262 = vmatmul.f32.gmra.mxu0 %v7781_v2  ;;  %4378 = vmatmul.f32.gmra.mxu1 %v8864_v52  ;;  %v8867_v2 = vand.u32 4294901760, %v7813_v10  ;;  %v3848_v8 = vadd.f32 %v3847_v30, %v3765_v11 }
 0x5b2   : > { %4473 = vmatmul.f32.gmra.mxu2 %v7788_v37  ;;  %v8036_v13 = vadd.f32 %v3848_v8, %v8874_v42 }
 0x5b4   : > { %4556 = vmatmul.f32.gmra.mxu3 %v7788_v37 }
 0x5b5   : > { %v3768_v4 = vpop.f32.mrf.mxu0  ;;  %v3855_v26 = vpop.f32.mrf.mxu1 }
 0x5b6   : > { %v8001_v6 = vpop.f32.mrf.mxu2  ;;  %v3769_v58 = vadd.f32 %v3768_v4, %v8872_v48 }
 0x5b7   : > { %v8003_v1 = vpop.f32.mrf.mxu3 }
 0x5b8   : > { %4267 = vmatmul.f32.gmra.mxu0 %v8863_v12  ;;  %4384 = vmatmul.f32.gmra.mxu1 %v8867_v2  ;;  %v3852_v30 = vadd.f32 %v3851_v47, %v3769_v58 }
 0x5ba   : > { %4477 = vmatmul.f32.gmra.mxu2 %v7804_v7  ;;  %v8049_v2 = vadd.f32 %v3852_v30, %v8878_v50  ;;  %v8881_v30 = vld [vmem:[#allocation25_spill] sm:$0xff] }
 0x5bc   : > { %4560 = vmatmul.f32.gmra.mxu3 %v7804_v7 }
 0x5bd   : > { %v3772_v37 = vpop.f32.mrf.mxu0  ;;  %v3859_v17 = vpop.f32.mrf.mxu1 }
 0x5be   : > { %v8014_v45 = vpop.f32.mrf.mxu2  ;;  %v3773_v4 = vadd.f32 %v3772_v37, %v8875_v5  ;;  %v8879_v37 = vld [vmem:[#allocation34_spill] sm:$0xff] }
 0x5bf   : > { %v8016_v59 = vpop.f32.mrf.mxu3 }
 0x5c0   : > { %4272 = vmatmul.f32.gmra.mxu0 %v7813_v10  ;;  %4390 = vmatmul.f32.gmra.mxu1 %v8870_v57  ;;  %v8873_v10 = vand.u32 4294901760, %v7845_v51  ;;  %v3856_v47 = vadd.f32 %v3855_v26, %v3773_v4 }
 0x5c2   : > { %4481 = vmatmul.f32.gmra.mxu2 %v7820_v41 }
 0x5c4   : > { %4564 = vmatmul.f32.gmra.mxu3 %v7820_v41 }
 0x5c5   : > { %v3776_v7 = vpop.f32.mrf.mxu0  ;;  %v3863_v22 = vpop.f32.mrf.mxu1 }
 0x5c6   : > { %v8027_v19 = vpop.f32.mrf.mxu2  ;;  %v3777_v11 = vadd.f32 %v3776_v7, %v8879_v37 }
 0x5c7   : > { %v8029_v20 = vpop.f32.mrf.mxu3 }
 0x5c8   : > { %4277 = vmatmul.f32.gmra.mxu0 %v7829_v46  ;;  %4396 = vmatmul.f32.gmra.mxu1 %v8873_v10  ;;  %v8876_v46 = vld [vmem:[#allocation31_spill] sm:$0xff]  ;;  %v3860_v43 = vadd.f32 %v3859_v17, %v3777_v11 }
 0x5c9   : > { %v8877_v35 = vand.u32 4294901760, %v8876_v46 }
 0x5ca   : > { %4485 = vmatmul.f32.gmra.mxu2 %v7836_v55  ;;  %v8065_v5 = vadd.f32 %v3860_v43, %v8881_v30 }
 0x5cc   : > { %4568 = vmatmul.f32.gmra.mxu3 %v7836_v55 }
 0x5cd   : > { %v3780_v41 = vpop.f32.mrf.mxu0  ;;  %v3867_v12 = vpop.f32.mrf.mxu1 }
 0x5ce   : > { %v8040_v52 = vpop.f32.mrf.mxu2  ;;  %v3781_v10 = vadd.f32 %v3780_v41, %v7875_v39  ;;  %v8882_v39 = vld [vmem:[#allocation28_spill] sm:$0xff] }
 0x5cf   : > { %v8042_v9 = vpop.f32.mrf.mxu3 }
 0x5d0   : > { %4282 = vmatmul.f32.gmra.mxu0 %v7845_v51  ;;  %4402 = vmatmul.f32.gmra.mxu1 %v8877_v35  ;;  %v8880_v51 = vld [vmem:[#allocation24_spill] sm:$0xff]  ;;  %v3864_v7 = vadd.f32 %v3863_v22, %v3781_v10 }
 0x5d1   : > { %v8060_v57 = vadd.f32 %v3856_v47, %v8880_v51 }
 0x5d2   : > { %4489 = vmatmul.f32.gmra.mxu2 %v7853_v18  ;;  %v8073_v41 = vadd.f32 %v3864_v7, %v8882_v39 }
 0x5d4   : > { %4572 = vmatmul.f32.gmra.mxu3 %v7853_v18 }
 0x5d5   : > { %v3784_v55 = vpop.f32.mrf.mxu0  ;;  %v4313_v54 = vpop.f32.mrf.mxu1 }
 0x5d6   : > { %v8053_v63 = vpop.f32.mrf.mxu2  ;;  %v3785_v11 = vadd.f32 %v3784_v55, %v7881_v44 }
 0x5d7   : > { %v8055_v56 = vpop.f32.mrf.mxu3 }
 0x5d8   : > { %4287 = vmatmul.f32.gmra.mxu0 %v8876_v46  ;;  %v3868_v43 = vadd.f32 %v3867_v12, %v3785_v11 }
 0x5dd   : > { %v4213_v8 = vpop.f32.mrf.mxu0  ;;  %v4319_v48 = vpop.f32.mrf.mxu1 }
 0x5de   : > { %v4214_v26 = vadd.f32 %v4213_v8, %v7886_v25  ;;  %v4430_v58 = vpop.f32.mrf.mxu2 }
 0x5df   : > { %v4513_v18 = vpop.f32.mrf.mxu3 }
 0x5e0   : > { %v4314_v42 = vadd.f32 %v4313_v54, %v4214_v26 }
 0x5e2   : > { %v4431_v4 = vadd.f32 %v4430_v58, %v4314_v42  ;;  %v8883_v42 = vld [vmem:[#allocation4_spill] sm:$0xff] }
 0x5e3   : > { %v8080_v30 = vadd.f32 %v3868_v43, %v8883_v42 }
 0x5e4   : > { %v4514_v35 = vadd.f32 %v4513_v18, %v4431_v4 }
 0x5e5   : > { %v4218_v46 = vpop.f32.mrf.mxu0  ;;  %v4325_v50 = vpop.f32.mrf.mxu1 }
 0x5e6   : > { %v8068_v47 = vadd.f32 %v4514_v35, %v7916_v53  ;;  %v4219_v17 = vadd.f32 %v4218_v46, %v7894_v38  ;;  %v4434_v37 = vpop.f32.mrf.mxu2 }
 0x5e7   : > { %v4517_v25 = vpop.f32.mrf.mxu3 }
 0x5e8   : > { %v4320_v51 = vadd.f32 %v4319_v48, %v4219_v17 }
 0x5ea   : > { %v4435_v54 = vadd.f32 %v4434_v37, %v4320_v51 }
 0x5ec   : > { %v4518_v8 = vadd.f32 %v4517_v25, %v4435_v54 }
 0x5ed   : > { %v4223_v22 = vpop.f32.mrf.mxu0  ;;  %v4331_v26 = vpop.f32.mrf.mxu1 }
 0x5ee   : > { %v8076_v58 = vadd.f32 %v4518_v8, %v7927_v32  ;;  %v4224_v53 = vadd.f32 %v4223_v22, %v7902_v34  ;;  %v4438_v18 = vpop.f32.mrf.mxu2 }
 0x5ef   : > { %v4521_v38 = vpop.f32.mrf.mxu3 }
 0x5f0   : > { %v4326_v10 = vadd.f32 %v4325_v50, %v4224_v53 }
 0x5f2   : > { %v4439_v44 = vadd.f32 %v4438_v18, %v4326_v10 }
 0x5f4   : > { %v4522_v55 = vadd.f32 %v4521_v38, %v4439_v44 }
 0x5f5   : > { %v4228_v48 = vpop.f32.mrf.mxu0  ;;  %v4337_v4 = vpop.f32.mrf.mxu1 }
 0x5f6   : > { %v8083_v12 = vadd.f32 %v4522_v55, %v7938_v0  ;;  %v4229_v7 = vadd.f32 %v4228_v48, %v7910_v16  ;;  %v4442_v35 = vpop.f32.mrf.mxu2 }
 0x5f7   : > { %v4525_v32 = vpop.f32.mrf.mxu3 }
 0x5f8   : > { %v4332_v46 = vadd.f32 %v4331_v26, %v4229_v7 }
 0x5fa   : > { %v4443_v17 = vadd.f32 %v4442_v35, %v4332_v46 }
 0x5fc   : > { %v4526_v34 = vadd.f32 %v4525_v32, %v4443_v17 }
 0x5fd   : > { %v4233_v37 = vpop.f32.mrf.mxu0  ;;  %v4343_v25 = vpop.f32.mrf.mxu1 }
 0x5fe   : > { %v8087_v50 = vadd.f32 %v4526_v34, %v7949_v27  ;;  %v4234_v11 = vadd.f32 %v4233_v37, %v7921_v40  ;;  %v4446_v51 = vpop.f32.mrf.mxu2 }
 0x5ff   : > { %v4529_v39 = vpop.f32.mrf.mxu3 }
 0x600   : > { %v4338_v54 = vadd.f32 %v4337_v4, %v4234_v11 }
 0x602   : > { %v4447_v43 = vadd.f32 %v4446_v51, %v4338_v54 }
 0x604   : > { %v4530_v0 = vadd.f32 %v4529_v39, %v4447_v43 }
 0x605   : > { %v4238_v8 = vpop.f32.mrf.mxu0  ;;  %v4349_v22 = vpop.f32.mrf.mxu1 }
 0x606   : > { %v8091_v16 = vadd.f32 %v4530_v0, %v7960_v33  ;;  %v4239_v26 = vadd.f32 %v4238_v8, %v7932_v28  ;;  %v4450_v53 = vpop.f32.mrf.mxu2 }
 0x607   : > { %v4533_v18 = vpop.f32.mrf.mxu3 }
 0x608   : > { %v4344_v38 = vadd.f32 %v4343_v25, %v4239_v26 }
 0x60a   : > { %v4451_v10 = vadd.f32 %v4450_v53, %v4344_v38 }
 0x60c   : > { %v4534_v27 = vadd.f32 %v4533_v18, %v4451_v10 }
 0x60d   : > { %v4243_v42 = vpop.f32.mrf.mxu0  ;;  %v4355_v44 = vpop.f32.mrf.mxu1 }
 0x60e   : > { %v8095_v40 = vadd.f32 %v4534_v27, %v7972_v36  ;;  %v4244_v55 = vadd.f32 %v4243_v42, %v7943_v14  ;;  %v4454_v48 = vpop.f32.mrf.mxu2  ;;  %v4160_v36 = vadd.f32 %v7966_v3, %v7964_v29 }
 0x60f   : > { %v4537_v4 = vpop.f32.mrf.mxu3 }
 0x610   : > { %v4350_v7 = vadd.f32 %v4349_v22, %v4244_v55 }
 0x612   : > { %v4455_v35 = vadd.f32 %v4454_v48, %v4350_v7 }
 0x614   : > { %v4538_v33 = vadd.f32 %v4537_v4, %v4455_v35 }
 0x615   : > { %v4248_v32 = vpop.f32.mrf.mxu0  ;;  %v4361_v46 = vpop.f32.mrf.mxu1 }
 0x616   : > { %v8099_v28 = vadd.f32 %v4538_v33, %v7984_v31  ;;  %v4249_v17 = vadd.f32 %v4248_v32, %v7954_v49  ;;  %v4458_v34 = vpop.f32.mrf.mxu2 }
 0x617   : > { %v4541_v37 = vpop.f32.mrf.mxu3 }
 0x618   : > { %v4356_v25 = vadd.f32 %v4355_v44, %v4249_v17 }
 0x61a   : > { %v4459_v11 = vadd.f32 %v4458_v34, %v4356_v25  ;;  %v4176_v34 = vadd.f32 %v8016_v59, %v8014_v45  ;;  %v4172_v25 = vadd.f32 %v8003_v1, %v8001_v6 }
 0x61c   : > { %v4542_v14 = vadd.f32 %v4541_v37, %v4459_v11 }
 0x61d   : > { %v4253_v51 = vpop.f32.mrf.mxu0  ;;  %v4367_v39 = vpop.f32.mrf.mxu1 }
 0x61e   : > { %v8105_v54 = vadd.f32 %v4542_v14, %v7997_v61  ;;  %v4254_v43 = vadd.f32 %v4253_v51, %v4160_v36  ;;  %v4462_v0 = vpop.f32.mrf.mxu2  ;;  %v4168_v36 = vadd.f32 %v7990_v62, %v7988_v23  ;;  %v4184_v14 = vadd.f32 %v8042_v9, %v8040_v52 }
 0x61f   : > { %v4545_v8 = vpop.f32.mrf.mxu3  ;;  %v4188_v52 = vadd.f32 %v8055_v56, %v8053_v63 }
 0x620   : > { %v4362_v31 = vadd.f32 %v4361_v46, %v4254_v43 }
 0x622   : > { %v4463_v22 = vadd.f32 %v4462_v0, %v4362_v31 }
 0x624   : > { %v4546_v26 = vadd.f32 %v4545_v8, %v4463_v22 }
 0x625   : > { %v4258_v49 = vpop.f32.mrf.mxu0  ;;  %v4373_v53 = vpop.f32.mrf.mxu1 }
 0x626   : > { %v8108_v18 = vadd.f32 %v4546_v26, %v8010_v60  ;;  %v4466_v38 = vpop.f32.mrf.mxu2  ;;  %v4180_v60 = vadd.f32 %v8029_v20, %v8027_v19  ;;  %v4164_v19 = vadd.f32 %v7978_v21, %v7976_v24 }
 0x627   : > { %v4549_v10 = vpop.f32.mrf.mxu3 }
 0x628   : > { %v4259_v22 = vadd.f32 %v4258_v49, %v4164_v19  ;;  %v8169_v19 = vand.u32 4294901760, %v8108_v18 }
 0x62a   : > { %v4368_v9 = vadd.f32 %v4367_v39, %v4259_v22  ;;  %v4592_v22 = vlaneseq }
 0x62d   : > { %v4263_v29 = vpop.f32.mrf.mxu0  ;;  %v4379_v27 = vpop.f32.mrf.mxu1 }
 0x62e   : > { %v4470_v3 = vpop.f32.mrf.mxu2  ;;  %v4264_v20 = vadd.f32 %v4263_v29, %v4168_v36 }
 0x62f   : > { %v4553_v42 = vpop.f32.mrf.mxu3 }
 0x630   : > { %v4374_v23 = vadd.f32 %v4373_v53, %v4264_v20 }
 0x632   : > { %v4471_v21 = vadd.f32 %v4470_v3, %v4374_v23 }
 0x635   : > { %v4268_v44 = vpop.f32.mrf.mxu0  ;;  %v4385_v48 = vpop.f32.mrf.mxu1 }
 0x636   : > { %v4474_v61 = vpop.f32.mrf.mxu2  ;;  %v4269_v51 = vadd.f32 %v4268_v44, %v4172_v25  ;;  %v4554_v25 = vadd.f32 %v4553_v42, %v4471_v21  ;;  %v8216_v21 = vand.u32 4294901760, %v8095_v40 }
 0x637   : > { %v4557_v55 = vpop.f32.mrf.mxu3 }
 0x638   : > { %v4380_v6 = vadd.f32 %v4379_v27, %v4269_v51  ;;  %v4467_v27 = vadd.f32 %v4466_v38, %v4368_v9  ;;  %v8207_v9 = vsub.f32 %v8108_v18, %v8169_v19 }
 0x63a   : > { %v4475_v44 = vadd.f32 %v4474_v61, %v4380_v6  ;;  %v4550_v61 = vadd.f32 %v4549_v10, %v4467_v27  ;;  %v8185_v6 = vand.u32 4294901760, %v8105_v54  ;;  %v5685_v27 = vmov 0.0  }
 0x63c   : > { %v8222_v18 = vsub.f32 %v8105_v54, %v8185_v6 }
 0x63d   : > { %v4273_v4 = vpop.f32.mrf.mxu0  ;;  %v4391_v33 = vpop.f32.mrf.mxu1 }
 0x63e   : > { %v4478_v7 = vpop.f32.mrf.mxu2  ;;  %v4274_v11 = vadd.f32 %v4273_v4, %v4176_v34 }
 0x63f   : > { %v4561_v35 = vpop.f32.mrf.mxu3 }
 0x640   : > { %v4386_v59 = vadd.f32 %v4385_v48, %v4274_v11 }
 0x645   : > { %v4278_v32 = vpop.f32.mrf.mxu0  ;;  %v4397_v43 = vpop.f32.mrf.mxu1 }
 0x646   : > { %v4482_v46 = vpop.f32.mrf.mxu2  ;;  %v4279_v37 = vadd.f32 %v4278_v32, %v4180_v60  ;;  %v4479_v32 = vadd.f32 %v4478_v7, %v4386_v59 }
 0x647   : > { %v4565_v17 = vpop.f32.mrf.mxu3 }
 0x648   : > { %v4392_v0 = vadd.f32 %v4391_v33, %v4279_v37  ;;  %v4562_v48 = vadd.f32 %v4561_v35, %v4479_v32  ;;  %v8199_v32 = vand.u32 127, %v4592_v22 }
 0x64a   : > { %v4483_v26 = vadd.f32 %v4482_v46, %v4392_v0  ;;  %v4558_v46 = vadd.f32 %v4557_v55, %v4475_v44  ;;  %v4588_v63 = vadd.f32 %v4562_v48, %v8060_v57  ;;  %v4585_v57 = vadd.f32 %v4550_v61, %v8023_v15 }
 0x64c   : > { %v4566_v60 = vadd.f32 %v4565_v17, %v4483_v26  ;;  %v4587_v3 = vadd.f32 %v4558_v46, %v8049_v2  ;;  %v8134_v55 = vand.u32 4294901760, %v4588_v63  ;;  %v8159_v51 = vand.u32 4294901760, %v4585_v57 }
 0x64d   : > { %v4283_v8 = vpop.f32.mrf.mxu0  ;;  %v4403_v34 = vpop.f32.mrf.mxu1 }
 0x64e   : > { %v4284_v45 = vadd.f32 %v4283_v8, %v4184_v14  ;;  %v4486_v31 = vpop.f32.mrf.mxu2  ;;  %v4589_v53 = vadd.f32 %v4566_v60, %v8065_v5  ;;  %v8140_v42 = vand.u32 4294901760, %v4587_v3  ;;  %v8156_v15 = vsub.f32 %v4588_v63, %v8134_v55 }
 0x64f   : > { %v4569_v4 = vpop.f32.mrf.mxu3  ;;  %v4810_v63 = vand.u32 4294901760, %v8222_v18 }
 0x650   : > { %v4398_v1 = vadd.f32 %v4397_v43, %v4284_v45  ;;  %v8130_v17 = vand.u32 4294901760, %v4589_v53  ;;  %v8162_v43 = vsub.f32 %v4587_v3, %v8140_v42 }
 0x652   : > { %v4487_v62 = vadd.f32 %v4486_v31, %v4398_v1  ;;  %v8146_v2 = vsub.f32 %v4589_v53, %v8130_v17  ;;  %v4780_v31 = vand.u32 4294901760, %v8156_v15  ;;  %v8189_v1 = vsub.f32 %v4585_v57, %v8159_v51 }
 0x653   : > { %v4786_v26 = vand.u32 4294901760, %v8162_v43 }
 0x654   : > { %v4570_v33 = vadd.f32 %v4569_v4, %v4487_v62  ;;  %v4774_v8 = vand.u32 4294901760, %v8146_v2  ;;  %v8197_v62 = vshrl.u32 %v4592_v22, 7  ;;  %v4781_v60 = vsub.f32 %v8156_v15, %v4780_v31 }
 0x655   : > { %v4288_v24 = vpop.f32.mrf.mxu0  ;;  %v4787_v48 = vsub.f32 %v8162_v43, %v4786_v26 }
 0x656   : > { %v4289_v29 = vadd.f32 %v4288_v24, %v4188_v52  ;;  %v4590_v49 = vadd.f32 %v4570_v33, %v8073_v41  ;;  %v4490_v7 = vpop.f32.mrf.mxu2  ;;  %v4586_v41 = vadd.f32 %v4554_v25, %v8036_v13  ;;  %v4775_v23 = vsub.f32 %v8146_v2, %v4774_v8 }
 0x657   : > { %v4573_v39 = vpop.f32.mrf.mxu3  ;;  %v8202_v52 = vand.u32 4294901760, %v8099_v28  ;;  %v4603_v24 = vmul.u32 2, %v8197_v62  ;;  %v4594_v25 = vadd.s32 8, %v8197_v62 }
 0x658   : > { %v4404_v37 = vadd.f32 %v4403_v34, %v4289_v29  ;;  %v8127_v56 = vand.u32 4294901760, %v4590_v49  ;;  %v8148_v14 = vand.u32 4294901760, %v4586_v41  ;;  %v4776_v29 = vand.u32 4294901760, %v4775_v23 }
 0x659   : > { %v4798_v34 = vand.u32 4294901760, %v8189_v1  ;;  %vm4611_vm9 = vcmp.eq.s32.totalorder %v8199_v32, %v4603_v24  ;;  %v8237_v54 = vsub.f32 %v8099_v28, %v8202_v52  ;;  %v8249_v28 = vand.u32 4294901760, %v8087_v50 }
 0x65a   : > { %v4491_v11 = vadd.f32 %v4490_v7, %v4404_v37  ;;  %v8137_v5 = vsub.f32 %v4590_v49, %v8127_v56  ;;  %v8173_v20 = vsub.f32 %v4586_v41, %v8148_v14  ;;  %v8231_v49 = vand.u32 4294901760, %v8091_v16 }
 0x65b   : > { %v8240_v46 = vsel %vm4611_vm9, 1.0, %v5685_v27  ;;  %v4782_v37 = vand.u32 4294901760, %v4781_v60  ;;  %v4804_v7 = vand.u32 4294901760, %v8207_v9  ;;  %v4799_v61 = vsub.f32 %v8189_v1, %v4798_v34 }
 0x65c   : > { %v4574_v35 = vadd.f32 %v4573_v39, %v4491_v11  ;;  %v4792_v44 = vand.u32 4294901760, %v8173_v20  ;;  %v8255_v11 = vsub.f32 %v8095_v40, %v8216_v21  ;;  %v4788_v39 = vand.u32 4294901760, %v4787_v48 }
 0x65d   : > { %v4637_v3 = vsel %vm4635_vm10, %v8240_v46, 0  ;;  %v8265_v41 = vand.u32 4294901760, %v8083_v12  ;;  %v8271_v40 = vsub.f32 %v8091_v16, %v8231_v49  ;;  %v4805_v57 = vsub.f32 %v8207_v9, %v4804_v7 }
 0x65e   : > { %v4591_v38 = vadd.f32 %v4574_v35, %v8080_v30  ;;  %v4768_v30 = vand.u32 4294901760, %v8137_v5  ;;  %v4793_v53 = vsub.f32 %v8173_v20, %v4792_v44  ;;  %v4604_v35 = vmul.u32 2, %v4594_v25 }
 0x65f   : > { %v8286_v16 = vsub.f32 %v8087_v50, %v8249_v28  ;;  %v4800_v22 = vand.u32 4294901760, %v4799_v61  ;;  %v8718_v23 = vand.u32 4294901760, %v8255_v11  ;;  %v8302_v50 = vsub.f32 %v8083_v12, %v8265_v41 }
 0x660   : > { %v4661_v10 = vsel %vm3888_vm6, %v4591_v38, 0  ;;  %v4769_v59 = vsub.f32 %v8137_v5, %v4768_v30  ;;  %v4794_v38 = vand.u32 4294901760, %v4793_v53  ;;  %vm4612_vm11 = vcmp.eq.s32.totalorder %v8199_v32, %v4604_v35 }
 0x661   : > { %v8143_v36 = vand.u32 4294901760, %v4661_v10  ;;  %v8305_v60 = vsel %vm4612_vm11, 1.0, %v5685_v27  ;;  %v4806_v24 = vand.u32 4294901760, %v4805_v57  ;;  %v8716_v48 = vand.u32 4294901760, %v8271_v40 }
 0x662   : > { %v4770_v33 = vand.u32 4294901760, %v4769_v59  ;;  %v8288_v59 = vsub.f32 %v4637_v3, %v4637_v3  ;;  %v8715_v53 = vand.u32 4294901760, %v8286_v16  ;;  %v4823_v61 = vsub.f32 %v8255_v11, %v8718_v23 }
 0x663   : > { %v8151_v13 = vsub.f32 %v4661_v10, %v8143_v36  ;;  %4664 = vmatpush.msrb.mxu0 %v8143_v36  ;;  %4979 = vmatpush.msra.mxu3 %v8143_v36  ;;  %v4816_v10 = vand.u32 4294901760, %v8237_v54  ;;  %v4640_v3 = vsel %vm4635_vm10, %v8305_v60, 0  ;;  %v4829_v57 = vsub.f32 %v8271_v40, %v8716_v48 }
 0x664   : > { %v4697_v25 = vand.u32 4294901760, %v8288_v59 }
 0x665   : > { %4666 = vmatpush.msrb.mxu0 %v8127_v56  ;;  %4891 = vmatpush.msra.mxu2 %v8151_v13  ;;  %v4762_v0 = vand.u32 4294901760, %v8151_v13 }
 0x666   : > { %4981 = vmatpush.msra.mxu3 %v8127_v56 }
 0x667   : > { %4668 = vmatpush.msrb.mxu0 %v8130_v17  ;;  %4894 = vmatpush.msra.mxu2 %v8137_v5  ;;  %v4763_v45 = vsub.f32 %v8151_v13, %v4762_v0 }
 0x668   : > { %4983 = vmatpush.msra.mxu3 %v8130_v17 }
 0x669   : > { %4670 = vmatpush.msrb.mxu0 %v8134_v55  ;;  %4897 = vmatpush.msra.mxu2 %v8146_v2  ;;  %v4764_v4 = vand.u32 4294901760, %v4763_v45  ;;  %v8280_v45 = vand.u32 4294901760, %v8076_v58  ;;  %v4598_v2 = vadd.s32 40, %v8197_v62 }
 0x66a   : > { %4985 = vmatpush.msra.mxu3 %v8134_v55 }
 0x66b   : > { %4672 = vmatpush.msrb.mxu0 %v8140_v42  ;;  %4765 = vmatpush.msrb.mxu1 %v4764_v4  ;;  %v4811_v4 = vsub.f32 %v8222_v18, %v4810_v63  ;;  %v8317_v12 = vsub.f32 %v8076_v58, %v8280_v45 }
 0x66c   : > { %4900 = vmatpush.msra.mxu2 %v8156_v15  ;;  %4987 = vmatpush.msra.mxu3 %v8140_v42 }
 0x66d   : > { %4674 = vmatpush.msrb.mxu0 %v8148_v14  ;;  %4771 = vmatpush.msrb.mxu1 %v4770_v33  ;;  %v8296_v33 = vand.u32 4294901760, %v8068_v47 }
 0x66e   : > { %4903 = vmatpush.msra.mxu2 %v8162_v43  ;;  %4989 = vmatpush.msra.mxu3 %v8148_v14 }
 0x66f   : > { %4676 = vmatpush.msrb.mxu0 %v8159_v51  ;;  %4777 = vmatpush.msrb.mxu1 %v4776_v29  ;;  %v4817_v29 = vsub.f32 %v8237_v54, %v4816_v10  ;;  %v8331_v58 = vsub.f32 %v8068_v47, %v8296_v33  ;;  %v8342_v47 = vsub.f32 %v4640_v3, %v4640_v3  ;;  %v4830_v3 = vand.u32 4294901760, %v4829_v57 }
 0x670   : > { %4906 = vmatpush.msra.mxu2 %v8173_v20  ;;  %4991 = vmatpush.msra.mxu3 %v8159_v51 }
 0x671   : > { %4678 = vmatpush.msrb.mxu0 %v8169_v19  ;;  %4783 = vmatpush.msrb.mxu1 %v4782_v37  ;;  %v4595_v37 = vadd.s32 16, %v8197_v62  ;;  %v4705_v48 = vand.u32 4294901760, %v8342_v47 }
 0x672   : > { %4909 = vmatpush.msra.mxu2 %v8189_v1  ;;  %4993 = vmatpush.msra.mxu3 %v8169_v19 }
 0x673   : > { %4680 = vmatpush.msrb.mxu0 %v8185_v6  ;;  %4789 = vmatpush.msrb.mxu1 %v4788_v39  ;;  %v4812_v39 = vand.u32 4294901760, %v4811_v4  ;;  %v4605_v35 = vmul.u32 2, %v4595_v37  ;;  %v4698_v4 = vsub.f32 %v8288_v59, %v4697_v25  ;;  %v4846_v37 = vand.u32 4294901760, %v8317_v12 }
 0x674   : > { %4912 = vmatpush.msra.mxu2 %v8207_v9  ;;  %4995 = vmatpush.msra.mxu3 %v8185_v6  ;;  %v8884_v9 = vand.u32 4294901760, %v8255_v11 }
 0x675   : > { %4682 = vmatpush.msrb.mxu0 %v8202_v52  ;;  %4795 = vmatpush.msrb.mxu1 %v4794_v38  ;;  %v4818_v38 = vand.u32 4294901760, %v4817_v29  ;;  %vm4613_vm12 = vcmp.eq.s32.totalorder %v8199_v32, %v4605_v35  ;;  %v4835_v29 = vsub.f32 %v8286_v16, %v8715_v53  ;;  %v4852_v35 = vand.u32 4294901760, %v8331_v58 }
 0x676   : > { %4915 = vmatpush.msra.mxu2 %v8222_v18  ;;  %4997 = vmatpush.msra.mxu3 %v8202_v52  ;;  %v4699_v53 = vand.u32 4294901760, %v4698_v4  ;;  %v4847_v57 = vsub.f32 %v8317_v12, %v4846_v37 }
 0x677   : > { %4684 = vmatpush.msrb.mxu0 %v8216_v21  ;;  %4801 = vmatpush.msrb.mxu1 %v4800_v22  ;;  %v8717_v22 = vand.u32 4294901760, %v8302_v50 }
 0x678   : > { %4918 = vmatpush.msra.mxu2 %v8237_v54  ;;  %4999 = vmatpush.msra.mxu3 %v8216_v21  ;;  %v4848_v13 = vand.u32 4294901760, %v4847_v57  ;;  %v8886_v54 = vand.u32 4294901760, %v8286_v16 }
 0x679   : > { %4686 = vmatpush.msrb.mxu0 %v8231_v49  ;;  %4807 = vmatpush.msrb.mxu1 %v4806_v24  ;;  %v4824_v24 = vand.u32 4294901760, %v4823_v61  ;;  %v4841_v61 = vsub.f32 %v8302_v50, %v8717_v22 }
 0x67a   : > { %4921 = vmatpush.msra.mxu2 %v8255_v11  ;;  %5001 = vmatpush.msra.mxu3 %v8231_v49 }
 0x67b   : > { %4688 = vmatpush.msrb.mxu0 %v8249_v28  ;;  %4813 = vmatpush.msrb.mxu1 %v4812_v39  ;;  %v8352_v39 = vsel %vm4613_vm12, 1.0, %v5685_v27  ;;  %v4842_v4 = vand.u32 4294901760, %v4841_v61 }
 0x67c   : > { %4924 = vmatpush.msra.mxu2 %v8271_v40  ;;  %5003 = vmatpush.msra.mxu3 %v8249_v28  ;;  %v4643_v22 = vsel %vm4635_vm10, %v8352_v39, 0 }
 0x67d   : > { %4690 = vmatpush.msrb.mxu0 %v8265_v41  ;;  %4819 = vmatpush.msrb.mxu1 %v4818_v38  ;;  %v4596_v38 = vadd.s32 24, %v8197_v62 }
 0x67e   : > { %4927 = vmatpush.msra.mxu2 %v8286_v16  ;;  %5005 = vmatpush.msra.mxu3 %v8265_v41 }
 0x67f   : > { %4692 = vmatpush.msrb.mxu0 %v8280_v45  ;;  %4825 = vmatpush.msrb.mxu1 %v4824_v24  ;;  %v4836_v24 = vand.u32 4294901760, %v4835_v29  ;;  %v4606_v23 = vmul.u32 2, %v4596_v38  ;;  %v4853_v29 = vsub.f32 %v8331_v58, %v4852_v35  ;;  %v4712_v38 = vsub.f32 %v4643_v22, %v4643_v22 }
 0x680   : > { %4930 = vmatpush.msra.mxu2 %v8302_v50  ;;  %5007 = vmatpush.msra.mxu3 %v8280_v45 }
 0x681   : > { %4694 = vmatpush.msrb.mxu0 %v8296_v33  ;;  %4831 = vmatpush.msrb.mxu1 %v4830_v3  ;;  %vm4614_vm13 = vcmp.eq.s32.totalorder %v8199_v32, %v4606_v23  ;;  %v4706_v3 = vsub.f32 %v8342_v47, %v4705_v48  ;;  %v4854_v23 = vand.u32 4294901760, %v4853_v29  ;;  %v4713_v22 = vand.u32 4294901760, %v4712_v38 }
 0x682   : > { %4933 = vmatpush.msra.mxu2 %v8317_v12  ;;  %5009 = vmatpush.msra.mxu3 %v8296_v33 }
 0x683   : > { %5062 = vmatpush.msra.mxu0 %v4762_v0  ;;  %4837 = vmatpush.msrb.mxu1 %v4836_v24  ;;  %v8382_v0 = vsel %vm4614_vm13, 1.0, %v5685_v27  ;;  %v4707_v61 = vand.u32 4294901760, %v4706_v3  ;;  %v4714_v15 = vsub.f32 %v4712_v38, %v4713_v22 }
 0x684   : > { %4936 = vmatpush.msra.mxu2 %v8331_v58  ;;  %4700 = vmatmul.f32.vlgmr.msrb.gmra.mxu0 %v4699_v53  ;;  %v4597_v53 = vadd.s32 32, %v8197_v62  ;;  %v4646_v5 = vsel %vm4635_vm10, %v8382_v0, 0 }
 0x685   : > { %5066 = vmatpush.msra.mxu0 %v4768_v30  ;;  %4843 = vmatpush.msrb.mxu1 %v4842_v4  ;;  %v4715_v43 = vand.u32 4294901760, %v4714_v15 }
 0x686   : > { %4939 = vmatmul.f32.vlgmr.msra.gmra.mxu2 %v8288_v59  ;;  %5013 = vmatmul.f32.vlgmr.msra.gmra.mxu3 %v4697_v25  ;;  %v4607_v30 = vmul.u32 2, %v4597_v53 }
 0x687   : > { %5070 = vmatpush.msra.mxu0 %v4774_v8  ;;  %4849 = vmatpush.msrb.mxu1 %v4848_v13  ;;  %v4720_v8 = vsub.f32 %v4646_v5, %v4646_v5 }
 0x688   : > { %vm4615_vm14 = vcmp.eq.s32.totalorder %v8199_v32, %v4607_v30 }
 0x689   : > { %5074 = vmatpush.msra.mxu0 %v4780_v31  ;;  %4855 = vmatpush.msrb.mxu1 %v4854_v23  ;;  %v8403_v31 = vsel %vm4615_vm14, 1.0, %v5685_v27 }
 0x68a   : > { %5582 = vmatmul.msk.f32.vlgmr.msrb.gmra.mxu1 %vm4635_vm10, %v8240_v46 }
 0x68b   : > { %5078 = vmatpush.msra.mxu0 %v4786_v26  ;;  %5157 = vmatpush.msra.mxu1 %v8143_v36  ;;  %v4608_v36 = vmul.u32 2, %v4598_v2  ;;  %v4721_v26 = vand.u32 4294901760, %v4720_v8 }
 0x68c   : > { %4708 = vmatmul.f32.gmra.mxu0 %v4707_v61 }
 0x68d   : > { %5082 = vmatpush.msra.mxu0 %v4792_v44  ;;  %5159 = vmatpush.msra.mxu1 %v8127_v56  ;;  %v4649_v56 = vsel %vm4635_vm10, %v8403_v31, 0  ;;  %vm4616_vm15 = vcmp.eq.s32.totalorder %v8199_v32, %v4608_v36  ;;  %v4722_v20 = vsub.f32 %v4720_v8, %v4721_v26 }
 0x68e   : > { %4944 = vmatmul.f32.gmra.mxu2 %v8342_v47  ;;  %5019 = vmatmul.f32.gmra.mxu3 %v4705_v48  ;;  %v4728_v1 = vsub.f32 %v4649_v56, %v4649_v56 }
 0x68f   : > { %5086 = vmatpush.msra.mxu0 %v4798_v34  ;;  %5161 = vmatpush.msra.mxu1 %v8130_v17  ;;  %v4599_v17 = vadd.s32 48, %v8197_v62  ;;  %v4723_v44 = vand.u32 4294901760, %v4722_v20  ;;  %v8885_v34 = vand.u32 4294901760, %v8271_v40 }
 0x690   : > { %v4729_v18 = vand.u32 4294901760, %v4728_v1 }
 0x691   : > { %5090 = vmatpush.msra.mxu0 %v4804_v7  ;;  %5163 = vmatpush.msra.mxu1 %v8134_v55  ;;  %v8425_v55 = vsel %vm4616_vm15, 1.0, %v5685_v27 }
 0x692   : > { %5583 = vmatmul.msk.f32.gmra.mxu1 %vm4635_vm10, %v8305_v60  ;;  %v4730_v7 = vsub.f32 %v4728_v1, %v4729_v18 }
 0x693   : > { %5094 = vmatpush.msra.mxu0 %v4810_v63  ;;  %5165 = vmatpush.msra.mxu1 %v8140_v42  ;;  %v4609_v42 = vmul.u32 2, %v4599_v17 }
 0x694   : > { %4716 = vmatmul.f32.gmra.mxu0 %v4715_v43  ;;  %v4731_v40 = vand.u32 4294901760, %v4730_v7 }
 0x695   : > { %5098 = vmatpush.msra.mxu0 %v4816_v10  ;;  %5167 = vmatpush.msra.mxu1 %v8148_v14  ;;  %v4652_v14 = vsel %vm4635_vm10, %v8425_v55, 0  ;;  %vm4617_vm0 = vcmp.eq.s32.totalorder %v8199_v32, %v4609_v42 }
 0x696   : > { %4949 = vmatmul.f32.gmra.mxu2 %v4712_v38  ;;  %5025 = vmatmul.f32.gmra.mxu3 %v4713_v22  ;;  %v4736_v11 = vsub.f32 %v4652_v14, %v4652_v14  ;;  %v5580_v63 = vsel %vm4617_vm0, 1.0, %v5685_v27 }
 0x697   : > { %5102 = vmatpush.msra.mxu0 %v8884_v9  ;;  %5169 = vmatpush.msra.mxu1 %v8159_v51  ;;  %v4600_v51 = vadd.s32 56, %v8197_v62  ;;  %v4655_v10 = vsel %vm4635_vm10, %v5580_v63, 0 }
 0x698   : > { %v4737_v62 = vand.u32 4294901760, %v4736_v11 }
 0x699   : > { %5106 = vmatpush.msra.mxu0 %v8885_v34  ;;  %5171 = vmatpush.msra.mxu1 %v8169_v19  ;;  %v8887_v19 = vand.u32 4294901760, %v8302_v50 }
 0x69a   : > { %5584 = vmatmul.msk.f32.gmra.mxu1 %vm4635_vm10, %v8352_v39 }
 0x69b   : > { %5110 = vmatpush.msra.mxu0 %v8886_v54  ;;  %5173 = vmatpush.msra.mxu1 %v8185_v6  ;;  %v4610_v6 = vmul.u32 2, %v4600_v51 }
 0x69c   : > { %4724 = vmatmul.f32.gmra.mxu0 %v4723_v44 }
 0x69d   : > { %5114 = vmatpush.msra.mxu0 %v8887_v19  ;;  %5175 = vmatpush.msra.mxu1 %v8202_v52  ;;  %vm4618_vm1 = vcmp.eq.s32.totalorder %v8199_v32, %v4610_v6  ;;  %v4738_v52 = vsub.f32 %v4736_v11, %v4737_v62 }
 0x69e   : > { %4954 = vmatmul.f32.gmra.mxu2 %v4720_v8  ;;  %5031 = vmatmul.f32.gmra.mxu3 %v4721_v26  ;;  %v5581_v16 = vsel %vm4618_vm1, 1.0, %v5685_v27 }
 0x69f   : > { %5118 = vmatpush.msra.mxu0 %v4846_v37  ;;  %5177 = vmatpush.msra.mxu1 %v8216_v21  ;;  %v4744_v21 = vsub.f32 %v4655_v10, %v4655_v10  ;;  %v4658_v50 = vsel %vm4635_vm10, %v5581_v16, 0 }
 0x6a1   : > { %5122 = vmatpush.msra.mxu0 %v4852_v35  ;;  %5179 = vmatpush.msra.mxu1 %v8231_v49  ;;  %v4739_v49 = vand.u32 4294901760, %v4738_v52  ;;  %v4745_v59 = vand.u32 4294901760, %v4744_v21 }
 0x6a2   : > { %5585 = vmatmul.msk.f32.gmra.mxu1 %vm4635_vm10, %v8382_v0 }
 0x6a3   : > { %5181 = vmatpush.msra.mxu1 %v8249_v28  ;;  %v4746_v32 = vsub.f32 %v4744_v21, %v4745_v59  ;;  %v4752_v28 = vsub.f32 %v4658_v50, %v4658_v50 }
 0x6a4   : > { %4732 = vmatmul.f32.gmra.mxu0 %v4731_v40 }
 0x6a5   : > { %5183 = vmatpush.msra.mxu1 %v8265_v41  ;;  %v4747_v41 = vand.u32 4294901760, %v4746_v32  ;;  %v4753_v27 = vand.u32 4294901760, %v4752_v28 }
 0x6a6   : > { %4959 = vmatmul.f32.gmra.mxu2 %v4728_v1  ;;  %5037 = vmatmul.f32.gmra.mxu3 %v4729_v18 }
 0x6a7   : > { %5185 = vmatpush.msra.mxu1 %v8280_v45  ;;  %v4754_v45 = vsub.f32 %v4752_v28, %v4753_v27 }
 0x6a9   : > { %5187 = vmatpush.msra.mxu1 %v8296_v33  ;;  %v4755_v33 = vand.u32 4294901760, %v4754_v45 }
 0x6aa   : > { %5586 = vmatmul.msk.f32.gmra.mxu1 %vm4635_vm10, %v8403_v31 }
 0x6ac   : > { %4740 = vmatmul.f32.gmra.mxu0 %v4739_v49 }
 0x6ae   : > { %4964 = vmatmul.f32.gmra.mxu2 %v4736_v11  ;;  %5043 = vmatmul.f32.gmra.mxu3 %v4737_v62 }
 0x6b2   : > { %5587 = vmatmul.msk.f32.gmra.mxu1 %vm4635_vm10, %v8425_v55 }
 0x6b4   : > { %4748 = vmatmul.f32.gmra.mxu0 %v4747_v41 }
 0x6b6   : > { %4969 = vmatmul.f32.gmra.mxu2 %v4744_v21  ;;  %5049 = vmatmul.f32.gmra.mxu3 %v4745_v59 }
 0x6ba   : > { %5588 = vmatmul.msk.f32.gmra.mxu1 %vm4635_vm10, %v5580_v63 }
 0x6bc   : > { %4756 = vmatmul.f32.gmra.mxu0 %v4755_v33 }
 0x6be   : > { %4974 = vmatmul.f32.gmra.mxu2 %v4752_v28  ;;  %5055 = vmatmul.f32.gmra.mxu3 %v4753_v27 }
 0x6c2   : > { %5589 = vmatmul.msk.f32.gmra.mxu1 %vm4635_vm10, %v5581_v16 }
 0x6c4   : > { %5590 = vmatmul.msk.f32.vlgmr.msra.gmra.mxu0 %vm4635_vm10, %v8240_v46 }
 0x6ca   : > { %5598 = vmatmul.msk.f32.vlgmr.msra.gmra.mxu1 %vm4635_vm10, %v8240_v46 }
 0x6cc   : > { %5591 = vmatmul.msk.f32.gmra.mxu0 %vm4635_vm10, %v8305_v60 }
 0x6d2   : > { %5599 = vmatmul.msk.f32.gmra.mxu1 %vm4635_vm10, %v8305_v60 }
 0x6d4   : > { %5592 = vmatmul.msk.f32.gmra.mxu0 %vm4635_vm10, %v8352_v39 }
 0x6da   : > { %5600 = vmatmul.msk.f32.gmra.mxu1 %vm4635_vm10, %v8352_v39 }
 0x6dc   : > { %5593 = vmatmul.msk.f32.gmra.mxu0 %vm4635_vm10, %v8382_v0 }
 0x6e2   : > { %5601 = vmatmul.msk.f32.gmra.mxu1 %vm4635_vm10, %v8382_v0 }
 0x6e4   : > { %5594 = vmatmul.msk.f32.gmra.mxu0 %vm4635_vm10, %v8403_v31 }
 0x6ea   : > { %5602 = vmatmul.msk.f32.gmra.mxu1 %vm4635_vm10, %v8403_v31 }
 0x6ec   : > { %5595 = vmatmul.msk.f32.gmra.mxu0 %vm4635_vm10, %v8425_v55 }
 0x6f2   : > { %5603 = vmatmul.msk.f32.gmra.mxu1 %vm4635_vm10, %v8425_v55 }
 0x6f4   : > { %5596 = vmatmul.msk.f32.gmra.mxu0 %vm4635_vm10, %v5580_v63 }
 0x6fa   : > { %5604 = vmatmul.msk.f32.gmra.mxu1 %vm4635_vm10, %v5580_v63 }
 0x6fc   : > { %5597 = vmatmul.msk.f32.gmra.mxu0 %vm4635_vm10, %v5581_v16 }
 0x701   : > { %v4701_v46 = vpop.f32.mrf.mxu0 }
 0x702   : > { %5605 = vmatmul.msk.f32.gmra.mxu1 %vm4635_vm10, %v5581_v16 }
 0x707   : > { %v4858_v60 = vpop.f32.mrf.mxu1 }
 0x708   : > { %v4859_v23 = vadd.f32 %v4858_v60, %v4701_v46 }
 0x709   : > { %v4709_v48 = vpop.f32.mrf.mxu0  ;;  %v4940_v4 = vpop.f32.mrf.mxu2 }
 0x70a   : > { %v5014_v3 = vpop.f32.mrf.mxu3  ;;  %v4941_v22 = vadd.f32 %v4940_v4, %v4859_v23 }
 0x70c   : > { %v5015_v15 = vadd.f32 %v5014_v3, %v4941_v22 }
 0x70f   : > { %v4862_v12 = vpop.f32.mrf.mxu1 }
 0x710   : > { %v4863_v2 = vadd.f32 %v4862_v12, %v4709_v48 }
 0x711   : > { %v4717_v25 = vpop.f32.mrf.mxu0  ;;  %v4945_v0 = vpop.f32.mrf.mxu2 }
 0x712   : > { %v5020_v53 = vpop.f32.mrf.mxu3  ;;  %v4946_v26 = vadd.f32 %v4945_v0, %v4863_v2 }
 0x714   : > { %v5021_v55 = vadd.f32 %v5020_v53, %v4946_v26 }
 0x717   : > { %v4866_v58 = vpop.f32.mrf.mxu1 }
 0x718   : > { %v4867_v20 = vadd.f32 %v4866_v58, %v4717_v25 }
 0x719   : > { %v4725_v47 = vpop.f32.mrf.mxu0  ;;  %v4950_v30 = vpop.f32.mrf.mxu2 }
 0x71a   : > { %v5026_v36 = vpop.f32.mrf.mxu3  ;;  %v4951_v34 = vadd.f32 %v4950_v30, %v4867_v20 }
 0x71c   : > { %v5027_v63 = vadd.f32 %v5026_v36, %v4951_v34 }
 0x71f   : > { %v4870_v37 = vpop.f32.mrf.mxu1 }
 0x720   : > { %v4871_v11 = vadd.f32 %v4870_v37, %v4725_v47 }
 0x721   : > { %v4733_v39 = vpop.f32.mrf.mxu0  ;;  %v4955_v9 = vpop.f32.mrf.mxu2 }
 0x722   : > { %v5032_v54 = vpop.f32.mrf.mxu3  ;;  %v4956_v16 = vadd.f32 %v4955_v9, %v4871_v11 }
 0x724   : > { %v5033_v45 = vadd.f32 %v5032_v54, %v4956_v16 }
 0x727   : > { %v4874_v35 = vpop.f32.mrf.mxu1 }
 0x728   : > { %v4875_v41 = vadd.f32 %v4874_v35, %v4733_v39 }
 0x729   : > { %v8496_v24 = vpop.f32.mrf.mxu0  ;;  %v4960_v52 = vpop.f32.mrf.mxu2 }
 0x72a   : > { %v5038_v32 = vpop.f32.mrf.mxu3  ;;  %v4961_v25 = vadd.f32 %v4960_v52, %v4875_v41 }
 0x72c   : > { %v5039_v53 = vadd.f32 %v5038_v32, %v4961_v25 }
 0x72f   : > { %v8498_v57 = vpop.f32.mrf.mxu1 }
 0x730   : > { %v4879_v35 = vadd.f32 %v8498_v57, %v8496_v24 }
 0x731   : > { %v8500_v29 = vpop.f32.mrf.mxu0  ;;  %v4965_v4 = vpop.f32.mrf.mxu2 }
 0x732   : > { %v4966_v36 = vadd.f32 %v4965_v4, %v4879_v35 }
 0x737   : > { %v8502_v38 = vpop.f32.mrf.mxu1 }
 0x739   : > { %v8504_v13 = vpop.f32.mrf.mxu0  ;;  %v4970_v20 = vpop.f32.mrf.mxu2 }
 0x73f   : > { %v8506_v61 = vpop.f32.mrf.mxu1 }
 0x741   : > { %v5125_v5 = vpop.f32.mrf.mxu0 }
 0x742   : > { %v5126_v8 = vadd.f32 %v5125_v5, %v5015_v15  ;;  %v5044_v5 = vpop.f32.mrf.mxu3 }
 0x747   : > { %v5190_v31 = vpop.f32.mrf.mxu1 }
 0x748   : > { %v5191_v43 = vadd.f32 %v5190_v31, %v5126_v8 }
 0x749   : > { %v5129_v56 = vpop.f32.mrf.mxu0 }
 0x74a   : > { %v5221_v17 = vand.u32 2147483647, %v5191_v43  ;;  %v5130_v42 = vadd.f32 %v5129_v56, %v5021_v55  ;;  %v4883_v55 = vadd.f32 %v8502_v38, %v8500_v29 }
 0x74c   : > { %v5229_v1 = vadd.f32 1e-05, %v5221_v17  ;;  %v4971_v11 = vadd.f32 %v4970_v20, %v4883_v55 }
 0x74e   : > { %5629 = vlog2.f32 %v5229_v1 }
 0x74f   : > { %v5194_v44 = vpop.f32.mrf.mxu1 }
 0x750   : > { %v5195_v18 = vadd.f32 %v5194_v44, %v5130_v42  ;;  %v5045_v42 = vadd.f32 %v5044_v5, %v4966_v36 }
 0x751   : > { %v5133_v14 = vpop.f32.mrf.mxu0 }
 0x752   : > { %v5222_v51 = vand.u32 2147483647, %v5195_v18  ;;  %v5134_v40 = vadd.f32 %v5133_v14, %v5027_v63 }
 0x754   : > { %v5630_v7 = vpop.eup %5629  ;;  %v5230_v19 = vadd.f32 1e-05, %v5222_v51  ;;  %v5050_v51 = vpop.f32.mrf.mxu3 }
 0x755   : > { %v5238_v6 = vmul.f32 0.6931472, %v5630_v7 }
 0x756   : > { %5631 = vlog2.f32 %v5230_v19 }
 0x757   : > { %v5253_v62 = vmul.f32 0.4, %v5238_v6  ;;  %v5198_v10 = vpop.f32.mrf.mxu1 }
 0x758   : > { %v5199_v21 = vadd.f32 %v5198_v10, %v5134_v40 }
 0x759   : > { %v5261_v49 = vmul.f32 1.442695, %v5253_v62  ;;  %v5137_v59 = vpop.f32.mrf.mxu0  ;;  %v4887_v62 = vadd.f32 %v8506_v61, %v8504_v13 }
 0x75a   : > { %v5223_v50 = vand.u32 2147483647, %v5199_v21  ;;  %v5138_v46 = vadd.f32 %v5137_v59, %v5033_v45  ;;  %v5051_v21 = vadd.f32 %v5050_v51, %v4971_v11 }
 0x75b   : > { %5633 = vpow2.f32 %v5261_v49 }
 0x75c   : > { %v5632_v28 = vpop.eup %5631  ;;  %v5231_v27 = vadd.f32 1e-05, %v5223_v50  ;;  %v4975_v50 = vpop.f32.mrf.mxu2 }
 0x75d   : > { %v5240_v33 = vmul.f32 0.6931472, %v5632_v28  ;;  %v4976_v13 = vadd.f32 %v4975_v50, %v4887_v62 }
 0x75e   : > { %5635 = vlog2.f32 %v5231_v27 }
 0x75f   : > { %v5254_v60 = vmul.f32 0.4, %v5240_v33  ;;  %v5202_v48 = vpop.f32.mrf.mxu1  ;;  %v5056_v33 = vpop.f32.mrf.mxu3 }
 0x760   : > { %v5203_v12 = vadd.f32 %v5202_v48, %v5138_v46 }
 0x761   : > { %v8508_v58 = vpop.eup %5633  ;;  %v5263_v47 = vmul.f32 1.442695, %v5254_v60  ;;  %v5141_v37 = vpop.f32.mrf.mxu0 }
 0x762   : > { %v5224_v3 = vand.u32 2147483647, %v5203_v12  ;;  %v5278_v0 = vsel %vm5277_vm2, %v8508_v58, 0.0  ;;  %v5142_v30 = vadd.f32 %v5141_v37, %v5039_v53  ;;  %v5303_v2 = vmul.f32 %v8508_v58, %v8508_v58 }
 0x763   : > { %5637 = vpow2.f32 %v5263_v47  ;;  %5279 = vadd.xlane.f32.xlu1 %v5278_v0  ;;  %v5057_v47 = vadd.f32 %v5056_v33, %v4976_v13 }
 0x764   : > { %v5636_v39 = vpop.eup %5635  ;;  %v5232_v23 = vadd.f32 1e-05, %v5224_v3  ;;  %v5311_v24 = vsel %vm5277_vm2, %v5303_v2, 0.0 }
 0x765   : > { %v5242_v22 = vmul.f32 0.6931472, %v5636_v39 }
 0x766   : > { %5639 = vlog2.f32 %v5232_v23 }
 0x767   : > { %v5255_v15 = vmul.f32 0.4, %v5242_v22  ;;  %v5206_v8 = vpop.f32.mrf.mxu1 }
 0x768   : > { %v5207_v31 = vadd.f32 %v5206_v8, %v5142_v30 }
 0x769   : > { %v8516_v43 = vpop.eup %5637  ;;  %v5265_v26 = vmul.f32 1.442695, %v5255_v15  ;;  %v5145_v56 = vpop.f32.mrf.mxu0 }
 0x76a   : > { %v5225_v17 = vand.u32 2147483647, %v5207_v31  ;;  %v5304_v57 = vmul.f32 %v8516_v43, %v8516_v43  ;;  %v5146_v34 = vadd.f32 %v5145_v56, %v5045_v42  ;;  %v5281_v29 = vsel %vm5277_vm2, %v8516_v43, 0.0 }
 0x76b   : > { %5641 = vpow2.f32 %v5265_v26  ;;  %5312 = vadd.xlane.f32.xlu1 %v5311_v24 }
 0x76c   : > { %v5640_v1 = vpop.eup %5639  ;;  %v5233_v9 = vadd.f32 1e-05, %v5225_v17  ;;  %v5314_v44 = vsel %vm5277_vm2, %v5304_v57, 0.0 }
 0x76d   : > { %v5244_v18 = vmul.f32 0.6931472, %v5640_v1  ;;  %5315 = vadd.xlane.f32.xlu2 %v5314_v44 }
 0x76e   : > { %5643 = vlog2.f32 %v5233_v9 }
 0x76f   : > { %v5256_v14 = vmul.f32 0.4, %v5244_v18  ;;  %v5210_v54 = vpop.f32.mrf.mxu1 }
 0x770   : > { %v5211_v7 = vadd.f32 %v5210_v54, %v5146_v34 }
 0x771   : > { %v8524_v19 = vpop.eup %5641  ;;  %v5267_v63 = vmul.f32 1.442695, %v5256_v14  ;;  %v5149_v6 = vpop.f32.mrf.mxu0 }
 0x772   : > { %v5226_v40 = vand.u32 2147483647, %v5211_v7  ;;  %v5305_v38 = vmul.f32 %v8524_v19, %v8524_v19  ;;  %v5284_v16 = vsel %vm5277_vm2, %v8524_v19, 0.0  ;;  %v5150_v32 = vadd.f32 %v5149_v6, %v5051_v21 }
 0x773   : > { %5645 = vpow2.f32 %v5267_v63  ;;  %5282 = vadd.xlane.f32.xlu1 %v5281_v29 }
 0x774   : > { %v5644_v10 = vpop.eup %5643  ;;  %v5234_v52 = vadd.f32 1e-05, %v5226_v40  ;;  %v5317_v49 = vsel %vm5277_vm2, %v5305_v38, 0.0 }
 0x775   : > { %v5246_v59 = vmul.f32 0.6931472, %v5644_v10  ;;  %5285 = vadd.xlane.f32.xlu2 %v5284_v16  ;;  %5318 = vadd.xlane.f32.xlu0 %v5317_v49 }
 0x776   : > { %5647 = vlog2.f32 %v5234_v52 }
 0x777   : > { %v5257_v28 = vmul.f32 0.4, %v5246_v59  ;;  %v5214_v41 = vpop.f32.mrf.mxu1 }
 0x778   : > { %v5215_v27 = vadd.f32 %v5214_v41, %v5150_v32 }
 0x779   : > { %v8535_v61 = vpop.eup %5645  ;;  %v5269_v45 = vmul.f32 1.442695, %v5257_v28  ;;  %v5153_v48 = vpop.f32.mrf.mxu0 }
 0x77a   : > { %v5227_v46 = vand.u32 2147483647, %v5215_v27  ;;  %v5306_v60 = vmul.f32 %v8535_v61, %v8535_v61  ;;  %v5287_v37 = vsel %vm5277_vm2, %v8535_v61, 0.0  ;;  %v5154_v0 = vadd.f32 %v5153_v48, %v5057_v47 }
 0x77b   : > { %5649 = vpow2.f32 %v5269_v45 }
 0x77c   : > { %v5648_v12 = vpop.eup %5647  ;;  %v5235_v25 = vadd.f32 1e-05, %v5227_v46  ;;  %v5320_v4 = vsel %vm5277_vm2, %v5306_v60, 0.0 }
 0x77d   : > { %v5248_v3 = vmul.f32 0.6931472, %v5648_v12  ;;  %5288 = vadd.xlane.f32.xlu2 %v5287_v37  ;;  %5321 = vadd.xlane.f32.xlu1 %v5320_v4 }
 0x77e   : > { %5651 = vlog2.f32 %v5235_v25 }
 0x77f   : > { %v5258_v39 = vmul.f32 0.4, %v5248_v3  ;;  %v5218_v35 = vpop.f32.mrf.mxu1 }
 0x780   : > { %v5219_v23 = vadd.f32 %v5218_v35, %v5154_v0 }
 0x781   : > { %v8542_v53 = vpop.eup %5649  ;;  %v5271_v22 = vmul.f32 1.442695, %v5258_v39 }
 0x782   : > { %v5228_v5 = vand.u32 2147483647, %v5219_v23  ;;  %v5290_v30 = vsel %vm5277_vm2, %v8542_v53, 0.0  ;;  %v5307_v2 = vmul.f32 %v8542_v53, %v8542_v53 }
 0x783   : > { %5653 = vpow2.f32 %v5271_v22  ;;  %5291 = vadd.xlane.f32.xlu0 %v5290_v30 }
 0x784   : > { %v5652_v15 = vpop.eup %5651  ;;  %v5236_v8 = vadd.f32 1e-05, %v5228_v5  ;;  %v5323_v31 = vsel %vm5277_vm2, %v5307_v2, 0.0 }
 0x785   : > { %v5250_v36 = vmul.f32 0.6931472, %v5652_v15  ;;  %5324 = vadd.xlane.f32.xlu2 %v5323_v31  ;;  %v8586_v31 = vld [vmem:[%s8659_s5] ss:$0 sm:$0xff] }
 0x786   : > { %5655 = vlog2.f32 %v5236_v8 }
 0x787   : > { %v5259_v26 = vmul.f32 0.4, %v5250_v36 }
 0x789   : > { %v8549_v56 = vpop.eup %5653  ;;  %v5273_v17 = vmul.f32 1.442695, %v5259_v26 }
 0x78a   : > { %v5293_v24 = vsel %vm5277_vm2, %v8549_v56, 0.0  ;;  %v5308_v7 = vmul.f32 %v8549_v56, %v8549_v56 }
 0x78b   : > { %5657 = vpow2.f32 %v5273_v17  ;;  %5294 = vadd.xlane.f32.xlu1 %v5293_v24 }
 0x78c   : > { %v5656_v57 = vpop.eup %5655  ;;  %v5326_v11 = vsel %vm5277_vm2, %v5308_v7, 0.0 }
 0x78d   : > { %v5252_v20 = vmul.f32 0.6931472, %v5656_v57  ;;  %v8594_v57 = vld [vmem:[%s8660_s6] ss:$0 sm:$0xff] }
 0x78f   : > { %v5260_v1 = vmul.f32 0.4, %v5252_v20 }
 0x791   : > { %v8553_v55 = vpop.eup %5657  ;;  %v5275_v9 = vmul.f32 1.442695, %v5260_v1 }
 0x792   : > { %v5296_v42 = vsel %vm5277_vm2, %v8553_v55, 0.0  ;;  %v5309_v44 = vmul.f32 %v8553_v55, %v8553_v55 }
 0x793   : > { %5659 = vpow2.f32 %v5275_v9  ;;  %5297 = vadd.xlane.f32.xlu2 %v5296_v42 }
 0x794   : > { %v5329_v18 = vsel %vm5277_vm2, %v5309_v44, 0.0 }
 0x795   : > { %5330 = vadd.xlane.f32.xlu1 %v5329_v18 }
 0x799   : > { %v8560_v34 = vpop.eup %5659 }
 0x79a   : > { %v5300_v14 = vsel %vm5299_vm3, %v8560_v34, 0.0  ;;  %v5310_v54 = vmul.f32 %v8560_v34, %v8560_v34 }
 0x79b   : > { %5301 = vadd.xlane.f32.xlu0 %v5300_v14 }
 0x79c   : > { %v5332_v51 = vsel %vm5299_vm3, %v5310_v54, 0.0 }
 0x79d   : > { %5333 = vadd.xlane.f32.xlu2 %v5332_v51 }
 0x7a3   : > { %5327 = vadd.xlane.f32.xlu0 %v5326_v11 }
 0x7d6   : > { %v5280_v63 = vpop.xlane.xlu1 %5279 }
 0x7d7   : > { %v5335_v6 = vmul.f32 0.015625, %v5280_v63 }
 0x7d9   : > { %v5351_v29 = vmul.f32 %v5335_v6, %v5335_v6  ;;  %v5375_v8 = vsub.f32 %v8508_v58, %v5335_v6 }
 0x7de   : > { %v5313_v40 = vpop.xlane.xlu1 %5312 }
 0x7df   : > { %v5343_v38 = vmul.f32 0.015625, %v5313_v40 }
 0x7e0   : > { %v5316_v62 = vpop.xlane.xlu2 %5315 }
 0x7e1   : > { %v5359_v10 = vsub.f32 %v5343_v38, %v5351_v29  ;;  %v5344_v59 = vmul.f32 0.015625, %v5316_v62 }
 0x7e3   : > { %v5367_v52 = vmax.f32 %v5359_v10, 0.0 }
 0x7e5   : > { %v5383_v21 = vadd.f32 1e-05, %v5367_v52 }
 0x7e6   : > { %v5283_v16 = vpop.xlane.xlu1 %5282 }
 0x7e7   : > { %5661 = vrsqrt.f32 %v5383_v21  ;;  %v8570_v49 = vmul.f32 0.015625, %v5283_v16  ;;  %vm5397_vm5 = vweird.f32 %v5383_v21 }
 0x7e8   : > { %v5286_v32 = vpop.xlane.xlu2 %5285  ;;  %v5319_v28 = vpop.xlane.xlu0 %5318 }
 0x7e9   : > { %v5352_v50 = vmul.f32 %v8570_v49, %v8570_v49  ;;  %v8574_v41 = vmul.f32 0.015625, %v5286_v32  ;;  %v5345_v45 = vmul.f32 0.015625, %v5319_v28  ;;  %v5376_v52 = vsub.f32 %v8516_v43, %v8570_v49 }
 0x7eb   : > { %v5360_v27 = vsub.f32 %v5344_v59, %v5352_v50  ;;  %v5353_v13 = vmul.f32 %v8574_v41, %v8574_v41 }
 0x7ed   : > { %v5662_v33 = vpop.eup %5661  ;;  %v5368_v46 = vmax.f32 %v5360_v27, 0.0  ;;  %v5361_v48 = vsub.f32 %v5345_v45, %v5353_v13  ;;  %v5377_v27 = vsub.f32 %v8524_v19, %v8574_v41 }
 0x7ee   : > { %v5392_v60 = vmul.f32 %v5662_v33, %v5383_v21  ;;  %vm5398_vm4 = vweird.f32 %v5662_v33 }
 0x7ef   : > { %v5384_v12 = vadd.f32 1e-05, %v5368_v46  ;;  %v5369_v47 = vmax.f32 %v5361_v48, 0.0  ;;  %vm5399_vm6 = vmor %vm5397_vm5, %vm5398_vm4 }
 0x7f0   : > { %v5393_v25 = vmul.f32 %v5662_v33, %v5392_v60  ;;  %v5289_v37 = vpop.xlane.xlu2 %5288  ;;  %v5322_v4 = vpop.xlane.xlu1 %5321 }
 0x7f1   : > { %5663 = vrsqrt.f32 %v5384_v12  ;;  %v5385_v0 = vadd.f32 1e-05, %v5369_v47  ;;  %v8578_v39 = vmul.f32 0.015625, %v5289_v37  ;;  %v5346_v22 = vmul.f32 0.015625, %v5322_v4 }
 0x7f2   : > { %v5394_v3 = vmul.f32 0.5, %v5393_v25  ;;  %vm5407_vm8 = vweird.f32 %v5384_v12 }
 0x7f3   : > { %5665 = vrsqrt.f32 %v5385_v0  ;;  %v5354_v23 = vmul.f32 %v8578_v39, %v8578_v39  ;;  %vm5417_vm11 = vweird.f32 %v5385_v0 }
 0x7f4   : > { %v5395_v35 = vsub.f32 1.5, %v5394_v3 }
 0x7f5   : > { %v5362_v30 = vsub.f32 %v5346_v22, %v5354_v23  ;;  %v5378_v23 = vsub.f32 %v8535_v61, %v8578_v39 }
 0x7f6   : > { %v5396_v5 = vmul.f32 %v5662_v33, %v5395_v35  ;;  %v5292_v2 = vpop.xlane.xlu0 %5291 }
 0x7f7   : > { %v5664_v15 = vpop.eup %5663  ;;  %v8588_v36 = vmul.f32 0.015625, %v5292_v2  ;;  %v5370_v24 = vmax.f32 %v5362_v30, 0.0 }
 0x7f8   : > { %v5400_v26 = vsel %vm5399_vm6, %v5662_v33, %v5396_v5  ;;  %v5402_v17 = vmul.f32 %v5664_v15, %v5384_v12  ;;  %v5325_v1 = vpop.xlane.xlu2 %5324  ;;  %vm5408_vm7 = vweird.f32 %v5664_v15 }
 0x7f9   : > { %v5471_v20 = vmul.f32 %v5400_v26, %v5375_v8  ;;  %v5355_v58 = vmul.f32 %v8588_v36, %v8588_v36  ;;  %v5666_v9 = vpop.eup %5665  ;;  %v5386_v44 = vadd.f32 1e-05, %v5370_v24  ;;  %v5347_v18 = vmul.f32 0.015625, %v5325_v1  ;;  %vm5409_vm9 = vmor %vm5407_vm8, %vm5408_vm7 }
 0x7fa   : > { %v5403_v42 = vmul.f32 %v5664_v15, %v5402_v17  ;;  %v5412_v54 = vmul.f32 %v5666_v9, %v5385_v0  ;;  %vm5418_vm10 = vweird.f32 %v5666_v9  ;;  %v5379_v39 = vsub.f32 %v8542_v53, %v8588_v36 }
 0x7fb   : > { %v5483_v14 = vmul.f32 %v8586_v31, %v5471_v20  ;;  %5667 = vrsqrt.f32 %v5386_v44  ;;  %v5363_v7 = vsub.f32 %v5347_v18, %v5355_v58  ;;  %vm5419_vm12 = vmor %vm5417_vm11, %vm5418_vm10  ;;  %vm5427_vm14 = vweird.f32 %v5386_v44 }
 0x7fc   : > { %v5404_v51 = vmul.f32 0.5, %v5403_v42  ;;  %v5413_v63 = vmul.f32 %v5666_v9, %v5412_v54 }
 0x7fd   : > { %v5495_v11 = vadd.f32 %v8594_v57, %v5483_v14  ;;  %v5371_v40 = vmax.f32 %v5363_v7, 0.0 }
 0x7fe   : > { %v5405_v6 = vsub.f32 1.5, %v5404_v51  ;;  %v5414_v29 = vmul.f32 0.5, %v5413_v63  ;;  %v5295_v10 = vpop.xlane.xlu1 %5294 }
 0x7ff   : > { %5503 = vst.msk [vmem:[%s8602_s29] sm:$0xff] %vm5277_vm2, %v5495_v11  ;;  %v5387_v62 = vadd.f32 1e-05, %v5371_v40  ;;  %v5340_v54 = vmul.f32 0.015625, %v5295_v10 }
 0x800   : > { %v5406_v38 = vmul.f32 %v5664_v15, %v5405_v6  ;;  %v5415_v21 = vsub.f32 1.5, %v5414_v29 }
 0x801   : > { %v5668_v16 = vpop.eup %5667  ;;  %5669 = vrsqrt.f32 %v5387_v62  ;;  %vm5437_vm1 = vweird.f32 %v5387_v62 }
 0x802   : > { %v5410_v59 = vsel %vm5409_vm9, %v5664_v15, %v5406_v38  ;;  %v5416_v32 = vmul.f32 %v5666_v9, %v5415_v21  ;;  %v5422_v28 = vmul.f32 %v5668_v16, %v5386_v44  ;;  %vm5428_vm13 = vweird.f32 %v5668_v16 }
 0x803   : > { %v5472_v50 = vmul.f32 %v5410_v59, %v5376_v52  ;;  %vm5429_vm15 = vmor %vm5427_vm14, %vm5428_vm13  ;;  %v5356_v38 = vmul.f32 %v5340_v54, %v5340_v54 }
 0x804   : > { %v5420_v45 = vsel %vm5419_vm12, %v5666_v9, %v5416_v32  ;;  %v5423_v33 = vmul.f32 %v5668_v16, %v5422_v28 }
 0x805   : > { %v5484_v13 = vmul.f32 %v8586_v31, %v5472_v50  ;;  %v5473_v43 = vmul.f32 %v5420_v45, %v5377_v27 }
 0x806   : > { %v5298_v49 = vpop.xlane.xlu2 %5297  ;;  %v5424_v60 = vmul.f32 0.5, %v5423_v33 }
 0x807   : > { %v5496_v46 = vadd.f32 %v8594_v57, %v5484_v13  ;;  %v8613_v48 = vmul.f32 0.015625, %v5298_v49  ;;  %v5670_v12 = vpop.eup %5669  ;;  %v5485_v25 = vmul.f32 %v8586_v31, %v5473_v43 }
 0x808   : > { %v5331_v47 = vpop.xlane.xlu1 %5330  ;;  %v5425_v19 = vsub.f32 1.5, %v5424_v60  ;;  %v5432_v41 = vmul.f32 %v5670_v12, %v5387_v62  ;;  %vm5438_vm0 = vweird.f32 %v5670_v12 }
 0x809   : > { %5504 = vst.msk [vmem:[%s8602_s29 + $0x8] sm:$0xff] %vm5277_vm2, %v5496_v46  ;;  %v5357_v37 = vmul.f32 %v8613_v48, %v8613_v48  ;;  %v5497_v4 = vadd.f32 %v8594_v57, %v5485_v25  ;;  %v5349_v3 = vmul.f32 0.015625, %v5331_v47  ;;  %vm5439_vm4 = vmor %vm5437_vm1, %vm5438_vm0  ;;  %v5381_v28 = vsub.f32 %v8553_v55, %v8613_v48 }
 0x80a   : > { %v5426_v0 = vmul.f32 %v5668_v16, %v5425_v19  ;;  %v5433_v35 = vmul.f32 %v5670_v12, %v5432_v41 }
 0x80b   : > { %5505 = vst.msk [vmem:[%s8602_s29 + $0x10] sm:$0xff] %vm5277_vm2, %v5497_v4  ;;  %v5365_v22 = vsub.f32 %v5349_v3, %v5357_v37 }
 0x80c   : > { %v5430_v5 = vsel %vm5429_vm15, %v5668_v16, %v5426_v0  ;;  %v5434_v30 = vmul.f32 0.5, %v5433_v35  ;;  %v5380_v35 = vsub.f32 %v8549_v56, %v5340_v54 }
 0x80d   : > { %v5474_v2 = vmul.f32 %v5430_v5, %v5378_v23  ;;  %v5373_v15 = vmax.f32 %v5365_v22, 0.0 }
 0x80e   : > { %v5302_v8 = vpop.xlane.xlu0 %5301  ;;  %v5435_v26 = vsub.f32 1.5, %v5434_v30 }
 0x80f   : > { %v5342_v17 = vmul.f32 0.015625, %v5302_v8  ;;  %v5486_v24 = vmul.f32 %v8586_v31, %v5474_v2  ;;  %v5389_v20 = vadd.f32 1e-05, %v5373_v15 }
 0x810   : > { %v5334_v58 = vpop.xlane.xlu2 %5333  ;;  %v5436_v1 = vmul.f32 %v5670_v12, %v5435_v26 }
 0x811   : > { %v5358_v9 = vmul.f32 %v5342_v17, %v5342_v17  ;;  %v5350_v42 = vmul.f32 0.015625, %v5334_v58  ;;  %v5498_v61 = vadd.f32 %v8594_v57, %v5486_v24  ;;  %5671 = vrsqrt.f32 %v5389_v20 }
 0x812   : > { %v5440_v44 = vsel %vm5439_vm4, %v5670_v12, %v5436_v1  ;;  %vm5457_vm6 = vweird.f32 %v5389_v20  ;;  %v5382_v47 = vsub.f32 %v8560_v34, %v5342_v17 }
 0x813   : > { %v5366_v18 = vsub.f32 %v5350_v42, %v5358_v9  ;;  %5506 = vst.msk [vmem:[%s8602_s29 + $0x18] sm:$0xff] %vm5277_vm2, %v5498_v61  ;;  %v5475_v14 = vmul.f32 %v5440_v44, %v5379_v39 }
 0x815   : > { %v5374_v51 = vmax.f32 %v5366_v18, 0.0  ;;  %v5487_v7 = vmul.f32 %v8586_v31, %v5475_v14 }
 0x816   : > { %v5328_v11 = vpop.xlane.xlu0 %5327 }
 0x817   : > { %v5390_v63 = vadd.f32 1e-05, %v5374_v51  ;;  %v5348_v6 = vmul.f32 0.015625, %v5328_v11  ;;  %v5672_v40 = vpop.eup %5671  ;;  %v5499_v29 = vadd.f32 %v8594_v57, %v5487_v7 }
 0x818   : > { %v5452_v53 = vmul.f32 %v5672_v40, %v5389_v20  ;;  %vm5458_vm5 = vweird.f32 %v5672_v40 }
 0x819   : > { %5673 = vrsqrt.f32 %v5390_v63  ;;  %5507 = vst.msk [vmem:[%s8602_s29 + $0x20] sm:$0xff] %vm5277_vm2, %v5499_v29  ;;  %v5364_v36 = vsub.f32 %v5348_v6, %v5356_v38  ;;  %vm5459_vm7 = vmor %vm5457_vm6, %vm5458_vm5  ;;  %vm5467_vm9 = vweird.f32 %v5390_v63 }
 0x81a   : > { %v5453_v62 = vmul.f32 %v5672_v40, %v5452_v53 }
 0x81b   : > { %v5372_v52 = vmax.f32 %v5364_v36, 0.0 }
 0x81c   : > { %v5454_v21 = vmul.f32 0.5, %v5453_v62 }
 0x81d   : > { %v5388_v16 = vadd.f32 1e-05, %v5372_v52 }
 0x81e   : > { %v5455_v59 = vsub.f32 1.5, %v5454_v21 }
 0x81f   : > { %v5674_v10 = vpop.eup %5673  ;;  %5675 = vrsqrt.f32 %v5388_v16  ;;  %vm5447_vm12 = vweird.f32 %v5388_v16 }
 0x820   : > { %v5462_v50 = vmul.f32 %v5674_v10, %v5390_v63  ;;  %v5456_v32 = vmul.f32 %v5672_v40, %v5455_v59  ;;  %vm5468_vm8 = vweird.f32 %v5674_v10 }
 0x821   : > { %vm5469_vm10 = vmor %vm5467_vm9, %vm5468_vm8 }
 0x822   : > { %v5463_v27 = vmul.f32 %v5674_v10, %v5462_v50  ;;  %v5460_v13 = vsel %vm5459_vm7, %v5672_v40, %v5456_v32 }
 0x823   : > { %v5477_v45 = vmul.f32 %v5460_v13, %v5381_v28 }
 0x824   : > { %v5464_v33 = vmul.f32 0.5, %v5463_v27 }
 0x825   : > { %v5676_v43 = vpop.eup %5675  ;;  %v5489_v49 = vmul.f32 %v8586_v31, %v5477_v45 }
 0x826   : > { %v5465_v46 = vsub.f32 1.5, %v5464_v33  ;;  %v5442_v60 = vmul.f32 %v5676_v43, %v5388_v16  ;;  %vm5448_vm11 = vweird.f32 %v5676_v43 }
 0x827   : > { %v5501_v12 = vadd.f32 %v8594_v57, %v5489_v49  ;;  %vm5449_vm13 = vmor %vm5447_vm12, %vm5448_vm11 }
 0x828   : > { %v5466_v25 = vmul.f32 %v5674_v10, %v5465_v46  ;;  %v5443_v55 = vmul.f32 %v5676_v43, %v5442_v60 }
 0x829   : > { %5509 = vst.msk [vmem:[%s8602_s29 + $0x30] sm:$0xff] %vm5277_vm2, %v5501_v12 }
 0x82a   : > { %v5470_v48 = vsel %vm5469_vm10, %v5674_v10, %v5466_v25  ;;  %v5444_v41 = vmul.f32 0.5, %v5443_v55 }
 0x82b   : > { %v5478_v19 = vmul.f32 %v5470_v48, %v5382_v47 }
 0x82c   : > { %v5445_v4 = vsub.f32 1.5, %v5444_v41 }
 0x82d   : > { %v5490_v37 = vmul.f32 %v8586_v31, %v5478_v19 }
 0x82e   : > { %v5446_v0 = vmul.f32 %v5676_v43, %v5445_v4 }
 0x82f   : > { %v5502_v3 = vadd.f32 %v8594_v57, %v5490_v37 }
 0x830   : > { %v5450_v34 = vsel %vm5449_vm13, %v5676_v43, %v5446_v0 }
 0x831   : > { %5510 = vst.msk [vmem:[%s8602_s29 + $0x38] sm:$0x7f] %vm5299_vm3, %v5502_v3  ;;  %v5476_v23 = vmul.f32 %v5450_v34, %v5380_v35 }
 0x833   : > { %v5488_v22 = vmul.f32 %v8586_v31, %v5476_v23 }
 0x835   : > { %v5500_v5 = vadd.f32 %v8594_v57, %v5488_v22 }
 0x837   : > { %5508 = vst.msk [vmem:[%s8602_s29 + $0x28] sm:$0xff] %vm5277_vm2, %v5500_v5 }
 0x838 PF: > { %s19_s28 = sadd.s32 1, %s5683_s28  }
 0x839   : > { %p16_p4 = scmp.ge.s32.totalorder %s19_s28, 4  }
 0x83b   :  { %18 = sbr.rel (!%p16_p4) target bundleno = 3 (0x3), region = 78 }

</bundles_post_ra>
